<compile_context>
chip_gen: v6e
topology: v6e:2x2x1
jax: 0.10.0
libtpu: 0.0.40
codegen_flags: <defaults>
</compile_context>

<pallas_src>
import functools

import jax
import jax.numpy as jnp
from jax.experimental import pallas as pl
from jax.experimental.pallas import tpu as pltpu


# ----------------------------- Pallas kernel --------------------------------


def _dy_intra_kernel(
    # batch-blocked tensors
    v_ref, q_ref,
    vmc_ref, vmr_ref, qmc_ref, qmr_ref,
    ivc_ref, iqc_ref,
    # weights (grid-invariant)
    w_v4q_ref, b_v4q_ref, w_q4v_ref, b_q4v_ref,
    w_vk_ref, b_vk_ref, w_vq_ref, b_vq_ref, w_vv_ref, b_vv_ref,
    w_qk_ref, b_qk_ref, w_qq_ref, b_qq_ref, w_qv_ref, b_qv_ref,
    w_vo_ref, b_vo_ref, w_qo_ref, b_qo_ref,
    # outputs (lane-dense, padded to a multiple of 128 on the last dim)
    out_v_ref, out_q_ref,
    # VMEM scratch: per-modality multi-head update buffers
    v_upd_ref, q_upd_ref,
    *, num_head: int, d: int, compute_dtype,
):
    hd = d // num_head
    scale = 1.0 / (hd ** 0.5)
    NEG = -1e30  # finite sentinel: exp() underflows to exactly 0 — no NaNs

    def cast(x):
        return x.astype(compute_dtype)

    def mm(a, b):
        return jnp.dot(cast(a), cast(b), preferred_element_type=jnp.float32)

    def one_plus_gate(x3, mcol3, inv3, w_ref, b_ref):
        # masked mean; 1/count precomputed in the wrapper (no in-kernel divide)
        mean2 = jnp.sum(x3 * mcol3, axis=1) * inv3.reshape(x3.shape[0], 1)  # (Bt, D_in)
        z = mm(mean2, w_ref[...]) + b_ref[...]                              # (Bt, D)
        return 1.0 + 1.0 / (1.0 + jnp.exp(-z))                              # 1 + sigmoid

    def attend(x3, mcol3, mrow3, gate2,
               wk_ref, bk_ref, wq_ref, bq_ref, wv_ref, bv_ref,
               wo_ref, bo_ref, upd_ref, out_ref):
        bt, n, _ = x3.shape
        x2 = x3.reshape(bt * n, x3.shape[-1])          # fill MXU rows with Bt*n
        g3 = gate2[:, None, :]                         # (Bt, 1, D)
        g3sq = g3 * g3                                 # hoisted: (1+g)^2, one broadcast

        # lane-aligned K/Q/V projections — one 2-D matmul each
        key3 = (mm(x2, wk_ref[...]) + bk_ref[...]).reshape(bt, n, d) * mcol3
        val3 = (mm(x2, wv_ref[...]) + bv_ref[...]).reshape(bt, n, d) * mcol3
        # gate folding: (g*q)(g*k)^T == (g^2*q)k^T, so only queries get multiplied
        qry3 = ((mm(x2, wq_ref[...]) + bq_ref[...]).reshape(bt, n, d)
                * mcol3 * g3sq)

        for h in range(num_head):
            lo = h * hd
            s = jnp.einsum(
                'bnd,bmd->bnm',
                cast(qry3[:, :, lo:lo + hd]), cast(key3[:, :, lo:lo + hd]),
                preferred_element_type=jnp.float32) * scale
            s = jnp.where(mrow3 == 0.0, NEG, s)
            s = s - jnp.max(s, axis=-1, keepdims=True)
            p = jnp.exp(s)
            p = p * pl.reciprocal(jnp.sum(p, axis=-1, keepdims=True), approx=True)
            upd_ref[:, :, lo:lo + hd] = jnp.einsum(
                'bnm,bmd->bnd', cast(p), cast(val3[:, :, lo:lo + hd]),
                preferred_element_type=jnp.float32)

        # gate folding: p @ (g*val) == g * (p @ val) — apply (1+g) once, post-attention
        upd3 = upd_ref[...] * g3
        res2 = (x3 + upd3).reshape(bt * n, d)
        out2 = mm(res2, wo_ref[...]) + bo_ref[...]     # (Bt*n, D_pad) lane-dense
        out_ref[...] = out2.reshape(bt, n, out_ref.shape[-1])

    v3, q3 = v_ref[...], q_ref[...]
    vmc3, vmr3 = vmc_ref[...], vmr_ref[...]
    qmc3, qmr3 = qmc_ref[...], qmr_ref[...]

    v4q = one_plus_gate(v3, vmc3, ivc_ref[...], w_v4q_ref, b_v4q_ref)  # gates q-side
    q4v = one_plus_gate(q3, qmc3, iqc_ref[...], w_q4v_ref, b_q4v_ref)  # gates v-side

    attend(v3, vmc3, vmr3, q4v,
           w_vk_ref, b_vk_ref, w_vq_ref, b_vq_ref, w_vv_ref, b_vv_ref,
           w_vo_ref, b_vo_ref, v_upd_ref, out_v_ref)
    attend(q3, qmc3, qmr3, v4q,
           w_qk_ref, b_qk_ref, w_qq_ref, b_qq_ref, w_qv_ref, b_qv_ref,
           w_qo_ref, b_qo_ref, q_upd_ref, out_q_ref)


# ------------------------------- wrapper -------------------------------------


def _pick_block_b(batch):
    """Largest divisor of `batch` <= 8 that still leaves >= 2 grid steps (v7x: 2 TCs)."""
    cands = [c for c in range(1, min(batch, 8) + 1)
             if batch % c == 0 and batch // c >= 2]
    return max(cands) if cands else batch


def dy_intra_modality_update(v, q, v_mask, q_mask, params, num_head,
                             block_b=None, compute_dtype=jnp.float32):
    """Pallas implementation of DyIntraModalityUpdate.forward (APPLY_MASK=True).

    Pass compute_dtype=jnp.bfloat16 on v6e/v7x for bf16 MXU matmuls (f32 accumulate).
    """
    B, num_obj, v_size = v.shape
    _, max_len, q_size = q.shape
    d = params["w_v_out"].shape[0]
    assert d % num_head == 0
    assert v_size == d and q_size == d  # required by the residual in the module

    if block_b is None:
        block_b = _pick_block_b(B)
    assert B % block_b == 0, "block_b must divide the batch size"
    grid = (B // block_b,)

    # lane-dense output width: pad the output projection, slice padding off outside
    d_pad = max(128, ((d + 127) // 128) * 128)
    pad = d_pad - d
    w_vo = jnp.pad(params["w_v_out"], ((0, 0), (0, pad)))
    b_vo = jnp.pad(params["b_v_out"], ((0, 0), (0, pad)))
    w_qo = jnp.pad(params["w_q_out"], ((0, 0), (0, pad)))
    b_qo = jnp.pad(params["b_q_out"], ((0, 0), (0, pad)))

    f32 = jnp.float32
    vmc = v_mask[:, :, None].astype(f32)          # (B, num_obj, 1)
    vmr = v_mask[:, None, :].astype(f32)          # (B, 1, num_obj)
    qmc = q_mask[:, :, None].astype(f32)          # (B, max_len, 1)
    qmr = q_mask[:, None, :].astype(f32)          # (B, 1, max_len)
    inv_vc = (1.0 / jnp.sum(v_mask.astype(f32), axis=1))[:, None, None]  # (B,1,1)
    inv_qc = (1.0 / jnp.sum(q_mask.astype(f32), axis=1))[:, None, None]  # (B,1,1)

    weight_args = [
        params["w_v4q"], params["b_v4q"], params["w_q4v"], params["b_q4v"],
        params["w_v_key"], params["b_v_key"], params["w_v_qry"], params["b_v_qry"],
        params["w_v_val"], params["b_v_val"],
        params["w_q_key"], params["b_q_key"], params["w_q_qry"], params["b_q_qry"],
        params["w_q_val"], params["b_q_val"],
        w_vo, b_vo, w_qo, b_qo,
    ]

    def bspec(*tail):
        zeros = (0,) * len(tail)
        return pl.BlockSpec((block_b,) + tail, lambda b, _z=zeros: (b,) + _z)

    def wspec(arr):
        zeros = (0,) * arr.ndim
        return pl.BlockSpec(arr.shape, lambda b, _z=zeros: _z)

    in_specs = [
        bspec(num_obj, v_size), bspec(max_len, q_size),
        bspec(num_obj, 1), bspec(1, num_obj),
        bspec(max_len, 1), bspec(1, max_len),
        bspec(1, 1), bspec(1, 1),
    ] + [wspec(w) for w in weight_args]

    out_specs = [bspec(num_obj, d_pad), bspec(max_len, d_pad)]
    out_shape = (jax.ShapeDtypeStruct((B, num_obj, d_pad), f32),
                 jax.ShapeDtypeStruct((B, max_len, d_pad), f32))

    # Rough VMEM budget: weights double-buffered + blocked in/out tiles + scratch.
    # Only raise the scoped limit when actually needed (tiny test config stays default).
    vmem_bytes = 2 * sum(int(a.size) * a.dtype.itemsize for a in weight_args)
    vmem_bytes += 2 * 4 * block_b * (num_obj + max_len) * (d + d_pad)
    vmem_bytes += 4 * block_b * (num_obj + max_len) * d
    cp_kwargs = dict(dimension_semantics=("parallel",))
    if vmem_bytes > 16 * 1024 * 1024:
        cp_kwargs["vmem_limit_bytes"] = min(2 * vmem_bytes, 60 * 1024 * 1024)

    kernel = functools.partial(_dy_intra_kernel, num_head=num_head, d=d,
                               compute_dtype=compute_dtype)

    out_v, out_q = pl.pallas_call(
        kernel,
        out_shape=out_shape,
        grid=grid,
        in_specs=in_specs,
        out_specs=out_specs,
        scratch_shapes=[pltpu.VMEM((block_b, num_obj, d), jnp.float32),
                        pltpu.VMEM((block_b, max_len, d), jnp.float32)],
        compiler_params=pltpu.CompilerParams(**cp_kwargs),
    )(v, q, vmc, vmr, qmc, qmr, inv_vc, inv_qc, *weight_args)

    return out_v[..., :d], out_q[..., :d]


# --------------------------- pure-JAX reference -------------------------------


def reference(v, q, v_mask, q_mask, p, num_head):
    d = p["w_v_out"].shape[0]
    hd = d // num_head
    # reassemble the combined 3D projection exactly as the torch module (key,qry,val)
    w_vlin = jnp.concatenate([p["w_v_key"], p["w_v_qry"], p["w_v_val"]], axis=1)
    b_vlin = jnp.concatenate([p["b_v_key"], p["b_v_qry"], p["b_v_val"]], axis=1)
    w_qlin = jnp.concatenate([p["w_q_key"], p["w_q_qry"], p["w_q_val"]], axis=1)
    b_qlin = jnp.concatenate([p["b_q_key"], p["b_q_qry"], p["b_q_val"]], axis=1)

    v_mean = (v * v_mask[..., None]).sum(1) / v_mask.sum(1, keepdims=True)
    q_mean = (q * q_mask[..., None]).sum(1) / q_mask.sum(1, keepdims=True)
    v4q_gate = jax.nn.sigmoid(v_mean @ p["w_v4q"] + p["b_v4q"])[:, None, :]
    q4v_gate = jax.nn.sigmoid(q_mean @ p["w_q4v"] + p["b_q4v"])[:, None, :]

    v_trans = (v @ w_vlin + b_vlin) * v_mask[..., None]
    q_trans = (q @ w_qlin + b_qlin) * q_mask[..., None]
    v_key, v_qry, v_val = jnp.split(v_trans, 3, axis=2)
    q_key, q_qry, q_val = jnp.split(q_trans, 3, axis=2)
    gv_qry, gv_key, gv_val = ((1 + q4v_gate) * v_qry, (1 + q4v_gate) * v_key,
                              (1 + q4v_gate) * v_val)
    gq_qry, gq_key, gq_val = ((1 + v4q_gate) * q_qry, (1 + v4q_gate) * q_key,
                              (1 + v4q_gate) * q_val)

    def attn(qry, key, val, mask):
        ups = []
        for i in range(num_head):
            lo, hi = i * hd, (i + 1) * hd
            s = jnp.einsum("bnd,bmd->bnm", qry[..., lo:hi], key[..., lo:hi]) / hd ** 0.5
            s = jnp.where(mask[:, None, :] == 0, -jnp.inf, s)
            a = jax.nn.softmax(s, axis=-1)
            ups.append(jnp.einsum("bnm,bmd->bnd", a, val[..., lo:hi]))
        return jnp.concatenate(ups, axis=-1)

    v_update = attn(gv_qry, gv_key, gv_val, v_mask)
    q_update = attn(gq_qry, gq_key, gq_val, q_mask)
    updated_v = (v + v_update) @ p["w_v_out"] + p["b_v_out"]
    updated_q = (q + q_update) @ p["w_q_out"] + p["b_q_out"]
    return updated_v, updated_q


# --------------------------------- params -------------------------------------


def make_params(key, v_size, q_size, output_size):
    """Deterministic synthetic init. weight_norm(Linear) with drop=0 folds into (W, b)."""
    keys = jax.random.split(key, 10)

    def lin(k, fan_in, fan_out):
        kw, kb = jax.random.split(k)
        w = 0.1 * jax.random.normal(kw, (fan_in, fan_out), jnp.float32)
        b = 0.05 * jax.random.normal(kb, (1, fan_out), jnp.float32)
        return w, b

    p = {}
    p["w_v4q"], p["b_v4q"] = lin(keys[0], v_size, output_size)
    p["w_q4v"], p["b_q4v"] = lin(keys[1], q_size, output_size)
    p["w_v_key"], p["b_v_key"] = lin(keys[2], v_size, output_size)
    p["w_v_qry"], p["b_v_qry"] = lin(keys[3], v_size, output_size)
    p["w_v_val"], p["b_v_val"] = lin(keys[4], v_size, output_size)
    p["w_q_key"], p["b_q_key"] = lin(keys[5], q_size, output_size)
    p["w_q_qry"], p["b_q_qry"] = lin(keys[6], q_size, output_size)
    p["w_q_val"], p["b_q_val"] = lin(keys[7], q_size, output_size)
    p["w_v_out"], p["b_v_out"] = lin(keys[8], output_size, output_size)
    p["w_q_out"], p["b_q_out"] = lin(keys[9], output_size, output_size)
    return p


# --------------------------------- main ---------------------------------------


if __name__ == "__main__":
    B, num_obj, max_len = 2, 16, 8
    v_size = q_size = output_size = 32
    num_head = 4

    root = jax.random.PRNGKey(0)
    k_v, k_q, k_p = jax.random.split(root, 3)

    v = jax.random.normal(k_v, (B, num_obj, v_size), jnp.float32)
    q = jax.random.normal(k_q, (B, max_len, q_size), jnp.float32)
    # masks: leading positions valid, trailing positions masked out
    v_mask = (jnp.arange(num_obj)[None, :] < jnp.array([12, 16])[:, None]).astype(jnp.float32)
    q_mask = (jnp.arange(max_len)[None, :] < jnp.array([6, 8])[:, None]).astype(jnp.float32)

    params = make_params(k_p, v_size, q_size, output_size)

    out_v, out_q = dy_intra_modality_update(v, q, v_mask, q_mask, params, num_head)
    jax.block_until_ready((out_v, out_q))

    ref_v, ref_q = reference(v, q, v_mask, q_mask, params, num_head)
    # tolerance loosened slightly (1e-4 -> 2e-3) for pl.reciprocal(approx=True) softmax
    assert jnp.allclose(out_v, ref_v, rtol=2e-3, atol=2e-3), "v mismatch"
    assert jnp.allclose(out_q, ref_q, rtol=2e-3, atol=2e-3), "q mismatch"

    print("KERNEL_OK")
</pallas_src>

<mosaic_0001>
module attributes {stable_mosaic.version = 11 : i64} {
  func.func @_dy_intra_kernel(%arg0: i32, %arg1: memref<1x16x32xf32, #tpu.memory_space<vmem>>, %arg2: memref<1x8x32xf32, #tpu.memory_space<vmem>>, %arg3: memref<1x16x1xf32, #tpu.memory_space<vmem>>, %arg4: memref<1x1x16xf32, #tpu.memory_space<vmem>>, %arg5: memref<1x8x1xf32, #tpu.memory_space<vmem>>, %arg6: memref<1x1x8xf32, #tpu.memory_space<vmem>>, %arg7: memref<1x1x1xf32, #tpu.memory_space<vmem>>, %arg8: memref<1x1x1xf32, #tpu.memory_space<vmem>>, %arg9: memref<32x32xf32, #tpu.memory_space<vmem>>, %arg10: memref<1x32xf32, #tpu.memory_space<vmem>>, %arg11: memref<32x32xf32, #tpu.memory_space<vmem>>, %arg12: memref<1x32xf32, #tpu.memory_space<vmem>>, %arg13: memref<32x32xf32, #tpu.memory_space<vmem>>, %arg14: memref<1x32xf32, #tpu.memory_space<vmem>>, %arg15: memref<32x32xf32, #tpu.memory_space<vmem>>, %arg16: memref<1x32xf32, #tpu.memory_space<vmem>>, %arg17: memref<32x32xf32, #tpu.memory_space<vmem>>, %arg18: memref<1x32xf32, #tpu.memory_space<vmem>>, %arg19: memref<32x32xf32, #tpu.memory_space<vmem>>, %arg20: memref<1x32xf32, #tpu.memory_space<vmem>>, %arg21: memref<32x32xf32, #tpu.memory_space<vmem>>, %arg22: memref<1x32xf32, #tpu.memory_space<vmem>>, %arg23: memref<32x32xf32, #tpu.memory_space<vmem>>, %arg24: memref<1x32xf32, #tpu.memory_space<vmem>>, %arg25: memref<32x128xf32, #tpu.memory_space<vmem>>, %arg26: memref<1x128xf32, #tpu.memory_space<vmem>>, %arg27: memref<32x128xf32, #tpu.memory_space<vmem>>, %arg28: memref<1x128xf32, #tpu.memory_space<vmem>>, %arg29: memref<1x16x128xf32, #tpu.memory_space<vmem>>, %arg30: memref<1x8x128xf32, #tpu.memory_space<vmem>>, %arg31: memref<1x16x32xf32, #tpu.memory_space<vmem>>, %arg32: memref<1x8x32xf32, #tpu.memory_space<vmem>>) attributes {dimension_semantics = [#tpu.dimension_semantics<parallel>], iteration_bounds = array<i64: 2>, scalar_prefetch = 0 : i64, scratch_operands = 2 : i64, tpu.core_type = #tpu.core_type<tc>, window_params = [{transform_indices = @transform_0, window_bounds = array<i64: 1, 16, 32>}, {transform_indices = @transform_1, window_bounds = array<i64: 1, 8, 32>}, {transform_indices = @transform_2, window_bounds = array<i64: 1, 16, 1>}, {transform_indices = @transform_3, window_bounds = array<i64: 1, 1, 16>}, {transform_indices = @transform_4, window_bounds = array<i64: 1, 8, 1>}, {transform_indices = @transform_5, window_bounds = array<i64: 1, 1, 8>}, {transform_indices = @transform_6, window_bounds = array<i64: 1, 1, 1>}, {transform_indices = @transform_7, window_bounds = array<i64: 1, 1, 1>}, {pipeline_mode = #tpu.pipeline_mode<synchronous>, transform_indices = @transform_8, window_bounds = array<i64: 32, 32>}, {pipeline_mode = #tpu.pipeline_mode<synchronous>, transform_indices = @transform_9, window_bounds = array<i64: 1, 32>}, {pipeline_mode = #tpu.pipeline_mode<synchronous>, transform_indices = @transform_10, window_bounds = array<i64: 32, 32>}, {pipeline_mode = #tpu.pipeline_mode<synchronous>, transform_indices = @transform_11, window_bounds = array<i64: 1, 32>}, {pipeline_mode = #tpu.pipeline_mode<synchronous>, transform_indices = @transform_12, window_bounds = array<i64: 32, 32>}, {pipeline_mode = #tpu.pipeline_mode<synchronous>, transform_indices = @transform_13, window_bounds = array<i64: 1, 32>}, {pipeline_mode = #tpu.pipeline_mode<synchronous>, transform_indices = @transform_14, window_bounds = array<i64: 32, 32>}, {pipeline_mode = #tpu.pipeline_mode<synchronous>, transform_indices = @transform_15, window_bounds = array<i64: 1, 32>}, {pipeline_mode = #tpu.pipeline_mode<synchronous>, transform_indices = @transform_16, window_bounds = array<i64: 32, 32>}, {pipeline_mode = #tpu.pipeline_mode<synchronous>, transform_indices = @transform_17, window_bounds = array<i64: 1, 32>}, {pipeline_mode = #tpu.pipeline_mode<synchronous>, transform_indices = @transform_18, window_bounds = array<i64: 32, 32>}, {pipeline_mode = #tpu.pipeline_mode<synchronous>, transform_indices = @transform_19, window_bounds = array<i64: 1, 32>}, {pipeline_mode = #tpu.pipeline_mode<synchronous>, transform_indices = @transform_20, window_bounds = array<i64: 32, 32>}, {pipeline_mode = #tpu.pipeline_mode<synchronous>, transform_indices = @transform_21, window_bounds = array<i64: 1, 32>}, {pipeline_mode = #tpu.pipeline_mode<synchronous>, transform_indices = @transform_22, window_bounds = array<i64: 32, 32>}, {pipeline_mode = #tpu.pipeline_mode<synchronous>, transform_indices = @transform_23, window_bounds = array<i64: 1, 32>}, {pipeline_mode = #tpu.pipeline_mode<synchronous>, transform_indices = @transform_24, window_bounds = array<i64: 32, 128>}, {pipeline_mode = #tpu.pipeline_mode<synchronous>, transform_indices = @transform_25, window_bounds = array<i64: 1, 128>}, {pipeline_mode = #tpu.pipeline_mode<synchronous>, transform_indices = @transform_26, window_bounds = array<i64: 32, 128>}, {pipeline_mode = #tpu.pipeline_mode<synchronous>, transform_indices = @transform_27, window_bounds = array<i64: 1, 128>}, {transform_indices = @transform_28, window_bounds = array<i64: 1, 16, 128>}, {transform_indices = @transform_29, window_bounds = array<i64: 1, 8, 128>}]} {
    %c0 = arith.constant 0 : index
    %c0_0 = arith.constant 0 : index
    %c0_1 = arith.constant 0 : index
    %0 = vector.load %arg1[%c0, %c0_0, %c0_1] : memref<1x16x32xf32, #tpu.memory_space<vmem>>, vector<1x16x32xf32>
    %c0_2 = arith.constant 0 : index
    %c0_3 = arith.constant 0 : index
    %c0_4 = arith.constant 0 : index
    %1 = vector.load %arg2[%c0_2, %c0_3, %c0_4] : memref<1x8x32xf32, #tpu.memory_space<vmem>>, vector<1x8x32xf32>
    %c0_5 = arith.constant 0 : index
    %c0_6 = arith.constant 0 : index
    %c0_7 = arith.constant 0 : index
    %2 = vector.load %arg3[%c0_5, %c0_6, %c0_7] : memref<1x16x1xf32, #tpu.memory_space<vmem>>, vector<1x16x1xf32>
    %c0_8 = arith.constant 0 : index
    %c0_9 = arith.constant 0 : index
    %c0_10 = arith.constant 0 : index
    %3 = vector.load %arg4[%c0_8, %c0_9, %c0_10] : memref<1x1x16xf32, #tpu.memory_space<vmem>>, vector<1x1x16xf32>
    %c0_11 = arith.constant 0 : index
    %c0_12 = arith.constant 0 : index
    %c0_13 = arith.constant 0 : index
    %4 = vector.load %arg5[%c0_11, %c0_12, %c0_13] : memref<1x8x1xf32, #tpu.memory_space<vmem>>, vector<1x8x1xf32>
    %c0_14 = arith.constant 0 : index
    %c0_15 = arith.constant 0 : index
    %c0_16 = arith.constant 0 : index
    %5 = vector.load %arg6[%c0_14, %c0_15, %c0_16] : memref<1x1x8xf32, #tpu.memory_space<vmem>>, vector<1x1x8xf32>
    %c0_17 = arith.constant 0 : index
    %c0_18 = arith.constant 0 : index
    %c0_19 = arith.constant 0 : index
    %6 = vector.load %arg7[%c0_17, %c0_18, %c0_19] : memref<1x1x1xf32, #tpu.memory_space<vmem>>, vector<1x1x1xf32>
    %7 = vector.broadcast %2 : vector<1x16x1xf32> to vector<1x16x32xf32>
    %8 = arith.mulf %0, %7 : vector<1x16x32xf32>
    %cst = arith.constant dense<0.000000e+00> : vector<1x32xf32>
    %9 = vector.multi_reduction <add>, %8, %cst [1] : vector<1x16x32xf32> to vector<1x32xf32>
    %10 = vector.shape_cast %6 : vector<1x1x1xf32> to vector<1x1xf32>
    %11 = vector.broadcast %10 : vector<1x1xf32> to vector<1x32xf32>
    %12 = arith.mulf %9, %11 : vector<1x32xf32>
    %c0_20 = arith.constant 0 : index
    %c0_21 = arith.constant 0 : index
    %13 = vector.load %arg9[%c0_20, %c0_21] : memref<32x32xf32, #tpu.memory_space<vmem>>, vector<32x32xf32>
    %cst_22 = arith.constant dense<0.000000e+00> : vector<1x32xf32>
    %14 = tpu.matmul %12, %13, %cst_22 {dimension_numbers = #tpu.dot_dimension_numbers<[1], [0], [0], [1], [0, 0, 1, 1], [], []>} : vector<1x32xf32>, vector<32x32xf32>, vector<1x32xf32> -> vector<1x32xf32>
    %c0_23 = arith.constant 0 : index
    %c0_24 = arith.constant 0 : index
    %15 = vector.load %arg10[%c0_23, %c0_24] : memref<1x32xf32, #tpu.memory_space<vmem>>, vector<1x32xf32>
    %16 = arith.addf %14, %15 : vector<1x32xf32>
    %cst_25 = arith.constant 0.000000e+00 : f32
    %17 = vector.broadcast %cst_25 : f32 to vector<1x32xf32>
    %18 = arith.subf %17, %16 : vector<1x32xf32>
    %19 = math.exp %18 : vector<1x32xf32>
    %cst_26 = arith.constant 1.000000e+00 : f32
    %20 = vector.broadcast %cst_26 : f32 to vector<1x32xf32>
    %21 = arith.addf %20, %19 : vector<1x32xf32>
    %cst_27 = arith.constant 1.000000e+00 : f32
    %22 = vector.broadcast %cst_27 : f32 to vector<1x32xf32>
    %23 = arith.divf %22, %21 : vector<1x32xf32>
    %cst_28 = arith.constant 1.000000e+00 : f32
    %24 = vector.broadcast %cst_28 : f32 to vector<1x32xf32>
    %25 = arith.addf %24, %23 : vector<1x32xf32>
    %c0_29 = arith.constant 0 : index
    %c0_30 = arith.constant 0 : index
    %c0_31 = arith.constant 0 : index
    %26 = vector.load %arg8[%c0_29, %c0_30, %c0_31] : memref<1x1x1xf32, #tpu.memory_space<vmem>>, vector<1x1x1xf32>
    %27 = vector.broadcast %4 : vector<1x8x1xf32> to vector<1x8x32xf32>
    %28 = arith.mulf %1, %27 : vector<1x8x32xf32>
    %cst_32 = arith.constant dense<0.000000e+00> : vector<1x32xf32>
    %29 = vector.multi_reduction <add>, %28, %cst_32 [1] : vector<1x8x32xf32> to vector<1x32xf32>
    %30 = vector.shape_cast %26 : vector<1x1x1xf32> to vector<1x1xf32>
    %31 = vector.broadcast %30 : vector<1x1xf32> to vector<1x32xf32>
    %32 = arith.mulf %29, %31 : vector<1x32xf32>
    %c0_33 = arith.constant 0 : index
    %c0_34 = arith.constant 0 : index
    %33 = vector.load %arg11[%c0_33, %c0_34] : memref<32x32xf32, #tpu.memory_space<vmem>>, vector<32x32xf32>
    %cst_35 = arith.constant dense<0.000000e+00> : vector<1x32xf32>
    %34 = tpu.matmul %32, %33, %cst_35 {dimension_numbers = #tpu.dot_dimension_numbers<[1], [0], [0], [1], [0, 0, 1, 1], [], []>} : vector<1x32xf32>, vector<32x32xf32>, vector<1x32xf32> -> vector<1x32xf32>
    %c0_36 = arith.constant 0 : index
    %c0_37 = arith.constant 0 : index
    %35 = vector.load %arg12[%c0_36, %c0_37] : memref<1x32xf32, #tpu.memory_space<vmem>>, vector<1x32xf32>
    %36 = arith.addf %34, %35 : vector<1x32xf32>
    %cst_38 = arith.constant 0.000000e+00 : f32
    %37 = vector.broadcast %cst_38 : f32 to vector<1x32xf32>
    %38 = arith.subf %37, %36 : vector<1x32xf32>
    %39 = math.exp %38 : vector<1x32xf32>
    %cst_39 = arith.constant 1.000000e+00 : f32
    %40 = vector.broadcast %cst_39 : f32 to vector<1x32xf32>
    %41 = arith.addf %40, %39 : vector<1x32xf32>
    %cst_40 = arith.constant 1.000000e+00 : f32
    %42 = vector.broadcast %cst_40 : f32 to vector<1x32xf32>
    %43 = arith.divf %42, %41 : vector<1x32xf32>
    %cst_41 = arith.constant 1.000000e+00 : f32
    %44 = vector.broadcast %cst_41 : f32 to vector<1x32xf32>
    %45 = arith.addf %44, %43 : vector<1x32xf32>
    %46 = vector.shape_cast %0 : vector<1x16x32xf32> to vector<16x32xf32>
    %47 = vector.shape_cast %45 : vector<1x32xf32> to vector<1x1x32xf32>
    %48 = arith.mulf %47, %47 : vector<1x1x32xf32>
    %c0_42 = arith.constant 0 : index
    %c0_43 = arith.constant 0 : index
    %49 = vector.load %arg13[%c0_42, %c0_43] : memref<32x32xf32, #tpu.memory_space<vmem>>, vector<32x32xf32>
    %cst_44 = arith.constant dense<0.000000e+00> : vector<16x32xf32>
    %50 = tpu.matmul %46, %49, %cst_44 {dimension_numbers = #tpu.dot_dimension_numbers<[1], [0], [0], [1], [0, 0, 1, 1], [], []>} : vector<16x32xf32>, vector<32x32xf32>, vector<16x32xf32> -> vector<16x32xf32>
    %c0_45 = arith.constant 0 : index
    %c0_46 = arith.constant 0 : index
    %51 = vector.load %arg14[%c0_45, %c0_46] : memref<1x32xf32, #tpu.memory_space<vmem>>, vector<1x32xf32>
    %52 = vector.broadcast %51 : vector<1x32xf32> to vector<16x32xf32>
    %53 = arith.addf %50, %52 : vector<16x32xf32>
    %54 = vector.shape_cast %53 : vector<16x32xf32> to vector<1x16x32xf32>
    %55 = vector.broadcast %2 : vector<1x16x1xf32> to vector<1x16x32xf32>
    %56 = arith.mulf %54, %55 : vector<1x16x32xf32>
    %c0_47 = arith.constant 0 : index
    %c0_48 = arith.constant 0 : index
    %57 = vector.load %arg17[%c0_47, %c0_48] : memref<32x32xf32, #tpu.memory_space<vmem>>, vector<32x32xf32>
    %cst_49 = arith.constant dense<0.000000e+00> : vector<16x32xf32>
    %58 = tpu.matmul %46, %57, %cst_49 {dimension_numbers = #tpu.dot_dimension_numbers<[1], [0], [0], [1], [0, 0, 1, 1], [], []>} : vector<16x32xf32>, vector<32x32xf32>, vector<16x32xf32> -> vector<16x32xf32>
    %c0_50 = arith.constant 0 : index
    %c0_51 = arith.constant 0 : index
    %59 = vector.load %arg18[%c0_50, %c0_51] : memref<1x32xf32, #tpu.memory_space<vmem>>, vector<1x32xf32>
    %60 = vector.broadcast %59 : vector<1x32xf32> to vector<16x32xf32>
    %61 = arith.addf %58, %60 : vector<16x32xf32>
    %62 = vector.shape_cast %61 : vector<16x32xf32> to vector<1x16x32xf32>
    %63 = vector.broadcast %2 : vector<1x16x1xf32> to vector<1x16x32xf32>
    %64 = arith.mulf %62, %63 : vector<1x16x32xf32>
    %c0_52 = arith.constant 0 : index
    %c0_53 = arith.constant 0 : index
    %65 = vector.load %arg15[%c0_52, %c0_53] : memref<32x32xf32, #tpu.memory_space<vmem>>, vector<32x32xf32>
    %cst_54 = arith.constant dense<0.000000e+00> : vector<16x32xf32>
    %66 = tpu.matmul %46, %65, %cst_54 {dimension_numbers = #tpu.dot_dimension_numbers<[1], [0], [0], [1], [0, 0, 1, 1], [], []>} : vector<16x32xf32>, vector<32x32xf32>, vector<16x32xf32> -> vector<16x32xf32>
    %c0_55 = arith.constant 0 : index
    %c0_56 = arith.constant 0 : index
    %67 = vector.load %arg16[%c0_55, %c0_56] : memref<1x32xf32, #tpu.memory_space<vmem>>, vector<1x32xf32>
    %68 = vector.broadcast %67 : vector<1x32xf32> to vector<16x32xf32>
    %69 = arith.addf %66, %68 : vector<16x32xf32>
    %70 = vector.shape_cast %69 : vector<16x32xf32> to vector<1x16x32xf32>
    %71 = vector.broadcast %2 : vector<1x16x1xf32> to vector<1x16x32xf32>
    %72 = arith.mulf %70, %71 : vector<1x16x32xf32>
    %73 = vector.broadcast %48 : vector<1x1x32xf32> to vector<1x16x32xf32>
    %74 = arith.mulf %72, %73 : vector<1x16x32xf32>
    %75 = vector.extract_strided_slice %74 {offsets = [0, 0, 0], sizes = [1, 16, 8], strides = [1, 1, 1]} : vector<1x16x32xf32> to vector<1x16x8xf32>
    %76 = vector.extract_strided_slice %56 {offsets = [0, 0, 0], sizes = [1, 16, 8], strides = [1, 1, 1]} : vector<1x16x32xf32> to vector<1x16x8xf32>
    "tpu.trace_start"() <{level = 10 : i32, message = "bnd,bmd->bnm"}> : () -> ()
    %cst_57 = arith.constant dense<0.000000e+00> : vector<1x16x16xf32>
    %77 = tpu.matmul %75, %76, %cst_57 {dimension_numbers = #tpu.dot_dimension_numbers<[2], [2], [1], [1], [0, 0, 0, 1, 1, 1], [0], [0]>} : vector<1x16x8xf32>, vector<1x16x8xf32>, vector<1x16x16xf32> -> vector<1x16x16xf32>
    "tpu.trace_stop"() : () -> ()
    %cst_58 = arith.constant 0.353553385 : f32
    %78 = vector.broadcast %cst_58 : f32 to vector<1x16x16xf32>
    %79 = arith.mulf %77, %78 : vector<1x16x16xf32>
    %cst_59 = arith.constant 0.000000e+00 : f32
    %80 = vector.broadcast %cst_59 : f32 to vector<1x1x16xf32>
    %81 = arith.cmpf oeq, %3, %80 : vector<1x1x16xf32>
    %cst_60 = arith.constant -1.000000e+30 : f32
    %82 = vector.shape_cast %81 : vector<1x1x16xi1> to vector<1x1x16xi1>
    %83 = vector.broadcast %82 : vector<1x1x16xi1> to vector<1x16x16xi1>
    %84 = vector.broadcast %cst_60 : f32 to vector<1x16x16xf32>
    %85 = arith.select %83, %84, %79 : vector<1x16x16xi1>, vector<1x16x16xf32>
    %cst_61 = arith.constant dense<0xFF800000> : vector<1x16xf32>
    %86 = vector.multi_reduction <maximumf>, %85, %cst_61 [2] : vector<1x16x16xf32> to vector<1x16xf32>
    %87 = vector.shape_cast %86 : vector<1x16xf32> to vector<1x16x1xf32>
    %88 = vector.broadcast %87 : vector<1x16x1xf32> to vector<1x16x16xf32>
    %89 = arith.subf %85, %88 : vector<1x16x16xf32>
    %90 = math.exp %89 : vector<1x16x16xf32>
    %cst_62 = arith.constant dense<0.000000e+00> : vector<1x16xf32>
    %91 = vector.multi_reduction <add>, %90, %cst_62 [2] : vector<1x16x16xf32> to vector<1x16xf32>
    %92 = vector.shape_cast %91 : vector<1x16xf32> to vector<1x16x1xf32>
    %93 = tpu.reciprocal %92 {approx = true} : vector<1x16x1xf32> -> vector<1x16x1xf32>
    %94 = vector.broadcast %93 : vector<1x16x1xf32> to vector<1x16x16xf32>
    %95 = arith.mulf %90, %94 : vector<1x16x16xf32>
    %96 = vector.extract_strided_slice %64 {offsets = [0, 0, 0], sizes = [1, 16, 8], strides = [1, 1, 1]} : vector<1x16x32xf32> to vector<1x16x8xf32>
    "tpu.trace_start"() <{level = 10 : i32, message = "bnm,bmd->bnd"}> : () -> ()
    %cst_63 = arith.constant dense<0.000000e+00> : vector<1x16x8xf32>
    %97 = tpu.matmul %95, %96, %cst_63 {dimension_numbers = #tpu.dot_dimension_numbers<[2], [1], [1], [2], [0, 0, 0, 1, 1, 2], [0], [0]>} : vector<1x16x16xf32>, vector<1x16x8xf32>, vector<1x16x8xf32> -> vector<1x16x8xf32>
    "tpu.trace_stop"() : () -> ()
    %c0_64 = arith.constant 0 : index
    %c0_65 = arith.constant 0 : index
    %c0_66 = arith.constant 0 : index
    %98 = vector.load %arg31[%c0_64, %c0_65, %c0_66] : memref<1x16x32xf32, #tpu.memory_space<vmem>>, vector<1x16x8xf32>
    tpu.vector_store %arg31[%c0_64, %c0_65, %c0_66], %97 {strides = array<i32>} : memref<1x16x32xf32, #tpu.memory_space<vmem>>, vector<1x16x8xf32>,
    %99 = vector.extract_strided_slice %74 {offsets = [0, 0, 8], sizes = [1, 16, 8], strides = [1, 1, 1]} : vector<1x16x32xf32> to vector<1x16x8xf32>
    %100 = vector.extract_strided_slice %56 {offsets = [0, 0, 8], sizes = [1, 16, 8], strides = [1, 1, 1]} : vector<1x16x32xf32> to vector<1x16x8xf32>
    "tpu.trace_start"() <{level = 10 : i32, message = "bnd,bmd->bnm"}> : () -> ()
    %cst_67 = arith.constant dense<0.000000e+00> : vector<1x16x16xf32>
    %101 = tpu.matmul %99, %100, %cst_67 {dimension_numbers = #tpu.dot_dimension_numbers<[2], [2], [1], [1], [0, 0, 0, 1, 1, 1], [0], [0]>} : vector<1x16x8xf32>, vector<1x16x8xf32>, vector<1x16x16xf32> -> vector<1x16x16xf32>
    "tpu.trace_stop"() : () -> ()
    %cst_68 = arith.constant 0.353553385 : f32
    %102 = vector.broadcast %cst_68 : f32 to vector<1x16x16xf32>
    %103 = arith.mulf %101, %102 : vector<1x16x16xf32>
    %cst_69 = arith.constant 0.000000e+00 : f32
    %104 = vector.broadcast %cst_69 : f32 to vector<1x1x16xf32>
    %105 = arith.cmpf oeq, %3, %104 : vector<1x1x16xf32>
    %cst_70 = arith.constant -1.000000e+30 : f32
    %106 = vector.shape_cast %105 : vector<1x1x16xi1> to vector<1x1x16xi1>
    %107 = vector.broadcast %106 : vector<1x1x16xi1> to vector<1x16x16xi1>
    %108 = vector.broadcast %cst_70 : f32 to vector<1x16x16xf32>
    %109 = arith.select %107, %108, %103 : vector<1x16x16xi1>, vector<1x16x16xf32>
    %cst_71 = arith.constant dense<0xFF800000> : vector<1x16xf32>
    %110 = vector.multi_reduction <maximumf>, %109, %cst_71 [2] : vector<1x16x16xf32> to vector<1x16xf32>
    %111 = vector.shape_cast %110 : vector<1x16xf32> to vector<1x16x1xf32>
    %112 = vector.broadcast %111 : vector<1x16x1xf32> to vector<1x16x16xf32>
    %113 = arith.subf %109, %112 : vector<1x16x16xf32>
    %114 = math.exp %113 : vector<1x16x16xf32>
    %cst_72 = arith.constant dense<0.000000e+00> : vector<1x16xf32>
    %115 = vector.multi_reduction <add>, %114, %cst_72 [2] : vector<1x16x16xf32> to vector<1x16xf32>
    %116 = vector.shape_cast %115 : vector<1x16xf32> to vector<1x16x1xf32>
    %117 = tpu.reciprocal %116 {approx = true} : vector<1x16x1xf32> -> vector<1x16x1xf32>
    %118 = vector.broadcast %117 : vector<1x16x1xf32> to vector<1x16x16xf32>
    %119 = arith.mulf %114, %118 : vector<1x16x16xf32>
    %120 = vector.extract_strided_slice %64 {offsets = [0, 0, 8], sizes = [1, 16, 8], strides = [1, 1, 1]} : vector<1x16x32xf32> to vector<1x16x8xf32>
    "tpu.trace_start"() <{level = 10 : i32, message = "bnm,bmd->bnd"}> : () -> ()
    %cst_73 = arith.constant dense<0.000000e+00> : vector<1x16x8xf32>
    %121 = tpu.matmul %119, %120, %cst_73 {dimension_numbers = #tpu.dot_dimension_numbers<[2], [1], [1], [2], [0, 0, 0, 1, 1, 2], [0], [0]>} : vector<1x16x16xf32>, vector<1x16x8xf32>, vector<1x16x8xf32> -> vector<1x16x8xf32>
    "tpu.trace_stop"() : () -> ()
    %c0_74 = arith.constant 0 : index
    %c0_75 = arith.constant 0 : index
    %c8 = arith.constant 8 : index
    %122 = vector.load %arg31[%c0_74, %c0_75, %c8] : memref<1x16x32xf32, #tpu.memory_space<vmem>>, vector<1x16x8xf32>
    tpu.vector_store %arg31[%c0_74, %c0_75, %c8], %121 {strides = array<i32>} : memref<1x16x32xf32, #tpu.memory_space<vmem>>, vector<1x16x8xf32>,
    %123 = vector.extract_strided_slice %74 {offsets = [0, 0, 16], sizes = [1, 16, 8], strides = [1, 1, 1]} : vector<1x16x32xf32> to vector<1x16x8xf32>
    %124 = vector.extract_strided_slice %56 {offsets = [0, 0, 16], sizes = [1, 16, 8], strides = [1, 1, 1]} : vector<1x16x32xf32> to vector<1x16x8xf32>
    "tpu.trace_start"() <{level = 10 : i32, message = "bnd,bmd->bnm"}> : () -> ()
    %cst_76 = arith.constant dense<0.000000e+00> : vector<1x16x16xf32>
    %125 = tpu.matmul %123, %124, %cst_76 {dimension_numbers = #tpu.dot_dimension_numbers<[2], [2], [1], [1], [0, 0, 0, 1, 1, 1], [0], [0]>} : vector<1x16x8xf32>, vector<1x16x8xf32>, vector<1x16x16xf32> -> vector<1x16x16xf32>
    "tpu.trace_stop"() : () -> ()
    %cst_77 = arith.constant 0.353553385 : f32
    %126 = vector.broadcast %cst_77 : f32 to vector<1x16x16xf32>
    %127 = arith.mulf %125, %126 : vector<1x16x16xf32>
    %cst_78 = arith.constant 0.000000e+00 : f32
    %128 = vector.broadcast %cst_78 : f32 to vector<1x1x16xf32>
    %129 = arith.cmpf oeq, %3, %128 : vector<1x1x16xf32>
    %cst_79 = arith.constant -1.000000e+30 : f32
    %130 = vector.shape_cast %129 : vector<1x1x16xi1> to vector<1x1x16xi1>
    %131 = vector.broadcast %130 : vector<1x1x16xi1> to vector<1x16x16xi1>
    %132 = vector.broadcast %cst_79 : f32 to vector<1x16x16xf32>
    %133 = arith.select %131, %132, %127 : vector<1x16x16xi1>, vector<1x16x16xf32>
    %cst_80 = arith.constant dense<0xFF800000> : vector<1x16xf32>
    %134 = vector.multi_reduction <maximumf>, %133, %cst_80 [2] : vector<1x16x16xf32> to vector<1x16xf32>
    %135 = vector.shape_cast %134 : vector<1x16xf32> to vector<1x16x1xf32>
    %136 = vector.broadcast %135 : vector<1x16x1xf32> to vector<1x16x16xf32>
    %137 = arith.subf %133, %136 : vector<1x16x16xf32>
    %138 = math.exp %137 : vector<1x16x16xf32>
    %cst_81 = arith.constant dense<0.000000e+00> : vector<1x16xf32>
    %139 = vector.multi_reduction <add>, %138, %cst_81 [2] : vector<1x16x16xf32> to vector<1x16xf32>
    %140 = vector.shape_cast %139 : vector<1x16xf32> to vector<1x16x1xf32>
    %141 = tpu.reciprocal %140 {approx = true} : vector<1x16x1xf32> -> vector<1x16x1xf32>
    %142 = vector.broadcast %141 : vector<1x16x1xf32> to vector<1x16x16xf32>
    %143 = arith.mulf %138, %142 : vector<1x16x16xf32>
    %144 = vector.extract_strided_slice %64 {offsets = [0, 0, 16], sizes = [1, 16, 8], strides = [1, 1, 1]} : vector<1x16x32xf32> to vector<1x16x8xf32>
    "tpu.trace_start"() <{level = 10 : i32, message = "bnm,bmd->bnd"}> : () -> ()
    %cst_82 = arith.constant dense<0.000000e+00> : vector<1x16x8xf32>
    %145 = tpu.matmul %143, %144, %cst_82 {dimension_numbers = #tpu.dot_dimension_numbers<[2], [1], [1], [2], [0, 0, 0, 1, 1, 2], [0], [0]>} : vector<1x16x16xf32>, vector<1x16x8xf32>, vector<1x16x8xf32> -> vector<1x16x8xf32>
    "tpu.trace_stop"() : () -> ()
    %c0_83 = arith.constant 0 : index
    %c0_84 = arith.constant 0 : index
    %c16 = arith.constant 16 : index
    %146 = vector.load %arg31[%c0_83, %c0_84, %c16] : memref<1x16x32xf32, #tpu.memory_space<vmem>>, vector<1x16x8xf32>
    tpu.vector_store %arg31[%c0_83, %c0_84, %c16], %145 {strides = array<i32>} : memref<1x16x32xf32, #tpu.memory_space<vmem>>, vector<1x16x8xf32>,
    %147 = vector.extract_strided_slice %74 {offsets = [0, 0, 24], sizes = [1, 16, 8], strides = [1, 1, 1]} : vector<1x16x32xf32> to vector<1x16x8xf32>
    %148 = vector.extract_strided_slice %56 {offsets = [0, 0, 24], sizes = [1, 16, 8], strides = [1, 1, 1]} : vector<1x16x32xf32> to vector<1x16x8xf32>
    "tpu.trace_start"() <{level = 10 : i32, message = "bnd,bmd->bnm"}> : () -> ()
    %cst_85 = arith.constant dense<0.000000e+00> : vector<1x16x16xf32>
    %149 = tpu.matmul %147, %148, %cst_85 {dimension_numbers = #tpu.dot_dimension_numbers<[2], [2], [1], [1], [0, 0, 0, 1, 1, 1], [0], [0]>} : vector<1x16x8xf32>, vector<1x16x8xf32>, vector<1x16x16xf32> -> vector<1x16x16xf32>
    "tpu.trace_stop"() : () -> ()
    %cst_86 = arith.constant 0.353553385 : f32
    %150 = vector.broadcast %cst_86 : f32 to vector<1x16x16xf32>
    %151 = arith.mulf %149, %150 : vector<1x16x16xf32>
    %cst_87 = arith.constant 0.000000e+00 : f32
    %152 = vector.broadcast %cst_87 : f32 to vector<1x1x16xf32>
    %153 = arith.cmpf oeq, %3, %152 : vector<1x1x16xf32>
    %cst_88 = arith.constant -1.000000e+30 : f32
    %154 = vector.shape_cast %153 : vector<1x1x16xi1> to vector<1x1x16xi1>
    %155 = vector.broadcast %154 : vector<1x1x16xi1> to vector<1x16x16xi1>
    %156 = vector.broadcast %cst_88 : f32 to vector<1x16x16xf32>
    %157 = arith.select %155, %156, %151 : vector<1x16x16xi1>, vector<1x16x16xf32>
    %cst_89 = arith.constant dense<0xFF800000> : vector<1x16xf32>
    %158 = vector.multi_reduction <maximumf>, %157, %cst_89 [2] : vector<1x16x16xf32> to vector<1x16xf32>
    %159 = vector.shape_cast %158 : vector<1x16xf32> to vector<1x16x1xf32>
    %160 = vector.broadcast %159 : vector<1x16x1xf32> to vector<1x16x16xf32>
    %161 = arith.subf %157, %160 : vector<1x16x16xf32>
    %162 = math.exp %161 : vector<1x16x16xf32>
    %cst_90 = arith.constant dense<0.000000e+00> : vector<1x16xf32>
    %163 = vector.multi_reduction <add>, %162, %cst_90 [2] : vector<1x16x16xf32> to vector<1x16xf32>
    %164 = vector.shape_cast %163 : vector<1x16xf32> to vector<1x16x1xf32>
    %165 = tpu.reciprocal %164 {approx = true} : vector<1x16x1xf32> -> vector<1x16x1xf32>
    %166 = vector.broadcast %165 : vector<1x16x1xf32> to vector<1x16x16xf32>
    %167 = arith.mulf %162, %166 : vector<1x16x16xf32>
    %168 = vector.extract_strided_slice %64 {offsets = [0, 0, 24], sizes = [1, 16, 8], strides = [1, 1, 1]} : vector<1x16x32xf32> to vector<1x16x8xf32>
    "tpu.trace_start"() <{level = 10 : i32, message = "bnm,bmd->bnd"}> : () -> ()
    %cst_91 = arith.constant dense<0.000000e+00> : vector<1x16x8xf32>
    %169 = tpu.matmul %167, %168, %cst_91 {dimension_numbers = #tpu.dot_dimension_numbers<[2], [1], [1], [2], [0, 0, 0, 1, 1, 2], [0], [0]>} : vector<1x16x16xf32>, vector<1x16x8xf32>, vector<1x16x8xf32> -> vector<1x16x8xf32>
    "tpu.trace_stop"() : () -> ()
    %c0_92 = arith.constant 0 : index
    %c0_93 = arith.constant 0 : index
    %c24 = arith.constant 24 : index
    %170 = vector.load %arg31[%c0_92, %c0_93, %c24] : memref<1x16x32xf32, #tpu.memory_space<vmem>>, vector<1x16x8xf32>
    tpu.vector_store %arg31[%c0_92, %c0_93, %c24], %169 {strides = array<i32>} : memref<1x16x32xf32, #tpu.memory_space<vmem>>, vector<1x16x8xf32>,
    %c0_94 = arith.constant 0 : index
    %c0_95 = arith.constant 0 : index
    %c0_96 = arith.constant 0 : index
    %171 = vector.load %arg31[%c0_94, %c0_95, %c0_96] : memref<1x16x32xf32, #tpu.memory_space<vmem>>, vector<1x16x32xf32>
    %172 = vector.broadcast %47 : vector<1x1x32xf32> to vector<1x16x32xf32>
    %173 = arith.mulf %171, %172 : vector<1x16x32xf32>
    %174 = arith.addf %0, %173 : vector<1x16x32xf32>
    %175 = vector.shape_cast %174 : vector<1x16x32xf32> to vector<16x32xf32>
    %c0_97 = arith.constant 0 : index
    %c0_98 = arith.constant 0 : index
    %176 = vector.load %arg25[%c0_97, %c0_98] : memref<32x128xf32, #tpu.memory_space<vmem>>, vector<32x128xf32>
    %cst_99 = arith.constant dense<0.000000e+00> : vector<16x128xf32>
    %177 = tpu.matmul %175, %176, %cst_99 {dimension_numbers = #tpu.dot_dimension_numbers<[1], [0], [0], [1], [0, 0, 1, 1], [], []>} : vector<16x32xf32>, vector<32x128xf32>, vector<16x128xf32> -> vector<16x128xf32>
    %c0_100 = arith.constant 0 : index
    %c0_101 = arith.constant 0 : index
    %178 = vector.load %arg26[%c0_100, %c0_101] : memref<1x128xf32, #tpu.memory_space<vmem>>, vector<1x128xf32>
    %179 = vector.broadcast %178 : vector<1x128xf32> to vector<16x128xf32>
    %180 = arith.addf %177, %179 : vector<16x128xf32>
    %181 = vector.shape_cast %180 : vector<16x128xf32> to vector<1x16x128xf32>
    %c0_102 = arith.constant 0 : index
    %c0_103 = arith.constant 0 : index
    %c0_104 = arith.constant 0 : index
    %182 = vector.load %arg29[%c0_102, %c0_103, %c0_104] : memref<1x16x128xf32, #tpu.memory_space<vmem>>, vector<1x16x128xf32>
    tpu.vector_store %arg29[%c0_102, %c0_103, %c0_104], %181 {strides = array<i32>} : memref<1x16x128xf32, #tpu.memory_space<vmem>>, vector<1x16x128xf32>,
    %183 = vector.shape_cast %1 : vector<1x8x32xf32> to vector<8x32xf32>
    %184 = vector.shape_cast %25 : vector<1x32xf32> to vector<1x1x32xf32>
    %185 = arith.mulf %184, %184 : vector<1x1x32xf32>
    %c0_105 = arith.constant 0 : index
    %c0_106 = arith.constant 0 : index
    %186 = vector.load %arg19[%c0_105, %c0_106] : memref<32x32xf32, #tpu.memory_space<vmem>>, vector<32x32xf32>
    %cst_107 = arith.constant dense<0.000000e+00> : vector<8x32xf32>
    %187 = tpu.matmul %183, %186, %cst_107 {dimension_numbers = #tpu.dot_dimension_numbers<[1], [0], [0], [1], [0, 0, 1, 1], [], []>} : vector<8x32xf32>, vector<32x32xf32>, vector<8x32xf32> -> vector<8x32xf32>
    %c0_108 = arith.constant 0 : index
    %c0_109 = arith.constant 0 : index
    %188 = vector.load %arg20[%c0_108, %c0_109] : memref<1x32xf32, #tpu.memory_space<vmem>>, vector<1x32xf32>
    %189 = vector.broadcast %188 : vector<1x32xf32> to vector<8x32xf32>
    %190 = arith.addf %187, %189 : vector<8x32xf32>
    %191 = vector.shape_cast %190 : vector<8x32xf32> to vector<1x8x32xf32>
    %192 = vector.broadcast %4 : vector<1x8x1xf32> to vector<1x8x32xf32>
    %193 = arith.mulf %191, %192 : vector<1x8x32xf32>
    %c0_110 = arith.constant 0 : index
    %c0_111 = arith.constant 0 : index
    %194 = vector.load %arg23[%c0_110, %c0_111] : memref<32x32xf32, #tpu.memory_space<vmem>>, vector<32x32xf32>
    %cst_112 = arith.constant dense<0.000000e+00> : vector<8x32xf32>
    %195 = tpu.matmul %183, %194, %cst_112 {dimension_numbers = #tpu.dot_dimension_numbers<[1], [0], [0], [1], [0, 0, 1, 1], [], []>} : vector<8x32xf32>, vector<32x32xf32>, vector<8x32xf32> -> vector<8x32xf32>
    %c0_113 = arith.constant 0 : index
    %c0_114 = arith.constant 0 : index
    %196 = vector.load %arg24[%c0_113, %c0_114] : memref<1x32xf32, #tpu.memory_space<vmem>>, vector<1x32xf32>
    %197 = vector.broadcast %196 : vector<1x32xf32> to vector<8x32xf32>
    %198 = arith.addf %195, %197 : vector<8x32xf32>
    %199 = vector.shape_cast %198 : vector<8x32xf32> to vector<1x8x32xf32>
    %200 = vector.broadcast %4 : vector<1x8x1xf32> to vector<1x8x32xf32>
    %201 = arith.mulf %199, %200 : vector<1x8x32xf32>
    %c0_115 = arith.constant 0 : index
    %c0_116 = arith.constant 0 : index
    %202 = vector.load %arg21[%c0_115, %c0_116] : memref<32x32xf32, #tpu.memory_space<vmem>>, vector<32x32xf32>
    %cst_117 = arith.constant dense<0.000000e+00> : vector<8x32xf32>
    %203 = tpu.matmul %183, %202, %cst_117 {dimension_numbers = #tpu.dot_dimension_numbers<[1], [0], [0], [1], [0, 0, 1, 1], [], []>} : vector<8x32xf32>, vector<32x32xf32>, vector<8x32xf32> -> vector<8x32xf32>
    %c0_118 = arith.constant 0 : index
    %c0_119 = arith.constant 0 : index
    %204 = vector.load %arg22[%c0_118, %c0_119] : memref<1x32xf32, #tpu.memory_space<vmem>>, vector<1x32xf32>
    %205 = vector.broadcast %204 : vector<1x32xf32> to vector<8x32xf32>
    %206 = arith.addf %203, %205 : vector<8x32xf32>
    %207 = vector.shape_cast %206 : vector<8x32xf32> to vector<1x8x32xf32>
    %208 = vector.broadcast %4 : vector<1x8x1xf32> to vector<1x8x32xf32>
    %209 = arith.mulf %207, %208 : vector<1x8x32xf32>
    %210 = vector.broadcast %185 : vector<1x1x32xf32> to vector<1x8x32xf32>
    %211 = arith.mulf %209, %210 : vector<1x8x32xf32>
    %212 = vector.extract_strided_slice %211 {offsets = [0, 0, 0], sizes = [1, 8, 8], strides = [1, 1, 1]} : vector<1x8x32xf32> to vector<1x8x8xf32>
    %213 = vector.extract_strided_slice %193 {offsets = [0, 0, 0], sizes = [1, 8, 8], strides = [1, 1, 1]} : vector<1x8x32xf32> to vector<1x8x8xf32>
    "tpu.trace_start"() <{level = 10 : i32, message = "bnd,bmd->bnm"}> : () -> ()
    %cst_120 = arith.constant dense<0.000000e+00> : vector<1x8x8xf32>
    %214 = tpu.matmul %212, %213, %cst_120 {dimension_numbers = #tpu.dot_dimension_numbers<[2], [2], [1], [1], [0, 0, 0, 1, 1, 1], [0], [0]>} : vector<1x8x8xf32>, vector<1x8x8xf32>, vector<1x8x8xf32> -> vector<1x8x8xf32>
    "tpu.trace_stop"() : () -> ()
    %cst_121 = arith.constant 0.353553385 : f32
    %215 = vector.broadcast %cst_121 : f32 to vector<1x8x8xf32>
    %216 = arith.mulf %214, %215 : vector<1x8x8xf32>
    %cst_122 = arith.constant 0.000000e+00 : f32
    %217 = vector.broadcast %cst_122 : f32 to vector<1x1x8xf32>
    %218 = arith.cmpf oeq, %5, %217 : vector<1x1x8xf32>
    %cst_123 = arith.constant -1.000000e+30 : f32
    %219 = vector.shape_cast %218 : vector<1x1x8xi1> to vector<1x1x8xi1>
    %220 = vector.broadcast %219 : vector<1x1x8xi1> to vector<1x8x8xi1>
    %221 = vector.broadcast %cst_123 : f32 to vector<1x8x8xf32>
    %222 = arith.select %220, %221, %216 : vector<1x8x8xi1>, vector<1x8x8xf32>
    %cst_124 = arith.constant dense<0xFF800000> : vector<1x8xf32>
    %223 = vector.multi_reduction <maximumf>, %222, %cst_124 [2] : vector<1x8x8xf32> to vector<1x8xf32>
    %224 = vector.shape_cast %223 : vector<1x8xf32> to vector<1x8x1xf32>
    %225 = vector.broadcast %224 : vector<1x8x1xf32> to vector<1x8x8xf32>
    %226 = arith.subf %222, %225 : vector<1x8x8xf32>
    %227 = math.exp %226 : vector<1x8x8xf32>
    %cst_125 = arith.constant dense<0.000000e+00> : vector<1x8xf32>
    %228 = vector.multi_reduction <add>, %227, %cst_125 [2] : vector<1x8x8xf32> to vector<1x8xf32>
    %229 = vector.shape_cast %228 : vector<1x8xf32> to vector<1x8x1xf32>
    %230 = tpu.reciprocal %229 {approx = true} : vector<1x8x1xf32> -> vector<1x8x1xf32>
    %231 = vector.broadcast %230 : vector<1x8x1xf32> to vector<1x8x8xf32>
    %232 = arith.mulf %227, %231 : vector<1x8x8xf32>
    %233 = vector.extract_strided_slice %201 {offsets = [0, 0, 0], sizes = [1, 8, 8], strides = [1, 1, 1]} : vector<1x8x32xf32> to vector<1x8x8xf32>
    "tpu.trace_start"() <{level = 10 : i32, message = "bnm,bmd->bnd"}> : () -> ()
    %cst_126 = arith.constant dense<0.000000e+00> : vector<1x8x8xf32>
    %234 = tpu.matmul %232, %233, %cst_126 {dimension_numbers = #tpu.dot_dimension_numbers<[2], [1], [1], [2], [0, 0, 0, 1, 1, 2], [0], [0]>} : vector<1x8x8xf32>, vector<1x8x8xf32>, vector<1x8x8xf32> -> vector<1x8x8xf32>
    "tpu.trace_stop"() : () -> ()
    %c0_127 = arith.constant 0 : index
    %c0_128 = arith.constant 0 : index
    %c0_129 = arith.constant 0 : index
    %235 = vector.load %arg32[%c0_127, %c0_128, %c0_129] : memref<1x8x32xf32, #tpu.memory_space<vmem>>, vector<1x8x8xf32>
    tpu.vector_store %arg32[%c0_127, %c0_128, %c0_129], %234 {strides = array<i32>} : memref<1x8x32xf32, #tpu.memory_space<vmem>>, vector<1x8x8xf32>,
    %236 = vector.extract_strided_slice %211 {offsets = [0, 0, 8], sizes = [1, 8, 8], strides = [1, 1, 1]} : vector<1x8x32xf32> to vector<1x8x8xf32>
    %237 = vector.extract_strided_slice %193 {offsets = [0, 0, 8], sizes = [1, 8, 8], strides = [1, 1, 1]} : vector<1x8x32xf32> to vector<1x8x8xf32>
    "tpu.trace_start"() <{level = 10 : i32, message = "bnd,bmd->bnm"}> : () -> ()
    %cst_130 = arith.constant dense<0.000000e+00> : vector<1x8x8xf32>
    %238 = tpu.matmul %236, %237, %cst_130 {dimension_numbers = #tpu.dot_dimension_numbers<[2], [2], [1], [1], [0, 0, 0, 1, 1, 1], [0], [0]>} : vector<1x8x8xf32>, vector<1x8x8xf32>, vector<1x8x8xf32> -> vector<1x8x8xf32>
    "tpu.trace_stop"() : () -> ()
    %cst_131 = arith.constant 0.353553385 : f32
    %239 = vector.broadcast %cst_131 : f32 to vector<1x8x8xf32>
    %240 = arith.mulf %238, %239 : vector<1x8x8xf32>
    %cst_132 = arith.constant 0.000000e+00 : f32
    %241 = vector.broadcast %cst_132 : f32 to vector<1x1x8xf32>
    %242 = arith.cmpf oeq, %5, %241 : vector<1x1x8xf32>
    %cst_133 = arith.constant -1.000000e+30 : f32
    %243 = vector.shape_cast %242 : vector<1x1x8xi1> to vector<1x1x8xi1>
    %244 = vector.broadcast %243 : vector<1x1x8xi1> to vector<1x8x8xi1>
    %245 = vector.broadcast %cst_133 : f32 to vector<1x8x8xf32>
    %246 = arith.select %244, %245, %240 : vector<1x8x8xi1>, vector<1x8x8xf32>
    %cst_134 = arith.constant dense<0xFF800000> : vector<1x8xf32>
    %247 = vector.multi_reduction <maximumf>, %246, %cst_134 [2] : vector<1x8x8xf32> to vector<1x8xf32>
    %248 = vector.shape_cast %247 : vector<1x8xf32> to vector<1x8x1xf32>
    %249 = vector.broadcast %248 : vector<1x8x1xf32> to vector<1x8x8xf32>
    %250 = arith.subf %246, %249 : vector<1x8x8xf32>
    %251 = math.exp %250 : vector<1x8x8xf32>
    %cst_135 = arith.constant dense<0.000000e+00> : vector<1x8xf32>
    %252 = vector.multi_reduction <add>, %251, %cst_135 [2] : vector<1x8x8xf32> to vector<1x8xf32>
    %253 = vector.shape_cast %252 : vector<1x8xf32> to vector<1x8x1xf32>
    %254 = tpu.reciprocal %253 {approx = true} : vector<1x8x1xf32> -> vector<1x8x1xf32>
    %255 = vector.broadcast %254 : vector<1x8x1xf32> to vector<1x8x8xf32>
    %256 = arith.mulf %251, %255 : vector<1x8x8xf32>
    %257 = vector.extract_strided_slice %201 {offsets = [0, 0, 8], sizes = [1, 8, 8], strides = [1, 1, 1]} : vector<1x8x32xf32> to vector<1x8x8xf32>
    "tpu.trace_start"() <{level = 10 : i32, message = "bnm,bmd->bnd"}> : () -> ()
    %cst_136 = arith.constant dense<0.000000e+00> : vector<1x8x8xf32>
    %258 = tpu.matmul %256, %257, %cst_136 {dimension_numbers = #tpu.dot_dimension_numbers<[2], [1], [1], [2], [0, 0, 0, 1, 1, 2], [0], [0]>} : vector<1x8x8xf32>, vector<1x8x8xf32>, vector<1x8x8xf32> -> vector<1x8x8xf32>
    "tpu.trace_stop"() : () -> ()
    %c0_137 = arith.constant 0 : index
    %c0_138 = arith.constant 0 : index
    %c8_139 = arith.constant 8 : index
    %259 = vector.load %arg32[%c0_137, %c0_138, %c8_139] : memref<1x8x32xf32, #tpu.memory_space<vmem>>, vector<1x8x8xf32>
    tpu.vector_store %arg32[%c0_137, %c0_138, %c8_139], %258 {strides = array<i32>} : memref<1x8x32xf32, #tpu.memory_space<vmem>>, vector<1x8x8xf32>,
    %260 = vector.extract_strided_slice %211 {offsets = [0, 0, 16], sizes = [1, 8, 8], strides = [1, 1, 1]} : vector<1x8x32xf32> to vector<1x8x8xf32>
    %261 = vector.extract_strided_slice %193 {offsets = [0, 0, 16], sizes = [1, 8, 8], strides = [1, 1, 1]} : vector<1x8x32xf32> to vector<1x8x8xf32>
    "tpu.trace_start"() <{level = 10 : i32, message = "bnd,bmd->bnm"}> : () -> ()
    %cst_140 = arith.constant dense<0.000000e+00> : vector<1x8x8xf32>
    %262 = tpu.matmul %260, %261, %cst_140 {dimension_numbers = #tpu.dot_dimension_numbers<[2], [2], [1], [1], [0, 0, 0, 1, 1, 1], [0], [0]>} : vector<1x8x8xf32>, vector<1x8x8xf32>, vector<1x8x8xf32> -> vector<1x8x8xf32>
    "tpu.trace_stop"() : () -> ()
    %cst_141 = arith.constant 0.353553385 : f32
    %263 = vector.broadcast %cst_141 : f32 to vector<1x8x8xf32>
    %264 = arith.mulf %262, %263 : vector<1x8x8xf32>
    %cst_142 = arith.constant 0.000000e+00 : f32
    %265 = vector.broadcast %cst_142 : f32 to vector<1x1x8xf32>
    %266 = arith.cmpf oeq, %5, %265 : vector<1x1x8xf32>
    %cst_143 = arith.constant -1.000000e+30 : f32
    %267 = vector.shape_cast %266 : vector<1x1x8xi1> to vector<1x1x8xi1>
    %268 = vector.broadcast %267 : vector<1x1x8xi1> to vector<1x8x8xi1>
    %269 = vector.broadcast %cst_143 : f32 to vector<1x8x8xf32>
    %270 = arith.select %268, %269, %264 : vector<1x8x8xi1>, vector<1x8x8xf32>
    %cst_144 = arith.constant dense<0xFF800000> : vector<1x8xf32>
    %271 = vector.multi_reduction <maximumf>, %270, %cst_144 [2] : vector<1x8x8xf32> to vector<1x8xf32>
    %272 = vector.shape_cast %271 : vector<1x8xf32> to vector<1x8x1xf32>
    %273 = vector.broadcast %272 : vector<1x8x1xf32> to vector<1x8x8xf32>
    %274 = arith.subf %270, %273 : vector<1x8x8xf32>
    %275 = math.exp %274 : vector<1x8x8xf32>
    %cst_145 = arith.constant dense<0.000000e+00> : vector<1x8xf32>
    %276 = vector.multi_reduction <add>, %275, %cst_145 [2] : vector<1x8x8xf32> to vector<1x8xf32>
    %277 = vector.shape_cast %276 : vector<1x8xf32> to vector<1x8x1xf32>
    %278 = tpu.reciprocal %277 {approx = true} : vector<1x8x1xf32> -> vector<1x8x1xf32>
    %279 = vector.broadcast %278 : vector<1x8x1xf32> to vector<1x8x8xf32>
    %280 = arith.mulf %275, %279 : vector<1x8x8xf32>
    %281 = vector.extract_strided_slice %201 {offsets = [0, 0, 16], sizes = [1, 8, 8], strides = [1, 1, 1]} : vector<1x8x32xf32> to vector<1x8x8xf32>
    "tpu.trace_start"() <{level = 10 : i32, message = "bnm,bmd->bnd"}> : () -> ()
    %cst_146 = arith.constant dense<0.000000e+00> : vector<1x8x8xf32>
    %282 = tpu.matmul %280, %281, %cst_146 {dimension_numbers = #tpu.dot_dimension_numbers<[2], [1], [1], [2], [0, 0, 0, 1, 1, 2], [0], [0]>} : vector<1x8x8xf32>, vector<1x8x8xf32>, vector<1x8x8xf32> -> vector<1x8x8xf32>
    "tpu.trace_stop"() : () -> ()
    %c0_147 = arith.constant 0 : index
    %c0_148 = arith.constant 0 : index
    %c16_149 = arith.constant 16 : index
    %283 = vector.load %arg32[%c0_147, %c0_148, %c16_149] : memref<1x8x32xf32, #tpu.memory_space<vmem>>, vector<1x8x8xf32>
    tpu.vector_store %arg32[%c0_147, %c0_148, %c16_149], %282 {strides = array<i32>} : memref<1x8x32xf32, #tpu.memory_space<vmem>>, vector<1x8x8xf32>,
    %284 = vector.extract_strided_slice %211 {offsets = [0, 0, 24], sizes = [1, 8, 8], strides = [1, 1, 1]} : vector<1x8x32xf32> to vector<1x8x8xf32>
    %285 = vector.extract_strided_slice %193 {offsets = [0, 0, 24], sizes = [1, 8, 8], strides = [1, 1, 1]} : vector<1x8x32xf32> to vector<1x8x8xf32>
    "tpu.trace_start"() <{level = 10 : i32, message = "bnd,bmd->bnm"}> : () -> ()
    %cst_150 = arith.constant dense<0.000000e+00> : vector<1x8x8xf32>
    %286 = tpu.matmul %284, %285, %cst_150 {dimension_numbers = #tpu.dot_dimension_numbers<[2], [2], [1], [1], [0, 0, 0, 1, 1, 1], [0], [0]>} : vector<1x8x8xf32>, vector<1x8x8xf32>, vector<1x8x8xf32> -> vector<1x8x8xf32>
    "tpu.trace_stop"() : () -> ()
    %cst_151 = arith.constant 0.353553385 : f32
    %287 = vector.broadcast %cst_151 : f32 to vector<1x8x8xf32>
    %288 = arith.mulf %286, %287 : vector<1x8x8xf32>
    %cst_152 = arith.constant 0.000000e+00 : f32
    %289 = vector.broadcast %cst_152 : f32 to vector<1x1x8xf32>
    %290 = arith.cmpf oeq, %5, %289 : vector<1x1x8xf32>
    %cst_153 = arith.constant -1.000000e+30 : f32
    %291 = vector.shape_cast %290 : vector<1x1x8xi1> to vector<1x1x8xi1>
    %292 = vector.broadcast %291 : vector<1x1x8xi1> to vector<1x8x8xi1>
    %293 = vector.broadcast %cst_153 : f32 to vector<1x8x8xf32>
    %294 = arith.select %292, %293, %288 : vector<1x8x8xi1>, vector<1x8x8xf32>
    %cst_154 = arith.constant dense<0xFF800000> : vector<1x8xf32>
    %295 = vector.multi_reduction <maximumf>, %294, %cst_154 [2] : vector<1x8x8xf32> to vector<1x8xf32>
    %296 = vector.shape_cast %295 : vector<1x8xf32> to vector<1x8x1xf32>
    %297 = vector.broadcast %296 : vector<1x8x1xf32> to vector<1x8x8xf32>
    %298 = arith.subf %294, %297 : vector<1x8x8xf32>
    %299 = math.exp %298 : vector<1x8x8xf32>
    %cst_155 = arith.constant dense<0.000000e+00> : vector<1x8xf32>
    %300 = vector.multi_reduction <add>, %299, %cst_155 [2] : vector<1x8x8xf32> to vector<1x8xf32>
    %301 = vector.shape_cast %300 : vector<1x8xf32> to vector<1x8x1xf32>
    %302 = tpu.reciprocal %301 {approx = true} : vector<1x8x1xf32> -> vector<1x8x1xf32>
    %303 = vector.broadcast %302 : vector<1x8x1xf32> to vector<1x8x8xf32>
    %304 = arith.mulf %299, %303 : vector<1x8x8xf32>
    %305 = vector.extract_strided_slice %201 {offsets = [0, 0, 24], sizes = [1, 8, 8], strides = [1, 1, 1]} : vector<1x8x32xf32> to vector<1x8x8xf32>
    "tpu.trace_start"() <{level = 10 : i32, message = "bnm,bmd->bnd"}> : () -> ()
    %cst_156 = arith.constant dense<0.000000e+00> : vector<1x8x8xf32>
    %306 = tpu.matmul %304, %305, %cst_156 {dimension_numbers = #tpu.dot_dimension_numbers<[2], [1], [1], [2], [0, 0, 0, 1, 1, 2], [0], [0]>} : vector<1x8x8xf32>, vector<1x8x8xf32>, vector<1x8x8xf32> -> vector<1x8x8xf32>
    "tpu.trace_stop"() : () -> ()
    %c0_157 = arith.constant 0 : index
    %c0_158 = arith.constant 0 : index
    %c24_159 = arith.constant 24 : index
    %307 = vector.load %arg32[%c0_157, %c0_158, %c24_159] : memref<1x8x32xf32, #tpu.memory_space<vmem>>, vector<1x8x8xf32>
    tpu.vector_store %arg32[%c0_157, %c0_158, %c24_159], %306 {strides = array<i32>} : memref<1x8x32xf32, #tpu.memory_space<vmem>>, vector<1x8x8xf32>,
    %c0_160 = arith.constant 0 : index
    %c0_161 = arith.constant 0 : index
    %c0_162 = arith.constant 0 : index
    %308 = vector.load %arg32[%c0_160, %c0_161, %c0_162] : memref<1x8x32xf32, #tpu.memory_space<vmem>>, vector<1x8x32xf32>
    %309 = vector.broadcast %184 : vector<1x1x32xf32> to vector<1x8x32xf32>
    %310 = arith.mulf %308, %309 : vector<1x8x32xf32>
    %311 = arith.addf %1, %310 : vector<1x8x32xf32>
    %312 = vector.shape_cast %311 : vector<1x8x32xf32> to vector<8x32xf32>
    %c0_163 = arith.constant 0 : index
    %c0_164 = arith.constant 0 : index
    %313 = vector.load %arg27[%c0_163, %c0_164] : memref<32x128xf32, #tpu.memory_space<vmem>>, vector<32x128xf32>
    %cst_165 = arith.constant dense<0.000000e+00> : vector<8x128xf32>
    %314 = tpu.matmul %312, %313, %cst_165 {dimension_numbers = #tpu.dot_dimension_numbers<[1], [0], [0], [1], [0, 0, 1, 1], [], []>} : vector<8x32xf32>, vector<32x128xf32>, vector<8x128xf32> -> vector<8x128xf32>
    %c0_166 = arith.constant 0 : index
    %c0_167 = arith.constant 0 : index
    %315 = vector.load %arg28[%c0_166, %c0_167] : memref<1x128xf32, #tpu.memory_space<vmem>>, vector<1x128xf32>
    %316 = vector.broadcast %315 : vector<1x128xf32> to vector<8x128xf32>
    %317 = arith.addf %314, %316 : vector<8x128xf32>
    %318 = vector.shape_cast %317 : vector<8x128xf32> to vector<1x8x128xf32>
    %c0_168 = arith.constant 0 : index
    %c0_169 = arith.constant 0 : index
    %c0_170 = arith.constant 0 : index
    %319 = vector.load %arg30[%c0_168, %c0_169, %c0_170] : memref<1x8x128xf32, #tpu.memory_space<vmem>>, vector<1x8x128xf32>
    tpu.vector_store %arg30[%c0_168, %c0_169, %c0_170], %318 {strides = array<i32>} : memref<1x8x128xf32, #tpu.memory_space<vmem>>, vector<1x8x128xf32>,
    return
  }
  func.func @transform_0(%arg0: i32) -> (i32, i32, i32) {
    %c0_i32 = arith.constant 0 : i32
    %c0_i32_0 = arith.constant 0 : i32
    %c0_i32_1 = arith.constant 0 : i32
    return %arg0, %c0_i32, %c0_i32_0 : i32, i32, i32
  }
  func.func @transform_1(%arg0: i32) -> (i32, i32, i32) {
    %c0_i32 = arith.constant 0 : i32
    %c0_i32_0 = arith.constant 0 : i32
    %c0_i32_1 = arith.constant 0 : i32
    return %arg0, %c0_i32, %c0_i32_0 : i32, i32, i32
  }
  func.func @transform_2(%arg0: i32) -> (i32, i32, i32) {
    %c0_i32 = arith.constant 0 : i32
    %c0_i32_0 = arith.constant 0 : i32
    %c0_i32_1 = arith.constant 0 : i32
    return %arg0, %c0_i32, %c0_i32_0 : i32, i32, i32
  }
  func.func @transform_3(%arg0: i32) -> (i32, i32, i32) {
    %c0_i32 = arith.constant 0 : i32
    %c0_i32_0 = arith.constant 0 : i32
    %c0_i32_1 = arith.constant 0 : i32
    return %arg0, %c0_i32, %c0_i32_0 : i32, i32, i32
  }
  func.func @transform_4(%arg0: i32) -> (i32, i32, i32) {
    %c0_i32 = arith.constant 0 : i32
    %c0_i32_0 = arith.constant 0 : i32
    %c0_i32_1 = arith.constant 0 : i32
    return %arg0, %c0_i32, %c0_i32_0 : i32, i32, i32
  }
  func.func @transform_5(%arg0: i32) -> (i32, i32, i32) {
    %c0_i32 = arith.constant 0 : i32
    %c0_i32_0 = arith.constant 0 : i32
    %c0_i32_1 = arith.constant 0 : i32
    return %arg0, %c0_i32, %c0_i32_0 : i32, i32, i32
  }
  func.func @transform_6(%arg0: i32) -> (i32, i32, i32) {
    %c0_i32 = arith.constant 0 : i32
    %c0_i32_0 = arith.constant 0 : i32
    %c0_i32_1 = arith.constant 0 : i32
    return %arg0, %c0_i32, %c0_i32_0 : i32, i32, i32
  }
  func.func @transform_7(%arg0: i32) -> (i32, i32, i32) {
    %c0_i32 = arith.constant 0 : i32
    %c0_i32_0 = arith.constant 0 : i32
    %c0_i32_1 = arith.constant 0 : i32
    return %arg0, %c0_i32, %c0_i32_0 : i32, i32, i32
  }
  func.func @transform_8(%arg0: i32) -> (i32, i32) {
    %c0_i32 = arith.constant 0 : i32
    %c0_i32_0 = arith.constant 0 : i32
    %c0_i32_1 = arith.constant 0 : i32
    return %c0_i32, %c0_i32_0 : i32, i32
  }
  func.func @transform_9(%arg0: i32) -> (i32, i32) {
    %c0_i32 = arith.constant 0 : i32
    %c0_i32_0 = arith.constant 0 : i32
    %c0_i32_1 = arith.constant 0 : i32
    return %c0_i32, %c0_i32_0 : i32, i32
  }
  func.func @transform_10(%arg0: i32) -> (i32, i32) {
    %c0_i32 = arith.constant 0 : i32
    %c0_i32_0 = arith.constant 0 : i32
    %c0_i32_1 = arith.constant 0 : i32
    return %c0_i32, %c0_i32_0 : i32, i32
  }
  func.func @transform_11(%arg0: i32) -> (i32, i32) {
    %c0_i32 = arith.constant 0 : i32
    %c0_i32_0 = arith.constant 0 : i32
    %c0_i32_1 = arith.constant 0 : i32
    return %c0_i32, %c0_i32_0 : i32, i32
  }
  func.func @transform_12(%arg0: i32) -> (i32, i32) {
    %c0_i32 = arith.constant 0 : i32
    %c0_i32_0 = arith.constant 0 : i32
    %c0_i32_1 = arith.constant 0 : i32
    return %c0_i32, %c0_i32_0 : i32, i32
  }
  func.func @transform_13(%arg0: i32) -> (i32, i32) {
    %c0_i32 = arith.constant 0 : i32
    %c0_i32_0 = arith.constant 0 : i32
    %c0_i32_1 = arith.constant 0 : i32
    return %c0_i32, %c0_i32_0 : i32, i32
  }
  func.func @transform_14(%arg0: i32) -> (i32, i32) {
    %c0_i32 = arith.constant 0 : i32
    %c0_i32_0 = arith.constant 0 : i32
    %c0_i32_1 = arith.constant 0 : i32
    return %c0_i32, %c0_i32_0 : i32, i32
  }
  func.func @transform_15(%arg0: i32) -> (i32, i32) {
    %c0_i32 = arith.constant 0 : i32
    %c0_i32_0 = arith.constant 0 : i32
    %c0_i32_1 = arith.constant 0 : i32
    return %c0_i32, %c0_i32_0 : i32, i32
  }
  func.func @transform_16(%arg0: i32) -> (i32, i32) {
    %c0_i32 = arith.constant 0 : i32
    %c0_i32_0 = arith.constant 0 : i32
    %c0_i32_1 = arith.constant 0 : i32
    return %c0_i32, %c0_i32_0 : i32, i32
  }
  func.func @transform_17(%arg0: i32) -> (i32, i32) {
    %c0_i32 = arith.constant 0 : i32
    %c0_i32_0 = arith.constant 0 : i32
    %c0_i32_1 = arith.constant 0 : i32
    return %c0_i32, %c0_i32_0 : i32, i32
  }
  func.func @transform_18(%arg0: i32) -> (i32, i32) {
    %c0_i32 = arith.constant 0 : i32
    %c0_i32_0 = arith.constant 0 : i32
    %c0_i32_1 = arith.constant 0 : i32
    return %c0_i32, %c0_i32_0 : i32, i32
  }
  func.func @transform_19(%arg0: i32) -> (i32, i32) {
    %c0_i32 = arith.constant 0 : i32
    %c0_i32_0 = arith.constant 0 : i32
    %c0_i32_1 = arith.constant 0 : i32
    return %c0_i32, %c0_i32_0 : i32, i32
  }
  func.func @transform_20(%arg0: i32) -> (i32, i32) {
    %c0_i32 = arith.constant 0 : i32
    %c0_i32_0 = arith.constant 0 : i32
    %c0_i32_1 = arith.constant 0 : i32
    return %c0_i32, %c0_i32_0 : i32, i32
  }
  func.func @transform_21(%arg0: i32) -> (i32, i32) {
    %c0_i32 = arith.constant 0 : i32
    %c0_i32_0 = arith.constant 0 : i32
    %c0_i32_1 = arith.constant 0 : i32
    return %c0_i32, %c0_i32_0 : i32, i32
  }
  func.func @transform_22(%arg0: i32) -> (i32, i32) {
    %c0_i32 = arith.constant 0 : i32
    %c0_i32_0 = arith.constant 0 : i32
    %c0_i32_1 = arith.constant 0 : i32
    return %c0_i32, %c0_i32_0 : i32, i32
  }
  func.func @transform_23(%arg0: i32) -> (i32, i32) {
    %c0_i32 = arith.constant 0 : i32
    %c0_i32_0 = arith.constant 0 : i32
    %c0_i32_1 = arith.constant 0 : i32
    return %c0_i32, %c0_i32_0 : i32, i32
  }
  func.func @transform_24(%arg0: i32) -> (i32, i32) {
    %c0_i32 = arith.constant 0 : i32
    %c0_i32_0 = arith.constant 0 : i32
    %c0_i32_1 = arith.constant 0 : i32
    return %c0_i32, %c0_i32_0 : i32, i32
  }
  func.func @transform_25(%arg0: i32) -> (i32, i32) {
    %c0_i32 = arith.constant 0 : i32
    %c0_i32_0 = arith.constant 0 : i32
    %c0_i32_1 = arith.constant 0 : i32
    return %c0_i32, %c0_i32_0 : i32, i32
  }
  func.func @transform_26(%arg0: i32) -> (i32, i32) {
    %c0_i32 = arith.constant 0 : i32
    %c0_i32_0 = arith.constant 0 : i32
    %c0_i32_1 = arith.constant 0 : i32
    return %c0_i32, %c0_i32_0 : i32, i32
  }
  func.func @transform_27(%arg0: i32) -> (i32, i32) {
    %c0_i32 = arith.constant 0 : i32
    %c0_i32_0 = arith.constant 0 : i32
    %c0_i32_1 = arith.constant 0 : i32
    return %c0_i32, %c0_i32_0 : i32, i32
  }
  func.func @transform_28(%arg0: i32) -> (i32, i32, i32) {
    %c0_i32 = arith.constant 0 : i32
    %c0_i32_0 = arith.constant 0 : i32
    %c0_i32_1 = arith.constant 0 : i32
    return %arg0, %c0_i32, %c0_i32_0 : i32, i32, i32
  }
  func.func @transform_29(%arg0: i32) -> (i32, i32, i32) {
    %c0_i32 = arith.constant 0 : i32
    %c0_i32_0 = arith.constant 0 : i32
    %c0_i32_1 = arith.constant 0 : i32
    return %arg0, %c0_i32, %c0_i32_0 : i32, i32, i32
  }
}

</mosaic_0001>

<bundles_post_ra>
// kernel: tpu_custom_call.1
= control target key start
LH: loop header
LB: loop body
LE: loop exit
PB: predicated region body
PF: predicated region fallthrough
CT: control target
= control target key end

     0   :  { %s5525_s6 = smov 1   ;;  %s5526_s10 = smov 2   ;;  %s6498_s0 = inlined_call_operand.smem [shape: u32[30], index: -1, kind: input, shape index: {}] }
   0x1   :  { %s5594_s5 = sld [smem:[%s6498_s0]]   ;;  %s5527_s14 = smov 3  }
   0x2   :  { %s5599_s9 = sld [smem:[%s6498_s0 + %s5525_s6]]   ;;  %s5528_s18 = smov 4  }
   0x3   :  { %s5604_s13 = sld [smem:[%s6498_s0 + %s5526_s10]]   ;;  %s5529_s22 = smov 5  }
   0x4   :  { %s5609_s17 = sld [smem:[%s6498_s0 + %s5527_s14]]   ;;  %s5530_s26 = smov 6  }
   0x5   :  { %s5614_s21 = sld [smem:[%s6498_s0 + %s5528_s18]]   ;;  %s5531_s30 = smov 7  }
   0x6   :  { %s5619_s25 = sld [smem:[%s6498_s0 + %s5529_s22]]   ;;  %s5532_s4 = smov 8  }
   0x7   :  { %6522 = sst [smem:[#allocation48_spill]] %s5594_s5  ;;  %s5533_s10 = smov 9  }
   0x8   :  { %6523 = sst [smem:[#allocation49_spill]] %s5599_s9  ;;  %s5534_s15 = smov 10  }
   0x9   :  { %6524 = sst [smem:[#allocation50_spill]] %s5604_s13  ;;  %s5535_s20 = smov 11  }
   0xa   :  { %6525 = sst [smem:[#allocation51_spill]] %s5609_s17  ;;  %s5537_s1 = smov 13  }
   0xb   :  { %6526 = sst [smem:[#allocation52_spill]] %s5614_s21  ;;  %s5538_s7 = smov 14  }
   0xc   :  { %6527 = sst [smem:[#allocation53_spill]] %s5619_s25  ;;  %s5540_s22 = smov 16  }
   0xd   :  { %s5624_s29 = sld [smem:[%s6498_s0 + %s5530_s26]]   ;;  %s5536_s26 = smov 12  }
   0xe   :  { %s5629_s3 = sld [smem:[%s6498_s0 + %s5531_s30]]   ;;  %s5541_s28 = smov 17  }
   0xf   :  { %s5634_s8 = sld [smem:[%s6498_s0 + %s5532_s4]]  }
  0x10   :  { %s5639_s14 = sld [smem:[%s6498_s0 + %s5533_s10]]  }
  0x11   :  { %s5644_s19 = sld [smem:[%s6498_s0 + %s5534_s15]]   ;;  %s5539_s15 = smov 15  }
  0x12   :  { %s5649_s24 = sld [smem:[%s6498_s0 + %s5535_s20]]  }
  0x13   :  { %6528 = sst [smem:[#allocation54_spill]] %s5624_s29 }
  0x14   :  { %6529 = sst [smem:[#allocation55_spill]] %s5629_s3 }
  0x15   :  { %6530 = sst [smem:[#allocation56_spill]] %s5634_s8 }
  0x16   :  { %6531 = sst [smem:[#allocation57_spill]] %s5639_s14 }
  0x17   :  { %s5654_s30 = sld [smem:[%s6498_s0 + %s5536_s26]]  }
  0x18   :  { %6532 = sst [smem:[#allocation58_spill]] %s5649_s24 }
  0x19   :  { %s5659_s6 = sld [smem:[%s6498_s0 + %s5537_s1]]  }
  0x1a   :  { %s5664_s12 = sld [smem:[%s6498_s0 + %s5538_s7]]   ;;  %s5542_s7 = smov 18  }
  0x1b   :  { %s5669_s20 = sld [smem:[%s6498_s0 + %s5539_s15]]   ;;  %s5543_s15 = smov 19  }
  0x1c   :  { %s5674_s27 = sld [smem:[%s6498_s0 + %s5540_s22]]   ;;  %s5544_s22 = smov 20  }
  0x1d   :  { %s5679_s4 = sld [smem:[%s6498_s0 + %s5541_s28]]   ;;  %s5545_s28 = smov 21  }
  0x1e   :  { %s5684_s5 = sld [smem:[%s6498_s0 + %s5542_s7]]   ;;  %s5546_s7 = smov 22  }
  0x1f   :  { %6533 = sst [smem:[#allocation59_spill]] %s5659_s6 }
  0x20   :  { %6534 = sst [smem:[#allocation60_spill]] %s5664_s12 }
  0x21   :  { %6535 = sst [smem:[#allocation61_spill]] %s5669_s20 }
  0x22   :  { %s5689_s8 = sld [smem:[%s6498_s0 + %s5543_s15]]   ;;  %s5547_s15 = smov 23  }
  0x23   :  { %6536 = sst [smem:[#allocation62_spill]] %s5679_s4 }
  0x24   :  { %6537 = sst [smem:[#allocation63_spill]] %s5684_s5 }
  0x25   :  { %s5694_s29 = sld [smem:[%s6498_s0 + %s5544_s22]]   ;;  %s5548_s22 = smov 24  }
  0x26   :  { %s5699_s3 = sld [smem:[%s6498_s0 + %s5545_s28]]   ;;  %s5549_s28 = smov 25  }
  0x27   :  { %s5704_s13 = sld [smem:[%s6498_s0 + %s5546_s7]]   ;;  %s5550_s7 = smov 26  }
  0x28   :  { %6538 = sst [smem:[#allocation64_spill]] %s5689_s8 }
  0x29   :  { %s5709_s21 = sld [smem:[%s6498_s0 + %s5547_s15]]   ;;  %s5551_s15 = smov 27  }
  0x2a   :  { %s5714_s25 = sld [smem:[%s6498_s0 + %s5548_s22]]   ;;  %s5552_s22 = smov 28  }
  0x2b   :  { %s5719_s9 = sld [smem:[%s6498_s0 + %s5549_s28]]   ;;  %s5553_s28 = smov 29  }
  0x2c   :  { %6539 = sst [smem:[#allocation65_spill]] %s5699_s3 }
  0x2d   :  { %6540 = sst [smem:[#allocation66_spill]] %s5704_s13 }
  0x2e   :  { %s5724_s13 = sld [smem:[%s6498_s0 + %s5550_s7]]  }
  0x2f   :  { %6541 = sst [smem:[#allocation67_spill]] %s5709_s21 }
  0x30   :  { %6542 = sst [smem:[#allocation68_spill]] %s5714_s25 }
  0x31   :  { %6543 = sst [smem:[#allocation69_spill]] %s5719_s9 }
  0x32   :  { %s5729_s21 = sld [smem:[%s6498_s0 + %s5551_s15]]  }
  0x33   :  { %s5734_s25 = sld [smem:[%s6498_s0 + %s5552_s22]]  }
  0x34   :  { %s5739_s9 = sld [smem:[%s6498_s0 + %s5553_s28]]  }
  0x38   :  { %6544 = sst [smem:[#allocation70_spill]] %s5729_s21 }
  0x39   :  { %6545 = sst [smem:[#allocation71_spill]] %s5734_s25 }
  0x3a   :  { %6546 = sst [smem:[#allocation72_spill]] %s5739_s9 }
  0x3b   :  { %65 = vsyncpa [#allocation5], 0 }
  0x3c   :  { %67 = vsyncpa [#allocation5 + $0x1], 0 }
  0x3d   :  { %68 = vsyncpa [#allocation8], 0 }
  0x3e   :  { %70 = vsyncpa [#allocation8 + $0x1], 0 }
  0x3f   :  { %71 = vsyncpa [#allocation11], 0 }
  0x40   :  { %72 = vsyncpa [#allocation14], 0 }
  0x41   :  { %73 = vsyncpa [#allocation17], 0 }
  0x42   :  { %74 = vsyncpa [#allocation20], 0 }
  0x43   :  { %75 = vsyncpa [#allocation23], 0 }
  0x44   :  { %76 = vsyncpa [#allocation26], 0 }
  0x45   :  { %77 = vsyncpa [#allocation29], 0 }
  0x46   :  { %78 = vsyncpa [#allocation32], 0 }
  0x47   :  { %79 = vsyncpa [#allocation6], 0 }
  0x48   :  { %81 = vsyncpa [#allocation6 + $0x1], 0 }
  0x49   :  { %82 = vsyncpa [#allocation35], 0 }
  0x4a   :  { %84 = vsyncpa [#allocation35 + $0x1], 0  ;;  %s5741_s7 = smov 0   ;;  %s5743_s0 = smov 0  }
  0x4b   :  { %s5745_s10 = smov 0   ;;  %s5747_s11 = smov 0  }
  0x4c LB: > { %s6547_s17 = sld [smem:[#allocation51_spill]]  ;;  %s5554_s15 = smov [#allocation10]   ;;  %s5511_s7 = sphi %s5741_s7, %s6615_s7   ;;  %s5523_s11 = sphi %s5747_s11, %s6617_s11   ;;  %s5519_s10 = sphi %s5745_s10, %s6614_s10   ;;  %s5515_s0 = sphi %s5743_s0, %s6616_s0  }
  0x4d   : > { %6548 = sst [smem:[#allocation73_spill]] %s5519_s10  ;;  %s791_s16 = sshll.u32 %s5554_s15, 4  ;;  %s792_s16 = int_to_ptr.vmem [resolvable:$true] %s791_s16 }
  0x4e   : > { %s5762_s18 = sadd.s32 4294967295, %s5523_s11   ;;  %p4186_p0 = scmp.ge.s32.totalorder %s5523_s11, 1 }
  0x4f   : > { %p6505_p1 = scmp.eq.s32.totalorder %s5762_s18, 0  ;;  %p775_p2 = scmp.lt.s32.totalorder %s5523_s11, 3 }
  0x50   : > { %s5555_s23 = smov [#allocation13]   ;;  %s5556_s28 = smov [#allocation16]  }
  0x51   : > { %p5767_p3 = pnand %p4186_p0, %p775_p2  ;;  %s815_s26 = sshll.u32 %s5555_s23, 4  ;;  %s5774_s26 = int_to_ptr.vmem [resolvable:$true] %s815_s26 }
  0x52   : > { %s839_s1 = sshll.u32 %s5556_s28, 4  ;;  %s5557_s15 = smov [#allocation19]   ;;  %s5782_s1 = int_to_ptr.vmem [resolvable:$true] %s839_s1 }
  0x53   : > { %s6549_s22 = scalar_select %p5767_p3, 1, 0 }
  0x54   : > { %p4677_p5 = pneg %p5767_p3  ;;  %s5784_s9 = sshll.u32 %s5557_s15, 4  ;;  %s864_s9 = int_to_ptr.vmem [resolvable:$true] %s5784_s9 }
  0x55   : > { %s4930_s23 = scalar_lea.vmem %s792_s16, 16  ;;  %s4937_s28 = scalar_lea.vmem %s792_s16, 32 }
  0x56   : > { %p5778_p6 = pnand %p4677_p5, %p6505_p1  ;;  %p4931_p8 = scmp.ne.s32.totalorder %s792_s16, %s4930_s23 }
  0x57   : > { %p4938_p11 = scmp.lt.s32.totalorder %s792_s16, %s792_s16  ;;  %p4939_p12 = scmp.lt.s32.totalorder %s4937_s28, %s4930_s23 }
  0x58   : > { %s6550_s2 = scalar_select %p5778_p6, 1, 0 }
  0x59   : > { %p5788_p7 = pneg %p5778_p6  ;;  %p4940_p13 = por %p4939_p12, %p4938_p11 }
  0x5b   : > { %s6551_s21 = scalar_select %p5788_p7, 1, 0 }
  0x5c   : > { %p4933_p9 = pnand %p4931_p8, %p5788_p7 }
  0x5e   : > { %p4934_p10 = pneg %p4933_p9 }
  0x60   : > { %p4941_p0 = pnand %p4940_p13, %p4934_p10 }
  0x62   : > { %4944 = shalt.err (!%p4941_p0)
}
  0x63   : > { %s6552_s14 = sld [smem:[#allocation57_spill]]  ;;  %s4956_s15 = scalar_lea.vmem %s5774_s26, 16 }
  0x64   : > { %p4957_p2 = scmp.ne.s32.totalorder %s5774_s26, %s4956_s15  ;;  %s4963_s25 = scalar_lea.vmem %s5774_s26, 32 }
  0x65   : > { %p4964_p9 = scmp.lt.s32.totalorder %s5774_s26, %s5774_s26  ;;  %p4965_p11 = scmp.lt.s32.totalorder %s4963_s25, %s4956_s15 }
  0x66   : > { %p4959_p5 = pnand %p4957_p2, %p5788_p7 }
  0x67   : > { %p4966_p10 = por %p4965_p11, %p4964_p9 }
  0x68   : > { %p4960_p8 = pneg %p4959_p5 }
  0x69   : > { %4680 = dma.hbm_to_vmem [thread:$0]  (!%p5778_p6), %s6552_s14, 16, %s792_s16, [#allocation11]  }
  0x6a   : > { %p4967_p12 = pnand %p4966_p10, %p4960_p8 }
  0x6c   : > { %4970 = shalt.err (!%p4967_p12)
}
  0x6d   : > { %s6553_s24 = sld [smem:[#allocation58_spill]]  ;;  %s4982_s16 = scalar_lea.vmem %s5782_s1, 16 }
  0x6e   : > { %p4983_p13 = scmp.ne.s32.totalorder %s5782_s1, %s4982_s16  ;;  %s4989_s23 = scalar_lea.vmem %s5782_s1, 32 }
  0x6f   : > { %p4990_p5 = scmp.lt.s32.totalorder %s5782_s1, %s5782_s1  ;;  %p4991_p8 = scmp.lt.s32.totalorder %s4989_s23, %s4982_s16 }
  0x70   : > { %p4985_p0 = pnand %p4983_p13, %p5788_p7 }
  0x71   : > { %p4992_p9 = por %p4991_p8, %p4990_p5 }
  0x72   : > { %p4986_p2 = pneg %p4985_p0 }
  0x73   : > { %4686 = dma.hbm_to_vmem [thread:$0]  (!%p5778_p6), %s6553_s24, 16, %s5774_s26, [#allocation14]  }
  0x74   : > { %p4993_p11 = pnand %p4992_p9, %p4986_p2 }
  0x76   : > { %4996 = shalt.err (!%p4993_p11)
}
  0x77   : > { %s6554_s6 = sld [smem:[#allocation59_spill]]  ;;  %s5558_s25 = smov [#allocation22]  }
  0x78   : > { %s887_s26 = sshll.u32 %s5558_s25, 4  ;;  %s5008_s28 = scalar_lea.vmem %s864_s9, 16  ;;  %s888_s26 = int_to_ptr.vmem [resolvable:$true] %s887_s26 }
  0x79   : > { %p5009_p10 = scmp.ne.s32.totalorder %s864_s9, %s5008_s28  ;;  %s5015_s15 = scalar_lea.vmem %s864_s9, 32 }
  0x7a   : > { %p5016_p0 = scmp.lt.s32.totalorder %s864_s9, %s864_s9  ;;  %p5017_p5 = scmp.lt.s32.totalorder %s5015_s15, %s5008_s28 }
  0x7b   : > { %p5011_p12 = pnand %p5009_p10, %p5788_p7 }
  0x7c   : > { %p5018_p2 = por %p5017_p5, %p5016_p0 }
  0x7d   : > { %4692 = dma.hbm_to_vmem [thread:$0]  (!%p5778_p6), %s6554_s6, 16, %s5782_s1, [#allocation17]  }
  0x7e   : > { %p5012_p13 = pneg %p5011_p12 }
  0x80   : > { %p5019_p8 = pnand %p5018_p2, %p5012_p13 }
  0x82   : > { %5022 = shalt.err (!%p5019_p8)
}
  0x83   : > { %s6555_s20 = sld [smem:[#allocation61_spill]]  ;;  %s5034_s1 = scalar_lea.vmem %s888_s26, 16 }
  0x84   : > { %p5035_p9 = scmp.ne.s32.totalorder %s888_s26, %s5034_s1  ;;  %s5041_s16 = scalar_lea.vmem %s888_s26, 32 }
  0x85   : > { %p5042_p10 = scmp.lt.s32.totalorder %s888_s26, %s888_s26  ;;  %p5043_p12 = scmp.lt.s32.totalorder %s5041_s16, %s5034_s1 }
  0x86   : > { %p5037_p11 = pnand %p5035_p9, %p5788_p7 }
  0x87   : > { %p5044_p1 = por %p5043_p12, %p5042_p10 }
  0x88   : > { %p5038_p4 = pneg %p5037_p11 }
  0x89   : > { %4698 = dma.hbm_to_vmem [thread:$0]  (!%p5778_p6), %s6555_s20, 16, %s864_s9, [#allocation20]  }
  0x8a   : > { %p5045_p3 = pnand %p5044_p1, %p5038_p4 }
  0x8c   : > { %5048 = shalt.err (!%p5045_p3)
}
  0x8d   : > { %s6556_s4 = sld [smem:[#allocation62_spill]]  ;;  %s5559_s23 = smov [#allocation25]  }
  0x8e   : > { %s911_s25 = sshll.u32 %s5559_s23, 4  ;;  %s5560_s9 = smov [#allocation28]   ;;  %s912_s25 = int_to_ptr.vmem [resolvable:$true] %s911_s25 }
  0x8f   : > { %s935_s28 = sshll.u32 %s5560_s9, 4  ;;  %s5060_s15 = scalar_lea.vmem %s912_s25, 16  ;;  %s936_s28 = int_to_ptr.vmem [resolvable:$true] %s935_s28 }
  0x90   : > { %p5061_p13 = scmp.ne.s32.totalorder %s912_s25, %s5060_s15  ;;  %s5067_s6 = scalar_lea.vmem %s912_s25, 32 }
  0x91   : > { %p5068_p2 = scmp.lt.s32.totalorder %s912_s25, %s912_s25  ;;  %p5069_p8 = scmp.lt.s32.totalorder %s5067_s6, %s5060_s15 }
  0x92   : > { %p5063_p0 = pnand %p5061_p13, %p5788_p7 }
  0x93   : > { %4704 = dma.hbm_to_vmem [thread:$0]  (!%p5778_p6), %s6556_s4, 16, %s888_s26, [#allocation23]  }
  0x94   : > { %p5064_p5 = pneg %p5063_p0  ;;  %p5070_p1 = por %p5069_p8, %p5068_p2 }
  0x96   : > { %p5071_p3 = pnand %p5070_p1, %p5064_p5 }
  0x98   : > { %5074 = shalt.err (!%p5071_p3)
}
  0x99   : > { %s6557_s8 = sld [smem:[#allocation64_spill]]  ;;  %s5086_s26 = scalar_lea.vmem %s936_s28, 16 }
  0x9a   : > { %p5087_p4 = scmp.ne.s32.totalorder %s936_s28, %s5086_s26  ;;  %s5093_s1 = scalar_lea.vmem %s936_s28, 32 }
  0x9b   : > { %p5094_p10 = scmp.lt.s32.totalorder %s936_s28, %s936_s28  ;;  %p5095_p12 = scmp.lt.s32.totalorder %s5093_s1, %s5086_s26 }
  0x9c   : > { %p5089_p9 = pnand %p5087_p4, %p5788_p7 }
  0x9d   : > { %p5096_p13 = por %p5095_p12, %p5094_p10 }
  0x9e   : > { %p5090_p11 = pneg %p5089_p9 }
  0x9f   : > { %4710 = dma.hbm_to_vmem [thread:$0]  (!%p5778_p6), %s6557_s8, 16, %s912_s25, [#allocation26]  }
  0xa0   : > { %p5097_p0 = pnand %p5096_p13, %p5090_p11 }
  0xa2   : > { %5100 = shalt.err (!%p5097_p0)
}
  0xa3   : > { %s6558_s3 = sld [smem:[#allocation65_spill]]  ;;  %s4185_s6 = sadd.s32 4294967294, %s5523_s11  }
  0xa4   : > { %s5842_s16 = sadd.s32 1, %s5523_s11   ;;  %s123_s23 = sadd.s32 1, %s5519_s10 }
  0xa5   : > { %s120_s25 = ssub.s32 %s5523_s11, %s5842_s16  ;;  %p130_p5 = scmp.ne.s32.totalorder %s5519_s10, %s5515_s0 }
  0xa6   : > { %p121_p2 = scmp.eq.s32.totalorder %s120_s25, 0  ;;  %p131_p8 = scmp.eq.s32.totalorder %s5523_s11, 0 }
  0xa7   : > { %p136_p1 = scmp.ne.s32.totalorder %s5515_s0, %s5511_s7  ;;  %p736_p3 = scmp.eq.s32.totalorder %s5762_s18, 1 }
  0xa8   : > { %s5854_s9 = scalar_select %p121_p2, %s5519_s10, %s123_s23  }
  0xa9   : > { %4716 = dma.hbm_to_vmem [thread:$0]  (!%p5778_p6), %s6558_s3, 16, %s936_s28, [#allocation29]  }
  0xaa   : > { %6559 = sst [smem:[#allocation74_spill]] %s5854_s9  ;;  %p132_p4 = por %p131_p8, %p130_p5 }
  0xab   : > { %p6560_p9 = scmp.eq.s32.totalorder %s5762_s18, 0  ;;  %p5862_p10 = por %p736_p3, %p130_p5 }
  0xac   : > { %p742_p12 = scmp.eq.s32.totalorder %s4185_s6, 1  ;;  %p4755_p13 = scmp.lt.s32.totalorder %s5523_s11, 2 }
  0xad   : > { %p5858_p11 = por %p6560_p9, %p136_p1  ;;  %s5868_s26 = sand.u32 1, %s5519_s10  }
  0xae   : > { %s6562_s15 = scalar_select %p5862_p10, 1, 0 }
  0xaf   : > { %s6561_s28 = scalar_select %p5858_p11, 1, 0 }
  0xb0   : > { %p5870_p0 = por %p742_p12, %p136_p1  ;;  %s1018_s23 = sand.u32 1, %s5523_s11  }
  0xb1   : > { %p5875_p2 = pnand %p4755_p13, %p132_p4  ;;  %s6507_s3 = sshll.u32 %s5523_s11, 4 }
  0xb2   : > { %s6563_s1 = scalar_select %p5870_p0, 1, 0 }
  0xb3   : > { %s6564_s25 = scalar_select %p5875_p2, 1, 0 }
  0xb4   : > { %s5883_s4 = scalar_lea.hbm %s6547_s17, %s6507_s3  ;;  %s1021_s6 = scalar_lea.vmem [#allocation7], %s5868_s26 }
  0xb5   : > { %s1028_s8 = sshll.u32 %s1021_s6, 4  ;;  %s5886_s14 = scalar_lea.sflag [#allocation8], %s1018_s23  ;;  %s1029_s8 = int_to_ptr.vmem [resolvable:$true] %s1028_s8 }
  0xb6   : > { %s5101_s20 = scalar_lea.hbm %s5883_s4, 16  ;;  %p5892_p8 = pneg %p5875_p2 }
  0xb7   : > { %p5102_p5 = scmp.ne.s32.totalorder %s5883_s4, %s5101_s20  ;;  %s5106_s3 = scalar_lea.hbm %s6547_s17, 32 }
  0xb8   : > { %s6565_s24 = scalar_select %p5892_p8, 1, 0 }
  0xb9   : > { %p5104_p1 = pnand %p5892_p8, %p5102_p5  ;;  %p5107_p4 = scmp.lt.s32.totalorder %s5883_s4, %s6547_s17 }
  0xba   : > { %p5108_p9 = scmp.lt.s32.totalorder %s5106_s3, %s5101_s20 }
  0xbb   : > { %p5105_p3 = pneg %p5104_p1 }
  0xbc   : > { %p5109_p12 = por %p5108_p9, %p5107_p4 }
  0xbe   : > { %p5110_p13 = pnand %p5109_p12, %p5105_p3 }
  0xc0   : > { %5113 = shalt.err (!%p5110_p13)
}
  0xc1   : > { %s5114_s6 = scalar_lea.vmem %s1029_s8, 16  ;;  %s5561_s23 = smov [#allocation7]  }
  0xc2   : > { %p5115_p0 = scmp.ne.s32.totalorder %s1029_s8, %s5114_s6  ;;  %s5119_s9 = sshll.u32 %s5561_s23, 4  ;;  %s5120_s9 = int_to_ptr.vmem [resolvable:$false] %s5119_s9 }
  0xc3   : > { %s5121_s10 = scalar_lea.vmem %s5120_s9, 32  ;;  %p5122_p6 = scmp.lt.s32.totalorder %s1029_s8, %s5120_s9 }
  0xc4   : > { %p5117_p10 = pnand %p5115_p0, %p5892_p8  ;;  %p5123_p7 = scmp.lt.s32.totalorder %s5121_s10, %s5114_s6 }
  0xc6   : > { %p5118_p11 = pneg %p5117_p10  ;;  %p5124_p5 = por %p5123_p7, %p5122_p6 }
  0xc8   : > { %p5125_p1 = pnand %p5124_p5, %p5118_p11 }
  0xca   : > { %5128 = shalt.err (!%p5125_p1)
}
  0xcb   : > { %4729 = dma.hbm_to_vmem [thread:$0]  (!%p5875_p2), %s5883_s4, 16, %s1029_s8, %s5886_s14  }
  0xcc   : > { %s5562_s3 = smov [#allocation12]   ;;  %p6566_p0 = scmp.ne.s32.totalorder %s6551_s21, 0 }
  0xcd   : > { %s801_s20 = sshll.u32 %s5562_s3, 4  ;;  %s802_s20 = int_to_ptr.vmem [resolvable:$true] %s801_s20 }
  0xce   : > { %s5140_s17 = scalar_lea.vmem %s802_s20, 512  ;;  %p5148_p9 = scmp.lt.s32.totalorder %s802_s20, %s802_s20 }
  0xcf   : > { %p5141_p10 = scmp.ne.s32.totalorder %s802_s20, %s5140_s17  ;;  %p5149_p12 = scmp.lt.s32.totalorder %s5140_s17, %s5140_s17 }
  0xd1   : > { %p5143_p3 = pnand %p5141_p10, %p6566_p0  ;;  %p5150_p13 = por %p5149_p12, %p5148_p9 }
  0xd3   : > { %p5144_p4 = pneg %p5143_p3 }
  0xd5   : > { %p5151_p6 = pnand %p5150_p13, %p5144_p4 }
  0xd7   : > { %5154 = shalt.err (!%p5151_p6)
}
  0xd8   : > { %s5563_s10 = smov 128   ;;  %s5564_s9 = smov 8  }
  0xd9   : > { %p6567_p7 = scmp.ne.s32.totalorder %s6550_s2, 0  ;;  %s5565_s8 = smov [#allocation15]  }
  0xda   : > { %s825_s4 = sshll.u32 %s5565_s8, 4  ;;  %s5566_s6 = smov [#allocation18]   ;;  %s826_s4 = int_to_ptr.vmem [resolvable:$true] %s825_s4 }
  0xdb   : > { %4683 = dma.hbm_to_vmem [thread:$0]  (!%p6567_p7), %s5644_s19, 512, %s802_s20, [#allocation11], %s5563_s10, %s5563_s10, %s5564_s9  }
  0xdc   : > { %s849_s23 = sshll.u32 %s5566_s6, 4  ;;  %s5166_s17 = scalar_lea.vmem %s826_s4, 512  ;;  %s850_s23 = int_to_ptr.vmem [resolvable:$true] %s849_s23 }
  0xdd   : > { %p5167_p11 = scmp.ne.s32.totalorder %s826_s4, %s5166_s17  ;;  %p5174_p10 = scmp.lt.s32.totalorder %s826_s4, %s826_s4 }
  0xde   : > { %p5175_p3 = scmp.lt.s32.totalorder %s5166_s17, %s5166_s17 }
  0xdf   : > { %p5169_p5 = pnand %p5167_p11, %p6566_p0 }
  0xe0   : > { %p5176_p4 = por %p5175_p3, %p5174_p10 }
  0xe1   : > { %p5170_p1 = pneg %p5169_p5 }
  0xe3   : > { %p5177_p9 = pnand %p5176_p4, %p5170_p1 }
  0xe5   : > { %5180 = shalt.err (!%p5177_p9)
}
  0xe6   : > { %4689 = dma.hbm_to_vmem [thread:$0]  (!%p6567_p7), %s5654_s30, 512, %s826_s4, [#allocation14], %s5563_s10, %s5563_s10, %s5564_s9  }
  0xe7   : > { %s5192_s3 = scalar_lea.vmem %s850_s23, 512  ;;  %p5200_p11 = scmp.lt.s32.totalorder %s850_s23, %s850_s23 }
  0xe8   : > { %p5193_p12 = scmp.ne.s32.totalorder %s850_s23, %s5192_s3  ;;  %p5201_p5 = scmp.lt.s32.totalorder %s5192_s3, %s5192_s3 }
  0xea   : > { %p5195_p13 = pnand %p5193_p12, %p6566_p0  ;;  %p5202_p2 = por %p5201_p5, %p5200_p11 }
  0xec   : > { %p5196_p6 = pneg %p5195_p13 }
  0xee   : > { %p5203_p8 = pnand %p5202_p2, %p5196_p6 }
  0xf0   : > { %5206 = shalt.err (!%p5203_p8)
}
  0xf1   : > { %s6568_s12 = sld [smem:[#allocation60_spill]]  ;;  %s5567_s20 = smov [#allocation21]  }
  0xf2   : > { %s873_s8 = sshll.u32 %s5567_s20, 4  ;;  %s5568_s4 = smov [#allocation24]   ;;  %s874_s8 = int_to_ptr.vmem [resolvable:$true] %s873_s8 }
  0xf3   : > { %s897_s6 = sshll.u32 %s5568_s4, 4  ;;  %s5218_s17 = scalar_lea.vmem %s874_s8, 512  ;;  %s898_s6 = int_to_ptr.vmem [resolvable:$true] %s897_s6 }
  0xf4   : > { %p5219_p1 = scmp.ne.s32.totalorder %s874_s8, %s5218_s17  ;;  %p5226_p8 = scmp.lt.s32.totalorder %s874_s8, %s874_s8 }
  0xf5   : > { %p5227_p3 = scmp.lt.s32.totalorder %s5218_s17, %s5218_s17 }
  0xf6   : > { %p5221_p10 = pnand %p5219_p1, %p6566_p0 }
  0xf7   : > { %4695 = dma.hbm_to_vmem [thread:$0]  (!%p6567_p7), %s6568_s12, 512, %s850_s23, [#allocation17], %s5563_s10, %s5563_s10, %s5564_s9  }
  0xf8   : > { %p5222_p2 = pneg %p5221_p10  ;;  %p5228_p4 = por %p5227_p3, %p5226_p8 }
  0xfa   : > { %p5229_p9 = pnand %p5228_p4, %p5222_p2 }
  0xfc   : > { %5232 = shalt.err (!%p5229_p9)
}
  0xfd   : > { %4701 = dma.hbm_to_vmem [thread:$0]  (!%p6567_p7), %s5674_s27, 512, %s874_s8, [#allocation20], %s5563_s10, %s5563_s10, %s5564_s9  }
  0xfe   : > { %s5244_s23 = scalar_lea.vmem %s898_s6, 512  ;;  %p5252_p11 = scmp.lt.s32.totalorder %s898_s6, %s898_s6 }
  0xff   : > { %p5245_p12 = scmp.ne.s32.totalorder %s898_s6, %s5244_s23  ;;  %p5253_p5 = scmp.lt.s32.totalorder %s5244_s23, %s5244_s23 }
 0x101   : > { %p5247_p13 = pnand %p5245_p12, %p6566_p0  ;;  %p5254_p1 = por %p5253_p5, %p5252_p11 }
 0x103   : > { %p5248_p6 = pneg %p5247_p13 }
 0x105   : > { %p5255_p10 = pnand %p5254_p1, %p5248_p6 }
 0x107   : > { %5258 = shalt.err (!%p5255_p10)
}
 0x108   : > { %s6569_s5 = sld [smem:[#allocation63_spill]]  ;;  %s5569_s3 = smov [#allocation27]  }
 0x109   : > { %s921_s20 = sshll.u32 %s5569_s3, 4  ;;  %s5570_s8 = smov [#allocation30]   ;;  %s922_s20 = int_to_ptr.vmem [resolvable:$true] %s921_s20 }
 0x10a   : > { %s951_s4 = sshll.u32 %s5570_s8, 4  ;;  %s5270_s17 = scalar_lea.vmem %s922_s20, 512  ;;  %s952_s4 = int_to_ptr.vmem [resolvable:$true] %s951_s4 }
 0x10b   : > { %p5271_p2 = scmp.ne.s32.totalorder %s922_s20, %s5270_s17  ;;  %p5278_p4 = scmp.lt.s32.totalorder %s922_s20, %s922_s20 }
 0x10c   : > { %p5279_p9 = scmp.lt.s32.totalorder %s5270_s17, %s5270_s17 }
 0x10d   : > { %p5273_p8 = pnand %p5271_p2, %p6566_p0 }
 0x10e   : > { %4707 = dma.hbm_to_vmem [thread:$0]  (!%p6567_p7), %s6569_s5, 512, %s898_s6, [#allocation23], %s5563_s10, %s5563_s10, %s5564_s9  }
 0x10f   : > { %p5274_p3 = pneg %p5273_p8  ;;  %p5280_p12 = por %p5279_p9, %p5278_p4 }
 0x111   : > { %p5281_p13 = pnand %p5280_p12, %p5274_p3 }
 0x113   : > { %5284 = shalt.err (!%p5281_p13)
}
 0x114   : > { %4713 = dma.hbm_to_vmem [thread:$0]  (!%p6567_p7), %s5694_s29, 512, %s922_s20, [#allocation26], %s5563_s10, %s5563_s10, %s5564_s9  }
 0x115   : > { %s5296_s6 = scalar_lea.vmem %s952_s4, 512  ;;  %p5304_p1 = scmp.lt.s32.totalorder %s952_s4, %s952_s4 }
 0x116   : > { %p5297_p6 = scmp.ne.s32.totalorder %s952_s4, %s5296_s6  ;;  %p5305_p10 = scmp.lt.s32.totalorder %s5296_s6, %s5296_s6 }
 0x118   : > { %p5299_p11 = pnand %p5297_p6, %p6566_p0  ;;  %p5306_p2 = por %p5305_p10, %p5304_p1 }
 0x11a   : > { %p5300_p5 = pneg %p5299_p11 }
 0x11c   : > { %p5307_p8 = pnand %p5306_p2, %p5300_p5 }
 0x11e   : > { %5310 = shalt.err (!%p5307_p8)
}
 0x11f   : > { %s6570_s23 = sld [smem:[#allocation68_spill]]  ;;  %s5571_s3 = smov [#allocation31]  }
 0x120   : > { %s967_s20 = sshll.u32 %s5571_s3, 4  ;;  %s4203_s8 = sshll.u32 %s5868_s26, 3  ;;  %s968_s20 = int_to_ptr.vmem [resolvable:$true] %s967_s20 }
 0x121   : > { %s5322_s17 = scalar_lea.vmem %s968_s20, 512  ;;  %p5330_p12 = scmp.lt.s32.totalorder %s968_s20, %s968_s20 }
 0x122   : > { %p5323_p3 = scmp.ne.s32.totalorder %s968_s20, %s5322_s17  ;;  %p5331_p13 = scmp.lt.s32.totalorder %s5322_s17, %s5322_s17 }
 0x124   : > { %p5325_p4 = pnand %p5323_p3, %p6566_p0  ;;  %p5332_p6 = por %p5331_p13, %p5330_p12 }
 0x125   : > { %4719 = dma.hbm_to_vmem [thread:$0]  (!%p6567_p7), %s6570_s23, 512, %s952_s4, [#allocation29], %s5563_s10, %s5563_s10, %s5564_s9  }
 0x126   : > { %p5326_p9 = pneg %p5325_p4 }
 0x128   : > { %p5333_p11 = pnand %p5332_p6, %p5326_p9 }
 0x12a   : > { %5336 = shalt.err (!%p5333_p11)
}
 0x12b   : > { %s6571_s4 = sld [smem:[#allocation49_spill]]  ;;  %s4204_s21 = sshll.u32 %s5523_s11, 7 }
 0x12c   : > { %4722 = dma.hbm_to_vmem [thread:$0]  (!%p6567_p7), %s5724_s13, 512, %s968_s20, [#allocation32], %s5563_s10, %s5563_s10, %s5564_s9  }
 0x12d   : > { %s996_s6 = scalar_lea.vmem [#allocation4], %s4203_s8  ;;  %s993_s17 = scalar_lea.sflag [#allocation5], %s5868_s26 }
 0x12e   : > { %s1003_s23 = sshll.u32 %s996_s6, 4  ;;  %p6572_p5 = scmp.ne.s32.totalorder %s6565_s24, 0  ;;  %s1004_s23 = int_to_ptr.vmem [resolvable:$true] %s1003_s23 }
 0x131   : > { %s1001_s3 = scalar_lea.hbm %s6571_s4, %s4204_s21  ;;  %s5342_s2 = scalar_lea.hbm %s6571_s4, 256 }
 0x132   : > { %s5337_s5 = scalar_lea.hbm %s1001_s3, 128  ;;  %p5343_p2 = scmp.lt.s32.totalorder %s1001_s3, %s6571_s4 }
 0x133   : > { %p5338_p0 = scmp.ne.s32.totalorder %s1001_s3, %s5337_s5  ;;  %p5344_p8 = scmp.lt.s32.totalorder %s5342_s2, %s5337_s5 }
 0x135   : > { %p5340_p1 = pnand %p5338_p0, %p6572_p5  ;;  %p5345_p3 = por %p5344_p8, %p5343_p2 }
 0x137   : > { %p5341_p10 = pneg %p5340_p1 }
 0x139   : > { %p5346_p4 = pnand %p5345_p3, %p5341_p10 }
 0x13b   : > { %5349 = shalt.err (!%p5346_p4)
}
 0x13c   : > { %s5350_s12 = scalar_lea.vmem %s1004_s23, 128  ;;  %s5572_s10 = smov [#allocation4]  }
 0x13d   : > { %p5351_p7 = scmp.ne.s32.totalorder %s1004_s23, %s5350_s12  ;;  %s5355_s9 = sshll.u32 %s5572_s10, 4  ;;  %s5356_s9 = int_to_ptr.vmem [resolvable:$false] %s5355_s9 }
 0x13e   : > { %s5357_s20 = scalar_lea.vmem %s5356_s9, 256  ;;  %p5358_p13 = scmp.lt.s32.totalorder %s1004_s23, %s5356_s9 }
 0x13f   : > { %p5353_p9 = pnand %p5351_p7, %p6572_p5  ;;  %p5359_p6 = scmp.lt.s32.totalorder %s5357_s20, %s5350_s12 }
 0x141   : > { %p5354_p12 = pneg %p5353_p9  ;;  %p5360_p11 = por %p5359_p6, %p5358_p13 }
 0x143   : > { %p5361_p0 = pnand %p5360_p11, %p5354_p12 }
 0x145   : > { %5364 = shalt.err (!%p5361_p0)
}
 0x146   : > { %p6573_p1 = scmp.ne.s32.totalorder %s6564_s25, 0  ;;  %s6574_s5 = sld [smem:[#allocation53_spill]] }
 0x147   : > { %s6575_s8 = sshll.u32 %s5523_s11, 4  ;;  %s1045_s6 = scalar_lea.vmem [#allocation9], %s5868_s26 }
 0x148   : > { %4726 = dma.hbm_to_vmem [thread:$0]  (!%p6573_p1), %s1001_s3, 128, %s1004_s23, %s993_s17  }
 0x149   : > { %s1052_s2 = sshll.u32 %s1045_s6, 4  ;;  %s1053_s2 = int_to_ptr.vmem [resolvable:$true] %s1052_s2 }
 0x14c   : > { %s1050_s21 = scalar_lea.hbm %s6574_s5, %s6575_s8  ;;  %s5370_s12 = scalar_lea.hbm %s6574_s5, 32 }
 0x14d   : > { %s5365_s10 = scalar_lea.hbm %s1050_s21, 16  ;;  %p5371_p3 = scmp.lt.s32.totalorder %s1050_s21, %s6574_s5 }
 0x14e   : > { %p5366_p10 = scmp.ne.s32.totalorder %s1050_s21, %s5365_s10  ;;  %p5372_p4 = scmp.lt.s32.totalorder %s5370_s12, %s5365_s10 }
 0x150   : > { %p5368_p2 = pnand %p5366_p10, %p6572_p5  ;;  %p5373_p7 = por %p5372_p4, %p5371_p3 }
 0x152   : > { %p5369_p8 = pneg %p5368_p2 }
 0x154   : > { %p5374_p9 = pnand %p5373_p7, %p5369_p8 }
 0x156   : > { %5377 = shalt.err (!%p5374_p9)
}
 0x157   : > { %s5378_s9 = scalar_lea.vmem %s1053_s2, 16  ;;  %s5573_s26 = smov [#allocation9]  }
 0x158   : > { %p5379_p12 = scmp.ne.s32.totalorder %s1053_s2, %s5378_s9  ;;  %s5383_s23 = sshll.u32 %s5573_s26, 4  ;;  %s5384_s23 = int_to_ptr.vmem [resolvable:$false] %s5383_s23 }
 0x159   : > { %s5385_s3 = scalar_lea.vmem %s5384_s23, 32  ;;  %p5386_p11 = scmp.lt.s32.totalorder %s1053_s2, %s5384_s23 }
 0x15a   : > { %p5381_p13 = pnand %p5379_p12, %p6572_p5  ;;  %p5387_p0 = scmp.lt.s32.totalorder %s5385_s3, %s5378_s9 }
 0x15c   : > { %p5382_p6 = pneg %p5381_p13  ;;  %p5388_p10 = por %p5387_p0, %p5386_p11 }
 0x15e   : > { %p5389_p2 = pnand %p5388_p10, %p5382_p6 }
 0x160   : > { %5392 = shalt.err (!%p5389_p2)
}
 0x161   : > { %4732 = dma.hbm_to_vmem [thread:$0]  (!%p6573_p1), %s1050_s21, 16, %s1053_s2, %s5886_s14  }
 0x162   : > { %p6576_p8 = scmp.ne.s32.totalorder %s6549_s22, 0 }
 0x163   : > { %s5999_s24 = sand.u32 (!%p6576_p8), 1, %s5515_s0   ;;  %p6577_p5 = scmp.ne.s32.totalorder (!%p6576_p8), %s6561_s28, 0 }
 0x164   : > { %1073 = sbr.rel (%p6576_p8) target bundleno = 4274 (0x10b2), region = 132  ;;  %s4208_s17 = sshll.u32 (!%p6576_p8), %s5999_s24, 3 }
 0x165   : > { %s1076_s20 = scalar_lea.sflag (!%p6576_p8), [#allocation5], %s5999_s24  ;;  %s6005_s8 = scalar_lea.vmem (!%p6576_p8), [#allocation4], %s4208_s17 }
 0x169   : > { %5462 = dma.done.wait (%p6577_p5), %s1076_s20, 128  }
 0x16a   : > { %5464 = vsyncadd (%p6577_p5), %s1076_s20, 4294967168  ;;  %s1084_s14 = sand.u32 1, %s5762_s18   ;;  %s1087_s25 = scalar_lea.vmem [#allocation7], %s5999_s24 }
 0x16b   : > { %s1085_s22 = scalar_lea.sflag [#allocation8], %s1084_s14 }
 0x16c   : > { %5466 = dma.done.wait (%p6577_p5), %s1085_s22, 32  }
 0x16d   : > { %5468 = vsyncadd (%p6577_p5), %s1085_s22, 4294967264  ;;  %s1095_s21 = scalar_lea.vmem [#allocation9], %s5999_s24  ;;  %p6578_p1 = scmp.eq.s32.totalorder %s5762_s18, 0 }
 0x16f   : > { %5470 = dma.done.wait (%p6578_p1), [#allocation11], 528   ;;  %p6579_p3 = pmov %p6578_p1 }
 0x170   : > { %p6580_p4 = pmov %p6578_p1 }
 0x171   : > { %5472 = vsyncadd (%p6579_p3), [#allocation11], 4294966768 }
 0x172   : > { %5474 = dma.done.wait (%p6580_p4), [#allocation14], 528   ;;  %p6581_p7 = pmov %p6578_p1 }
 0x173   : > { %p6582_p9 = pmov %p6578_p1 }
 0x174   : > { %5476 = vsyncadd (%p6581_p7), [#allocation14], 4294966768 }
 0x175   : > { %5478 = dma.done.wait (%p6582_p9), [#allocation17], 528   ;;  %p6583_p12 = pmov %p6578_p1 }
 0x176   : > { %p6584_p13 = pmov %p6578_p1 }
 0x177   : > { %5480 = vsyncadd (%p6583_p12), [#allocation17], 4294966768 }
 0x178   : > { %5482 = dma.done.wait (%p6584_p13), [#allocation20], 528   ;;  %p6585_p6 = pmov %p6578_p1 }
 0x179   : > { %p6586_p11 = pmov %p6578_p1 }
 0x17a   : > { %5484 = vsyncadd (%p6585_p6), [#allocation20], 4294966768 }
 0x17b   : > { %5486 = dma.done.wait (%p6586_p11), [#allocation23], 528   ;;  %p6587_p0 = pmov %p6578_p1 }
 0x17d   : > { %5488 = vsyncadd (%p6587_p0), [#allocation23], 4294966768  ;;  %p6588_p10 = pmov %p6587_p0 }
 0x17e   : > { %p6589_p2 = pmov %p6587_p0 }
 0x17f   : > { %5490 = dma.done.wait (%p6588_p10), [#allocation26], 528  }
 0x180   : > { %5492 = vsyncadd (%p6589_p2), [#allocation26], 4294966768  ;;  %p6590_p8 = pmov %p6587_p0 }
 0x181   : > { %p6591_p5 = pmov %p6587_p0 }
 0x182   : > { %5494 = dma.done.wait (%p6590_p8), [#allocation29], 528  }
 0x183   : > { %5496 = vsyncadd (%p6591_p5), [#allocation29], 4294966768  ;;  %p6592_p1 = pmov %p6587_p0 }
 0x184   : > { %p6593_p3 = pmov %p6587_p0 }
 0x185   : > { %5498 = dma.done.wait (%p6592_p1), [#allocation32], 512  }
 0x186   : > { %5500 = vsyncadd (%p6593_p3), [#allocation32], 4294966784  ;;  %s6594_s28 = sld [smem:[#allocation52_spill]]  ;;  %p1263_p4 = scmp.lt.s32.totalorder %s5762_s18, 1  ;;  %v5574_v0 = vmov 0   ;;  %v1436_v5 = vld [vmem:[#allocation12 + $0x18] sm:$0xff]  ;;  %v1319_v23 = vlaneseq }
 0x187   : > { %s6595_s6 = sld [smem:[#allocation50_spill]]  ;;  %4861 = vset.pattern.permute.xlu1 %v5574_v0  ;;  %4860 = vset.pattern.permute.xlu0 %v5574_v0  ;;  %v5575_v7 = vmov 0.0   ;;  %v1435_v8 = vld [vmem:[#allocation12 + $0x10] sm:$0xff]  ;;  %v1434_v9 = vld [vmem:[#allocation12 + $0x8] sm:$0xff]  ;;  %v1433_v11 = vld [vmem:[#allocation12] sm:$0xff]  ;;  %vm5576_vm0 = vmmov 0  }
 0x188   : > { %s6596_s2 = sld [smem:[#allocation55_spill]]  ;;  %4412 = vmatprep.subr.mxu1 %v5575_v7  ;;  %4401 = vmatprep.subr.mxu0 %v5575_v7  ;;  %v1616_v12 = vld [vmem:[#allocation21 + $0x18] sm:$0xff]  ;;  %v6088_v18 = vld [vmem:[%s6005_s8] sm:$0xff]  ;;  %vm1304_vm1 = vcmask 261120   ;;  %v1320_v30 = vshrl.u32 %v1319_v23, 7  ;;  %vm1795_vm2 = vcmask 64512  }
 0x189   : > { %s6597_s10 = sld [smem:[#allocation54_spill]]  ;;  %4413 = vmatpush3.msra.mxu1 %v1436_v5  ;;  %4420 = vmatprep.mubr.msk.f32.mxu1 %vm5576_vm0, %v5575_v7  ;;  %v1522_v16 = vld [vmem:[#allocation15 + $0x18] sm:$0xff]  ;;  %v1614_v49 = vld [vmem:[#allocation21 + $0x8] sm:$0xff]  ;;  %v1613_v52 = vld [vmem:[#allocation21] sm:$0xff]  ;;  %vm1894_vm5 = vcmask 130048   ;;  %vm2214_vm6 = vcmask 130112  }
 0x18a   : > { %s6054_s12 = scalar_select %p1263_p4, %s5762_s18, 1  ;;  %4414 = vmatprep.subr.mxu1 %v5575_v7  ;;  %4409 = vmatprep.mubr.msk.f32.mxu0 %vm5576_vm0, %v5575_v7  ;;  %v6107_v35 = vsub.s32 0, %v1320_v30  ;;  %v1615_v47 = vld [vmem:[#allocation21 + $0x10] sm:$0xff]  ;;  %v1520_v55 = vld [vmem:[#allocation15 + $0x8] sm:$0xff]  ;;  %v1519_v56 = vld [vmem:[#allocation15] sm:$0xff]  ;;  %vm2429_vm7 = vcmask 195712  }
 0x18b   : > { %s6598_s22 = sld [smem:[#allocation56_spill]]  ;;  %4415 = vmatpush3.msra.mxu1 %v1435_v8  ;;  %v1521_v54 = vld [vmem:[#allocation15 + $0x10] sm:$0xff]  ;;  %v1704_v57 = vld [vmem:[#allocation18 + $0x18] sm:$0xff]  ;;  %v1701_v60 = vld [vmem:[#allocation18] sm:$0xff]  ;;  %vm2644_vm8 = vcmask 261312   ;;  %p6608_p9 = scmp.ne.s32.totalorder %s6562_s15, 0 }
 0x18c   : > { %s4230_s9 = sshll.u32 %s6054_s12, 3  ;;  %s4296_s26 = sshll.u32 %s6054_s12, 4  ;;  %4416 = vmatprep.subr.mxu1 %v5575_v7  ;;  %v1703_v58 = vld [vmem:[#allocation18 + $0x10] sm:$0xff]  ;;  %v1702_v59 = vld [vmem:[#allocation18 + $0x8] sm:$0xff]  ;;  %v1437_v61 = vld [vmem:[#allocation13] sm:$0x1] }
 0x18d   : > { %s1276_s23 = scalar_lea.vmem %s6594_s28, %s4230_s9  ;;  %s1272_s3 = scalar_lea.vmem %s6595_s6, %s4296_s26  ;;  %4417 = vmatpush3.msra.mxu1 %v1434_v9 }
 0x18e   : > { %s1282_s20 = scalar_lea.vmem %s6596_s2, %s6054_s12  ;;  %v1289_v1 = vld [vmem:[%s1276_s23] sm:$0xff]  ;;  %v1287_v4 = vld [vmem:[%s1272_s3 + $0x8] sm:$0xff]  ;;  %4418 = vmatprep.subr.mxu1 %v5575_v7  ;;  %s6599_s28 = sld [smem:[#allocation48_spill]] }
 0x18f   : > { %v1286_v2 = vld [vmem:[%s1272_s3] sm:$0xff]  ;;  %1412 = vperm.xlu0 %4860, %v1289_v1   ;;  %s1279_s14 = scalar_lea.vmem %s6597_s10, %s6054_s12  ;;  %4419 = vmatpush3.msra.mxu1 %v1433_v11  ;;  %v4236_v11 = vld [vmem:[#allocation22] ss:$0 sm:$0xff]  ;;  %s5578_s2 = smov 112  }
 0x190   : > { %1294 = vperm.xlu1 %4861, %v1286_v2   ;;  %v1409_v3 = vld [vmem:[%s1282_s20] sm:$0x1]  ;;  %4434 = vmatprep.subr.mxu1 %v1616_v12  ;;  %s5579_s10 = smov 104   ;;  %s5580_s12 = smov 8  }
 0x191   : > { %v1291_v6 = vld [vmem:[%s1279_s14] sm:$0x1]  ;;  %v1327_v10 = vld [vmem:[%s6598_s22 + $0x18] sm:$0xff]  ;;  %v1326_v13 = vld [vmem:[%s6598_s22 + $0x10] sm:$0xff]  ;;  %s5581_s9 = smov 16   ;;  %s6602_s23 = sld [smem:[#allocation66_spill]] }
 0x192   : > { %4402 = vmatpush3.msra.mxu0 %v1327_v10  ;;  %v1325_v14 = vld [vmem:[%s6598_s22 + $0x8] sm:$0xff]  ;;  %v1324_v15 = vld [vmem:[%s6598_s22] sm:$0xff]  ;;  %s6603_s3 = sld [smem:[#allocation69_spill]]  ;;  %s4224_s14 = sshll.u32 %s5999_s24, 4 }
 0x193   : > { %1425 = vperm.xlu0 %4860, %v1409_v3   ;;  %4403 = vmatprep.subr.mxu0 %v5575_v7  ;;  %s6604_s20 = sld [smem:[#allocation67_spill]] }
 0x194   : > { %1299 = vperm.xlu1 %4861, %v1287_v4   ;;  %4404 = vmatpush3.msra.mxu0 %v1326_v13  ;;  %s1267_s6 = scalar_lea.vmem %s6599_s28, %s4296_s26  ;;  %s5582_s26 = smov 24  }
 0x195   : > { %4405 = vmatprep.subr.mxu0 %v5575_v7  ;;  %v6085_v17 = vld [vmem:[%s1267_s6] sm:$0xff]  ;;  %v6098_v24 = vld [vmem:[%s1267_s6 + $0x8] sm:$0xff]  ;;  %s6375_s28 = scalar_lea.vmem [#allocation33], %s4224_s14 }
 0x196   : > { %4406 = vmatpush3.msra.mxu0 %v1325_v14  ;;  %s3804_s6 = sshll.u32 %s6375_s28, 4  ;;  %s6434_s6 = int_to_ptr.vmem [resolvable:$true] %s3804_s6 }
 0x197   : > { %1316 = vperm.xlu0 %4860, %v1291_v6   ;;  %4407 = vmatprep.subr.mxu0 %v5575_v7  ;;  %v4233_v6 = vld [vmem:[#allocation16] ss:$0 sm:$0xff] }
 0x198   : > { %4408 = vmatpush3.msra.mxu0 %v1324_v15 }
 0x199   : > { %4423 = vmatprep.subr.mxu0 %v1522_v16 }
 0x20a   : > { %v6090_v19 = vpop.permute.xlu0 %1412 }
 0x20b   : > { %v6092_v20 = vpop.permute.xlu1 %1294  ;;  %v1415_v21 = vmul.f32 %v6090_v19, %v6088_v18 }
 0x20c   : > { %v1302_v22 = vmul.f32 %v6092_v20, %v6085_v17 }
 0x20d   : > { %v1416_v25 = vsel %vm1304_vm1, %v1415_v21, 0.0 }
 0x20e   : > { %v1417_v26 = vrot.slane %v1416_v25, 4  ;;  %v1305_v28 = vsel %vm1304_vm1, %v1302_v22, 0.0  ;;  %v1426_v38 = vpop.permute.xlu0 %1425 }
 0x20f   : > { %v6101_v27 = vpop.permute.xlu1 %1299  ;;  %v1431_v42 = vrot.slane %v1426_v38, %v6107_v35 }
 0x210   : > { %v1303_v29 = vmul.f32 %v6101_v27, %v6098_v24  ;;  %v1418_v31 = vadd.f32 %v1417_v26, %v1416_v25  ;;  %v4239_v26 = vld [vmem:[#allocation19] ss:$0 sm:$0xff] }
 0x212   : > { %v1306_v32 = vsel %vm1304_vm1, %v1303_v29, 0.0  ;;  %v1419_v33 = vrot.slane %v1418_v31, 2  ;;  %v1317_v46 = vpop.permute.xlu0 %1316 }
 0x213   : > { %v1307_v34 = vadd.f32 %v1306_v32, %v1305_v28  ;;  %v1322_v51 = vrot.slane %v1317_v46, %v6107_v35 }
 0x214   : > { %v1420_v36 = vadd.f32 %v1419_v33, %v1418_v31 }
 0x215   : > { %v1308_v37 = vrot.slane %v1307_v34, 4 }
 0x216   : > { %v1421_v39 = vrot.slane %v1420_v36, 1 }
 0x217   : > { %v1309_v40 = vadd.f32 %v1308_v37, %v1307_v34 }
 0x218   : > { %v1422_v41 = vadd.f32 %v1421_v39, %v1420_v36 }
 0x219   : > { %v1310_v43 = vrot.slane %v1309_v40, 2 }
 0x21a   : > { %v1432_v44 = vmul.f32 %v1431_v42, %v1422_v41 }
 0x21b   : > { %v1311_v45 = vadd.f32 %v1310_v43, %v1309_v40 }
 0x21c   : > { %4421 = vmatmul.mubr.msk.f32.vlgmr.msra.gmra.mxu1 %vm1304_vm1, %v1432_v44 }
 0x21d   : > { %v1312_v48 = vrot.slane %v1311_v45, 1  ;;  %4435 = vmatpush3.msra.mxu1 %v1616_v12  ;;  %4442 = vmatprep.mubr.msk.f32.mxu1 %vm1304_vm1, %v6085_v17 }
 0x21e   : > { %4436 = vmatprep.subr.mxu1 %v1615_v47 }
 0x21f   : > { %v1313_v50 = vadd.f32 %v1312_v48, %v1311_v45  ;;  %4437 = vmatpush3.msra.mxu1 %v1615_v47 }
 0x220   : > { %4438 = vmatprep.subr.mxu1 %v1614_v49 }
 0x221   : > { %v1323_v53 = vmul.f32 %v1322_v51, %v1313_v50  ;;  %4439 = vmatpush3.msra.mxu1 %v1614_v49 }
 0x222   : > { %4440 = vmatprep.subr.mxu1 %v1613_v52 }
 0x223   : > { %4410 = vmatmul.mubr.msk.f32.vlgmr.msra.gmra.mxu0 %vm1304_vm1, %v1323_v53  ;;  %4441 = vmatpush3.msra.mxu1 %v1613_v52 }
 0x224   : > { %4424 = vmatpush3.msra.mxu0 %v1522_v16  ;;  %4443 = vmatmul.mubr.msk.f32.vlgmr.msra.gmra.mxu1 %vm1304_vm1, %v6098_v24 }
 0x225   : > { %4425 = vmatprep.subr.mxu0 %v1521_v54  ;;  %4431 = vmatprep.mubr.msk.f32.mxu0 %vm1304_vm1, %v6085_v17 }
 0x226   : > { %4426 = vmatpush3.msra.mxu0 %v1521_v54 }
 0x227   : > { %4427 = vmatprep.subr.mxu0 %v1520_v55 }
 0x228   : > { %4428 = vmatpush3.msra.mxu0 %v1520_v55 }
 0x229   : > { %4429 = vmatprep.subr.mxu0 %v1519_v56 }
 0x22a   : > { %4430 = vmatpush3.msra.mxu0 %v1519_v56 }
 0x22b   : > { %4432 = vmatmul.mubr.msk.f32.vlgmr.msra.gmra.mxu0 %vm1304_vm1, %v6098_v24  ;;  %4445 = vmatprep.subr.mxu0 %v1704_v57 }
 0x22c   : > { %4446 = vmatpush3.msra.mxu0 %v1704_v57  ;;  %4453 = vmatprep.mubr.msk.f32.mxu0 %vm1304_vm1, %v6085_v17 }
 0x22d   : > { %4447 = vmatprep.subr.mxu0 %v1703_v58 }
 0x22e   : > { %4448 = vmatpush3.msra.mxu0 %v1703_v58 }
 0x22f   : > { %4449 = vmatprep.subr.mxu0 %v1702_v59 }
 0x230   : > { %4450 = vmatpush3.msra.mxu0 %v1702_v59 }
 0x231   : > { %4451 = vmatprep.subr.mxu0 %v1701_v60 }
 0x232   : > { %4452 = vmatpush3.msra.mxu0 %v1701_v60 }
 0x233   : > { %4454 = vmatmul.mubr.msk.f32.vlgmr.msra.gmra.mxu0 %vm1304_vm1, %v6098_v24 }
 0x2dc   : > { %v1507_v62 = vpop.f32.mrf.mxu1 }
 0x2dd   : > { %v1508_v63 = vadd.f32 %v1507_v62, %v1437_v61 }
 0x2de   : > { %v4422_v1 = vpop.f32.mrf.mxu1 }
 0x2df   : > { %v1511_v2 = vsub.f32 0.0, %v1508_v63 }
 0x2e1   : > { %v1512_v3 = vmul.f32 1.442695, %v1511_v2 }
 0x2e3   : > { %v6125_v4 = vpop.f32.mrf.mxu0  ;;  %4862 = vpow2.f32 %v1512_v3 }
 0x2e4   : > { %v4444_v10 = vpop.f32.mrf.mxu1 }
 0x2e5   : > { %v4411_v5 = vpop.f32.mrf.mxu0  ;;  %v1696_v15 = vadd.f32 %v4444_v10, %v4236_v11 }
 0x2e6   : > { %v1690_v33 = vpop.f32.mrf.mxu1 }
 0x2e7   : > { %v6140_v23 = vmul.f32 %v1696_v15, %v6101_v27  ;;  %v1691_v39 = vadd.f32 %v4236_v11, %v1690_v33 }
 0x2e9   : > { %v6159_v42 = vmul.f32 %v1691_v39, %v6092_v20 }
 0x2eb   : > { %v4433_v8 = vpop.f32.mrf.mxu0 }
 0x2ec   : > { %v1608_v9 = vadd.f32 %v4433_v8, %v4233_v6 }
 0x2ed   : > { %v1602_v12 = vpop.f32.mrf.mxu0 }
 0x2ee   : > { %v6128_v13 = vmul.f32 %v1608_v9, %v6101_v27  ;;  %v1603_v14 = vadd.f32 %v4233_v6, %v1602_v12 }
 0x2f0   : > { %v6131_v16 = vmul.f32 %v1603_v14, %v6092_v20  ;;  %4456 = vmatprep.subr.msk.mxu1 %vm1795_vm2, %v6128_v13  ;;  %v4863_v21 = vpop.eup %4862 }
 0x2f1   : > { %4457 = vmatpush3.xpose.msk.msra.mxu1 %vm1795_vm2, %v6128_v13  ;;  %v1514_v22 = vadd.f32 1.0, %v4863_v21 }
 0x2f2   : > { %4458 = vmatprep.subr.msk.mxu1 %vm1795_vm2, %v6131_v16 }
 0x2f3   : > { %4864 = vrcp.f32 %v1514_v22  ;;  %v4455_v25 = vpop.f32.mrf.mxu0 }
 0x2f4   : > { %v1784_v31 = vadd.f32 %v4455_v25, %v4239_v26 }
 0x2f5   : > { %4459 = vmatpush3.xpose.msk.msra.mxu1 %vm1795_vm2, %v6131_v16  ;;  %v1778_v28 = vpop.f32.mrf.mxu0 }
 0x2f6   : > { %4463 = vmatprep.subr.mxu1 %v6140_v23  ;;  %v1779_v32 = vadd.f32 %v4239_v26, %v1778_v28  ;;  %v1788_v36 = vmul.f32 %v1784_v31, %v6101_v27  ;;  %v1288_v27 = vld [vmem:[%s1087_s25] sm:$0x1]  ;;  %s5577_s25 = smov 120  }
 0x2f7   : > { %vm1885_vm3 = vcmp.eq.f32.partialorder %v1288_v27, 0.0 }
 0x2f8   : > { %v1787_v38 = vmul.f32 %v1779_v32, %v6092_v20  ;;  %v1886_v43 = vsel %vm1885_vm3, 1, %v5574_v0 }
 0x2f9   : > { %v1890_v44 = vrot.slane %v1886_v43, %v6107_v35 }
 0x2fb   : > { %vm6170_vm4 = vcmp.eq.s32.totalorder %v1890_v44, 1 }
 0x300   : > { %v4865_v29 = vpop.eup %4864 }
 0x301   : > { %v6145_v30 = vadd.f32 1.0, %v4865_v29 }
 0x303   : > { %v1518_v34 = vmul.f32 %v6145_v30, %v6145_v30 }
 0x305   : > { %v1792_v37 = vrot.slane %v1518_v34, %v6107_v35 }
 0x307   : > { %v6152_v40 = vmul.f32 %v1792_v37, %v1788_v36  ;;  %v6154_v41 = vmul.f32 %v1792_v37, %v1787_v38 }
 0x309   : > { %4460 = vmatprep.mubr.msk.f32.mxu1 %vm1795_vm2, %v6154_v41 }
 0x30a   : > { %4461 = vmatmul.mubr.msk.f32.vlgmr.msra.gmra.mxu1 %vm1795_vm2, %v6152_v40 }
 0x30b   : > { %4464 = vmatpush3.msra.mxu1 %v6140_v23 }
 0x30c   : > { %4465 = vmatprep.subr.mxu1 %v6159_v42 }
 0x30d   : > { %4466 = vmatpush3.msra.mxu1 %v6159_v42 }
 0x3ca   : > { %v4462_v20 = vpop.f32.mrf.mxu1 }
 0x3cb   : > { %v1884_v46 = vmul.f32 0.35355338, %v4462_v20 }
 0x3cc   : > { %v1874_v47 = vpop.f32.mrf.mxu1 }
 0x3cd   : > { %v1883_v48 = vmul.f32 0.35355338, %v1874_v47  ;;  %v1893_v49 = vsel %vm6170_vm4, -1e+30, %v1884_v46 }
 0x3ce   : > { %v1898_v50 = vsel %vm1894_vm5, %v1893_v49, -inf }
 0x3cf   : > { %1899 = vmax.xlane.f32.xlu0 %v1898_v50  ;;  %v1892_v51 = vsel %vm6170_vm4, -1e+30, %v1883_v48 }
 0x3d0   : > { %v1895_v52 = vsel %vm1894_vm5, %v1892_v51, -inf }
 0x3d1   : > { %1896 = vmax.xlane.f32.xlu1 %v1895_v52 }
 0x458   : > { %v1900_v53 = vpop.xlane.xlu0 %1899 }
 0x459   : > { %v1902_v54 = vsub.f32 %v1893_v49, %v1900_v53 }
 0x45a   : > { %v1897_v55 = vpop.xlane.xlu1 %1896 }
 0x45b   : > { %v1905_v56 = vmul.f32 1.442695, %v1902_v54  ;;  %v1901_v57 = vsub.f32 %v1892_v51, %v1897_v55 }
 0x45d   : > { %4866 = vpow2.f32 %v1905_v56  ;;  %v1903_v58 = vmul.f32 1.442695, %v1901_v57 }
 0x45f   : > { %4868 = vpow2.f32 %v1903_v58 }
 0x46a   : > { %v4867_v59 = vpop.eup %4866 }
 0x46b   : > { %v1910_v60 = vsel %vm1894_vm5, %v4867_v59, 0.0 }
 0x46c   : > { %v4869_v61 = vpop.eup %4868  ;;  %1911 = vadd.xlane.f32.xlu1 %v1910_v60 }
 0x46d   : > { %v1907_v62 = vsel %vm1894_vm5, %v4869_v61, 0.0 }
 0x46e   : > { %1908 = vadd.xlane.f32.xlu0 %v1907_v62 }
 0x47d   : > { %2004 = vrot.lane.b32.xlu1 %v6131_v16, %s5577_s25 }
 0x481   : > { %2000 = vrot.lane.b32.xlu1 %v6154_v41, %s5577_s25 }
 0x484   : > { %2006 = vrot.lane.b32.xlu0 %v6128_v13, %s5577_s25 }
 0x488   : > { %2002 = vrot.lane.b32.xlu0 %v6152_v40, %s5577_s25 }
 0x4f5   : > { %v1912_v63 = vpop.xlane.xlu1 %1911 }
 0x4f6   : > { %4870 = vrcp.f32 %v1912_v63 }
 0x4f7   : > { %v1909_v1 = vpop.xlane.xlu0 %1908 }
 0x4f8   : > { %4872 = vrcp.f32 %v1909_v1 }
 0x4f9   : > { %v2005_v3 = vpop.permute.xlu1 %2004 }
 0x4fb   : > { %v2007_v2 = vpop.permute.xlu0 %2006 }
 0x4fc   : > { %4470 = vmatprep.subr.msk.mxu1 %vm1795_vm2, %v2007_v2 }
 0x4fd   : > { %v2001_v10 = vpop.permute.xlu1 %2000 }
 0x4ff   : > { %v2003_v11 = vpop.permute.xlu0 %2002 }
 0x503   : > { %v4871_v5 = vpop.eup %4870 }
 0x504   : > { %v1916_v9 = vmul.f32 %v4871_v5, %v4867_v59 }
 0x505   : > { %v4873_v6 = vpop.eup %4872 }
 0x506   : > { %v1915_v8 = vmul.f32 %v4873_v6, %v4869_v61 }
 0x508   : > { %4467 = vmatprep.mubr.msk.f32.mxu1 %vm1894_vm5, %v1915_v8 }
 0x509   : > { %4468 = vmatmul.mubr.msk.f32.vlgmr.msra.gmra.mxu1 %vm1894_vm5, %v1916_v9 }
 0x50a   : > { %4471 = vmatpush3.xpose.msk.msra.mxu1 %vm1795_vm2, %v2007_v2  ;;  %4474 = vmatprep.mubr.msk.f32.mxu1 %vm1795_vm2, %v2001_v10 }
 0x50b   : > { %4472 = vmatprep.subr.msk.mxu1 %vm1795_vm2, %v2005_v3 }
 0x50e   : > { %4473 = vmatpush3.xpose.msk.msra.mxu1 %vm1795_vm2, %v2005_v3 }
 0x511   : > { %4475 = vmatmul.mubr.msk.f32.vlgmr.msra.gmra.mxu1 %vm1795_vm2, %v2003_v11 }
 0x5c9   : > { %v4469_v12 = vpop.f32.mrf.mxu1 }
 0x5ca   : > { %1999 = vst.msk [vmem:[#allocation2 + $0x8] sm:$0xff] %vm1795_vm2, %v4469_v12 }
 0x5cb   : > { %v1989_v14 = vpop.f32.mrf.mxu1 }
 0x5cc   : > { %1998 = vst.msk [vmem:[#allocation2] sm:$0xff] %vm1795_vm2, %v1989_v14 }
 0x5d1   : > { %v4476_v15 = vpop.f32.mrf.mxu1 }
 0x5d2   : > { %v2092_v21 = vmul.f32 0.35355338, %v4476_v15 }
 0x5d3   : > { %v2082_v22 = vpop.f32.mrf.mxu1 }
 0x5d4   : > { %v2091_v25 = vmul.f32 0.35355338, %v2082_v22  ;;  %v2094_v26 = vsel %vm6170_vm4, -1e+30, %v2092_v21 }
 0x5d5   : > { %v2098_v28 = vsel %vm1894_vm5, %v2094_v26, -inf }
 0x5d6   : > { %2099 = vmax.xlane.f32.xlu0 %v2098_v28  ;;  %v2093_v29 = vsel %vm6170_vm4, -1e+30, %v2091_v25 }
 0x5d7   : > { %v2095_v31 = vsel %vm1894_vm5, %v2093_v29, -inf }
 0x5d8   : > { %2096 = vmax.xlane.f32.xlu1 %v2095_v31 }
 0x65f   : > { %v2100_v32 = vpop.xlane.xlu0 %2099 }
 0x660   : > { %v2102_v33 = vsub.f32 %v2094_v26, %v2100_v32 }
 0x661   : > { %v2097_v34 = vpop.xlane.xlu1 %2096 }
 0x662   : > { %v2105_v36 = vmul.f32 1.442695, %v2102_v33  ;;  %v2101_v37 = vsub.f32 %v2093_v29, %v2097_v34  ;;  %v2755_v33 = vld [vmem:[#allocation24 + $0x18] sm:$0xff] }
 0x664   : > { %4874 = vpow2.f32 %v2105_v36  ;;  %v2103_v38 = vmul.f32 1.442695, %v2101_v37  ;;  %v2754_v36 = vld [vmem:[#allocation24 + $0x10] sm:$0xff]  ;;  %v2753_v37 = vld [vmem:[#allocation24 + $0x8] sm:$0xff] }
 0x666   : > { %4876 = vpow2.f32 %v2103_v38  ;;  %v2752_v38 = vld [vmem:[#allocation24] sm:$0xff] }
 0x671   : > { %v4875_v39 = vpop.eup %4874 }
 0x672   : > { %v2110_v27 = vsel %vm1894_vm5, %v4875_v39, 0.0 }
 0x673   : > { %v4877_v43 = vpop.eup %4876  ;;  %2111 = vadd.xlane.f32.xlu1 %v2110_v27  ;;  %v2921_v27 = vld [vmem:[#allocation27 + $0x10] sm:$0xff] }
 0x674   : > { %v2107_v44 = vsel %vm1894_vm5, %v4877_v43, 0.0 }
 0x675   : > { %2108 = vadd.xlane.f32.xlu0 %v2107_v44  ;;  %v2919_v44 = vld [vmem:[#allocation27] sm:$0xff] }
 0x684   : > { %2119 = vrot.lane.b32.xlu1 %v6159_v42, %s5577_s25 }
 0x688   : > { %2223 = vrot.lane.b32.xlu1 %v6128_v13, %s5578_s2 }
 0x68b   : > { %2121 = vrot.lane.b32.xlu0 %v6140_v23, %s5577_s25 }
 0x68c   : > { %2217 = vrot.lane.b32.xlu1 %v6154_v41, %s5578_s2 }
 0x68f   : > { %2221 = vrot.lane.b32.xlu0 %v6131_v16, %s5578_s2 }
 0x693   : > { %2219 = vrot.lane.b32.xlu0 %v6152_v40, %s5578_s2 }
 0x6fc   : > { %v2112_v20 = vpop.xlane.xlu1 %2111 }
 0x6fd   : > { %4878 = vrcp.f32 %v2112_v20  ;;  %v1328_v20 = vld [vmem:[#allocation10] sm:$0x1] }
 0x6fe   : > { %v2109_v46 = vpop.xlane.xlu0 %2108 }
 0x6ff   : > { %4880 = vrcp.f32 %v2109_v46  ;;  %v1399_v46 = vadd.f32 %v6125_v4, %v1328_v20 }
 0x700   : > { %v2120_v47 = vpop.permute.xlu1 %2119 }
 0x702   : > { %v2122_v48 = vpop.permute.xlu0 %2121 }
 0x703   : > { %4477 = vmatprep.subr.mxu0 %v2122_v48 }
 0x704   : > { %4478 = vmatpush3.msra.mxu0 %v2122_v48  ;;  %v2224_v49 = vpop.permute.xlu1 %2223 }
 0x705   : > { %4479 = vmatprep.subr.mxu0 %v2120_v47 }
 0x706   : > { %4480 = vmatpush3.msra.mxu0 %v2120_v47  ;;  %v2222_v55 = vpop.permute.xlu0 %2221  ;;  %v1402_v47 = vsub.f32 0.0, %v1399_v46 }
 0x707   : > { %4484 = vmatprep.subr.msk.mxu0 %vm1795_vm2, %v2224_v49 }
 0x708   : > { %v2218_v54 = vpop.permute.xlu1 %2217  ;;  %v1403_v48 = vmul.f32 1.442695, %v1402_v47 }
 0x70a   : > { %v4879_v50 = vpop.eup %4878  ;;  %v2220_v56 = vpop.permute.xlu0 %2219 }
 0x70b   : > { %v2116_v53 = vmul.f32 %v4879_v50, %v4875_v39  ;;  %v2922_v39 = vld [vmem:[#allocation27 + $0x18] sm:$0xff] }
 0x70c   : > { %v4881_v51 = vpop.eup %4880 }
 0x70d   : > { %v2115_v52 = vmul.f32 %v4881_v51, %v4877_v43  ;;  %v2920_v43 = vld [vmem:[#allocation27 + $0x8] sm:$0xff] }
 0x70f   : > { %4481 = vmatprep.mubr.msk.f32.mxu0 %vm1894_vm5, %v2115_v52 }
 0x710   : > { %4482 = vmatmul.mubr.msk.f32.vlgmr.msra.gmra.mxu0 %vm1894_vm5, %v2116_v53 }
 0x711   : > { %4485 = vmatpush3.xpose.msk.msra.mxu0 %vm1795_vm2, %v2224_v49  ;;  %4488 = vmatprep.mubr.msk.f32.mxu0 %vm1795_vm2, %v2218_v54 }
 0x712   : > { %4486 = vmatprep.subr.msk.mxu0 %vm1795_vm2, %v2222_v55 }
 0x715   : > { %4487 = vmatpush3.xpose.msk.msra.mxu0 %vm1795_vm2, %v2222_v55 }
 0x718   : > { %4489 = vmatmul.mubr.msk.f32.vlgmr.msra.gmra.mxu0 %vm1795_vm2, %v2220_v56 }
 0x7d0   : > { %v6228_v57 = vpop.f32.mrf.mxu0 }
 0x7d2   : > { %v6230_v58 = vpop.f32.mrf.mxu0 }
 0x7d8   : > { %v4490_v59 = vpop.f32.mrf.mxu0 }
 0x7d9   : > { %v2309_v60 = vmul.f32 0.35355338, %v4490_v59 }
 0x7da   : > { %v2299_v61 = vpop.f32.mrf.mxu0 }
 0x7db   : > { %v2308_v62 = vmul.f32 0.35355338, %v2299_v61  ;;  %v2311_v63 = vsel %vm6170_vm4, -1e+30, %v2309_v60 }
 0x7dc   : > { %v2315_v1 = vsel %vm1894_vm5, %v2311_v63, -inf }
 0x7dd   : > { %2316 = vmax.xlane.f32.xlu0 %v2315_v1  ;;  %v2310_v2 = vsel %vm6170_vm4, -1e+30, %v2308_v62 }
 0x7de   : > { %v2312_v3 = vsel %vm1894_vm5, %v2310_v2, -inf }
 0x7df   : > { %2313 = vmax.xlane.f32.xlu1 %v2312_v3  ;;  %v4273_v3 = vld [vmem:[#allocation28] ss:$0 sm:$0xff] }
 0x866   : > { %v2317_v5 = vpop.xlane.xlu0 %2316 }
 0x867   : > { %v2319_v6 = vsub.f32 %v2311_v63, %v2317_v5 }
 0x868   : > { %v2314_v8 = vpop.xlane.xlu1 %2313 }
 0x869   : > { %v2322_v9 = vmul.f32 1.442695, %v2319_v6  ;;  %v2318_v10 = vsub.f32 %v2310_v2, %v2314_v8 }
 0x86b   : > { %4882 = vpow2.f32 %v2322_v9  ;;  %v2320_v11 = vmul.f32 1.442695, %v2318_v10 }
 0x86d   : > { %4884 = vpow2.f32 %v2320_v11 }
 0x878   : > { %v4883_v12 = vpop.eup %4882 }
 0x879   : > { %v2327_v14 = vsel %vm1894_vm5, %v4883_v12, 0.0 }
 0x87a   : > { %v4885_v15 = vpop.eup %4884  ;;  %2328 = vadd.xlane.f32.xlu1 %v2327_v14 }
 0x87b   : > { %v2324_v21 = vsel %vm1894_vm5, %v4885_v15, 0.0 }
 0x87c   : > { %2325 = vadd.xlane.f32.xlu0 %v2324_v21 }
 0x88b   : > { %2334 = vrot.lane.b32.xlu1 %v6159_v42, %s5578_s2 }
 0x88f   : > { %2438 = vrot.lane.b32.xlu1 %v6128_v13, %s5579_s10 }
 0x892   : > { %2336 = vrot.lane.b32.xlu0 %v6140_v23, %s5578_s2 }
 0x893   : > { %2432 = vrot.lane.b32.xlu1 %v6154_v41, %s5579_s10 }
 0x896   : > { %2436 = vrot.lane.b32.xlu0 %v6131_v16, %s5579_s10 }
 0x89a   : > { %2434 = vrot.lane.b32.xlu0 %v6152_v40, %s5579_s10 }
 0x903   : > { %v2329_v22 = vpop.xlane.xlu1 %2328 }
 0x904   : > { %4886 = vrcp.f32 %v2329_v22 }
 0x905   : > { %v2326_v25 = vpop.xlane.xlu0 %2325 }
 0x906   : > { %4888 = vrcp.f32 %v2326_v25 }
 0x907   : > { %v2335_v26 = vpop.permute.xlu1 %2334  ;;  %4890 = vpow2.f32 %v1403_v48 }
 0x909   : > { %v2337_v28 = vpop.permute.xlu0 %2336 }
 0x90a   : > { %4491 = vmatprep.subr.mxu1 %v2337_v28 }
 0x90b   : > { %4492 = vmatpush3.msra.mxu1 %v2337_v28  ;;  %v2439_v13 = vpop.permute.xlu1 %2438 }
 0x90c   : > { %4493 = vmatprep.subr.mxu1 %v2335_v26 }
 0x90d   : > { %4494 = vmatpush3.msra.mxu1 %v2335_v26  ;;  %v2437_v32 = vpop.permute.xlu0 %2436 }
 0x90e   : > { %4498 = vmatprep.subr.msk.mxu1 %vm1795_vm2, %v2439_v13 }
 0x90f   : > { %v2433_v40 = vpop.permute.xlu1 %2432 }
 0x911   : > { %v4887_v41 = vpop.eup %4886  ;;  %v2435_v34 = vpop.permute.xlu0 %2434 }
 0x912   : > { %v2333_v16 = vmul.f32 %v4887_v41, %v4883_v12 }
 0x913   : > { %v4889_v29 = vpop.eup %4888 }
 0x914   : > { %v2332_v31 = vmul.f32 %v4889_v29, %v4885_v15  ;;  %v4891_v49 = vpop.eup %4890 }
 0x915   : > { %v1405_v50 = vadd.f32 1.0, %v4891_v49 }
 0x916   : > { %4495 = vmatprep.mubr.msk.f32.mxu1 %vm1894_vm5, %v2332_v31 }
 0x917   : > { %4496 = vmatmul.mubr.msk.f32.vlgmr.msra.gmra.mxu1 %vm1894_vm5, %v2333_v16  ;;  %4892 = vrcp.f32 %v1405_v50 }
 0x918   : > { %4499 = vmatpush3.xpose.msk.msra.mxu1 %vm1795_vm2, %v2439_v13  ;;  %4502 = vmatprep.mubr.msk.f32.mxu1 %vm1795_vm2, %v2433_v40 }
 0x919   : > { %4500 = vmatprep.subr.msk.mxu1 %vm1795_vm2, %v2437_v32 }
 0x91c   : > { %4501 = vmatpush3.xpose.msk.msra.mxu1 %vm1795_vm2, %v2437_v32 }
 0x91d   : > { %4523 = vmatprep.subr.mxu1 %v5575_v7 }
 0x91f   : > { %4503 = vmatmul.mubr.msk.f32.vlgmr.msra.gmra.mxu1 %vm1795_vm2, %v2435_v34 }
 0x920   : > { %4524 = vmatpush3.msra.mxu1 %v2755_v33  ;;  %4531 = vmatprep.mubr.msk.f32.mxu1 %vm5576_vm0, %v5575_v7 }
 0x921   : > { %4525 = vmatprep.subr.mxu1 %v5575_v7 }
 0x922   : > { %4526 = vmatpush3.msra.mxu1 %v2754_v36 }
 0x923   : > { %4527 = vmatprep.subr.mxu1 %v5575_v7 }
 0x924   : > { %4528 = vmatpush3.msra.mxu1 %v2753_v37  ;;  %v4893_v62 = vpop.eup %4892  ;;  %v2660_v37 = vld [vmem:[#allocation30 + $0x18] sm:$0xff] }
 0x925   : > { %4529 = vmatprep.subr.mxu1 %v5575_v7  ;;  %v6288_v2 = vadd.f32 1.0, %v4893_v62 }
 0x926   : > { %4530 = vmatpush3.msra.mxu1 %v2752_v38  ;;  %v2659_v38 = vld [vmem:[#allocation30 + $0x10] sm:$0xff] }
 0x927   : > { %4532 = vmatmul.mubr.msk.f32.vlgmr.msra.gmra.mxu1 %vm1304_vm1, %v6088_v18  ;;  %4545 = vmatprep.subr.mxu1 %v5575_v7  ;;  %v2751_v5 = vmul.f32 %v6288_v2, %v6288_v2 }
 0x928   : > { %4546 = vmatpush3.msra.mxu1 %v2922_v39  ;;  %4553 = vmatprep.mubr.msk.f32.mxu1 %vm5576_vm0, %v5575_v7  ;;  %v2658_v39 = vld [vmem:[#allocation30 + $0x8] sm:$0xff] }
 0x929   : > { %4547 = vmatprep.subr.mxu1 %v5575_v7  ;;  %v3004_v45 = vrot.slane %v2751_v5, %v6107_v35 }
 0x92a   : > { %4548 = vmatpush3.msra.mxu1 %v2921_v27  ;;  %v4269_v27 = vld [vmem:[#allocation25] ss:$0 sm:$0xff] }
 0x92b   : > { %4549 = vmatprep.subr.mxu1 %v5575_v7 }
 0x92c   : > { %4550 = vmatpush3.msra.mxu1 %v2920_v43  ;;  %v2657_v43 = vld [vmem:[#allocation30] sm:$0xff] }
 0x92d   : > { %4551 = vmatprep.subr.mxu1 %v5575_v7 }
 0x92e   : > { %4552 = vmatpush3.msra.mxu1 %v2919_v44 }
 0x92f   : > { %4554 = vmatmul.mubr.msk.f32.vlgmr.msra.gmra.mxu1 %vm1304_vm1, %v6088_v18  ;;  %4561 = vmatprep.subr.mxu1 %v5575_v7 }
 0x930   : > { %4563 = vmatprep.mubr.msk.f32.mxu1 %vm5576_vm0, %v5575_v7 }
 0x9d7   : > { %v4497_v51 = vpop.f32.mrf.mxu1 }
 0x9d9   : > { %v2412_v52 = vpop.f32.mrf.mxu1 }
 0x9df   : > { %v4504_v53 = vpop.f32.mrf.mxu1 }
 0x9e0   : > { %v2524_v54 = vmul.f32 0.35355338, %v4504_v53 }
 0x9e1   : > { %v2514_v55 = vpop.f32.mrf.mxu1 }
 0x9e2   : > { %v2523_v56 = vmul.f32 0.35355338, %v2514_v55  ;;  %v2526_v59 = vsel %vm6170_vm4, -1e+30, %v2524_v54 }
 0x9e3   : > { %v2530_v60 = vsel %vm1894_vm5, %v2526_v59, -inf }
 0x9e4   : > { %2531 = vmax.xlane.f32.xlu0 %v2530_v60  ;;  %v2525_v4 = vsel %vm6170_vm4, -1e+30, %v2523_v56  ;;  %v2839_v60 = vld [vmem:[%s6602_s23 + $0x10] sm:$0xff] }
 0x9e5   : > { %v2527_v61 = vsel %vm1894_vm5, %v2525_v4, -inf }
 0x9e6   : > { %2528 = vmax.xlane.f32.xlu1 %v2527_v61 }
 0x9e7   : > { %v6286_v63 = vpop.f32.mrf.mxu1 }
 0x9e8   : > { %v2833_v20 = vadd.f32 %v4269_v27, %v6286_v63 }
 0x9e9   : > { %v4533_v1 = vpop.f32.mrf.mxu1 }
 0x9ea   : > { %v2836_v47 = vmul.f32 %v2833_v20, %v6090_v19  ;;  %v4266_v1 = vld [vmem:[%s6603_s3] ss:$0 sm:$0xff] }
 0x9ef   : > { %v2996_v6 = vpop.f32.mrf.mxu1 }
 0x9f0   : > { %v2997_v8 = vadd.f32 %v4273_v3, %v2996_v6  ;;  %v1290_v3 = vld [vmem:[%s1095_s21] sm:$0x1]  ;;  %s6607_s21 = sld [smem:[#allocation71_spill]] }
 0x9f1   : > { %v4555_v9 = vpop.f32.mrf.mxu1  ;;  %vm3083_vm9 = vcmp.eq.f32.partialorder %v1290_v3, 0.0 }
 0x9f2   : > { %v3000_v10 = vmul.f32 %v2997_v8, %v6090_v19 }
 0x9f4   : > { %v6294_v11 = vmul.f32 %v3004_v45, %v3000_v10  ;;  %v3084_v10 = vsel %vm3083_vm9, 1, %v5574_v0  ;;  %v4271_v45 = vld [vmem:[%s6604_s20] ss:$0 sm:$0xff] }
 0xa6d   : > { %v2532_v12 = vpop.xlane.xlu0 %2531 }
 0xa6e   : > { %v2534_v14 = vsub.f32 %v2526_v59, %v2532_v12  ;;  %v2840_v59 = vld [vmem:[%s6602_s23 + $0x18] sm:$0xff]  ;;  %v3088_v12 = vrot.slane %v3084_v10, %v6107_v35 }
 0xa6f   : > { %v2529_v15 = vpop.xlane.xlu1 %2528 }
 0xa70   : > { %v2537_v21 = vmul.f32 1.442695, %v2534_v14  ;;  %v2533_v22 = vsub.f32 %v2525_v4, %v2529_v15  ;;  %v2837_v4 = vld [vmem:[%s6602_s23] sm:$0xff]  ;;  %vm6383_vm10 = vcmp.eq.s32.totalorder %v3088_v12, 1 }
 0xa72   : > { %4894 = vpow2.f32 %v2537_v21  ;;  %v2535_v25 = vmul.f32 1.442695, %v2533_v22 }
 0xa74   : > { %4896 = vpow2.f32 %v2535_v25  ;;  %v3703_v25 = vld [vmem:[#allocation31 + $0x18] sm:$0xff] }
 0xa7f   : > { %v4895_v26 = vpop.eup %4894 }
 0xa80   : > { %v2542_v28 = vsel %vm1894_vm5, %v4895_v26, 0.0 }
 0xa81   : > { %v4897_v13 = vpop.eup %4896  ;;  %2543 = vadd.xlane.f32.xlu1 %v2542_v28 }
 0xa82   : > { %v2539_v41 = vsel %vm1894_vm5, %v4897_v13, 0.0 }
 0xa83   : > { %2540 = vadd.xlane.f32.xlu0 %v2539_v41 }
 0xa92   : > { %2549 = vrot.lane.b32.xlu1 %v6159_v42, %s5579_s10 }
 0xa96   : > { %2208 = vrot.lane.b32.xlu1 %v6230_v58, %s5580_s12 }
 0xa99   : > { %2551 = vrot.lane.b32.xlu0 %v6140_v23, %s5579_s10 }
 0xa9a   : > { %2423 = vrot.lane.b32.xlu1 %v2412_v52, %s5581_s9 }
 0xa9d   : > { %2210 = vrot.lane.b32.xlu0 %v6228_v57, %s5580_s12 }
 0xaa1   : > { %2425 = vrot.lane.b32.xlu0 %v4497_v51, %s5581_s9  ;;  %v2652_v51 = vrot.slane %v6145_v30, %v6107_v35  ;;  %v2838_v30 = vld [vmem:[%s6602_s23 + $0x8] sm:$0xff] }
 0xb0a   : > { %v2544_v29 = vpop.xlane.xlu1 %2543 }
 0xb0b   : > { %4898 = vrcp.f32 %v2544_v29 }
 0xb0c   : > { %v2541_v31 = vpop.xlane.xlu0 %2540 }
 0xb0d   : > { %4900 = vrcp.f32 %v2541_v31 }
 0xb0e   : > { %v2550_v42 = vpop.permute.xlu1 %2549 }
 0xb10   : > { %v2552_v16 = vpop.permute.xlu0 %2551 }
 0xb11   : > { %4505 = vmatprep.subr.mxu0 %v2552_v16 }
 0xb12   : > { %4506 = vmatpush3.msra.mxu0 %v2552_v16  ;;  %v2209_v58 = vpop.permute.xlu1 %2208 }
 0xb13   : > { %2215 = vst.msk [vmem:[#allocation2] sm:$0xff] %vm2214_vm6, %v2209_v58  ;;  %4507 = vmatprep.subr.mxu0 %v2550_v42 }
 0xb14   : > { %v2211_v23 = vpop.permute.xlu0 %2210  ;;  %4508 = vmatpush3.msra.mxu0 %v2550_v42 }
 0xb15   : > { %2216 = vst.msk [vmem:[#allocation2 + $0x8] sm:$0xff] %vm2214_vm6, %v2211_v23  ;;  %4512 = vmatprep.subr.mxu0 %v2660_v37 }
 0xb16   : > { %v2424_v57 = vpop.permute.xlu1 %2423 }
 0xb17   : > { %2430 = vst.msk [vmem:[#allocation2] sm:$0xff] %vm2429_vm7, %v2424_v57 }
 0xb18   : > { %v2426_v40 = vpop.permute.xlu0 %2425  ;;  %v4899_v32 = vpop.eup %4898 }
 0xb19   : > { %2431 = vst.msk [vmem:[#allocation2 + $0x8] sm:$0xff] %vm2429_vm7, %v2426_v40  ;;  %v2548_v36 = vmul.f32 %v4899_v32, %v4895_v26 }
 0xb1a   : > { %v4901_v33 = vpop.eup %4900 }
 0xb1b   : > { %v2547_v34 = vmul.f32 %v4901_v33, %v4897_v13 }
 0xb1d   : > { %4509 = vmatprep.mubr.msk.f32.mxu0 %vm1894_vm5, %v2547_v34 }
 0xb1e   : > { %4510 = vmatmul.mubr.msk.f32.vlgmr.msra.gmra.mxu0 %vm1894_vm5, %v2548_v36 }
 0xb1f   : > { %4513 = vmatpush3.msra.mxu0 %v2660_v37 }
 0xb20   : > { %4514 = vmatprep.subr.mxu0 %v2659_v38 }
 0xb21   : > { %4515 = vmatpush3.msra.mxu0 %v2659_v38 }
 0xb22   : > { %4516 = vmatprep.subr.mxu0 %v2658_v39 }
 0xb23   : > { %4517 = vmatpush3.msra.mxu0 %v2658_v39 }
 0xb24   : > { %4518 = vmatprep.subr.mxu0 %v2657_v43 }
 0xb25   : > { %4519 = vmatpush3.msra.mxu0 %v2657_v43 }
 0xb26   : > { %4534 = vmatprep.subr.mxu0 %v5575_v7 }
 0xbde   : > { %v4511_v44 = vpop.f32.mrf.mxu0 }
 0xbdf   : > { %2640 = vrot.lane.b32.xlu0 %v4511_v44, %s5582_s26 }
 0xbe0   : > { %v2627_v46 = vpop.f32.mrf.mxu0 }
 0xbe1   : > { %2638 = vrot.lane.b32.xlu1 %v2627_v46, %s5582_s26 }
 0xbe3   : > { %3176 = vrot.lane.b32.xlu0 %v6294_v11, %s5577_s25 }
 0xbe5   : > { %3178 = vrot.lane.b32.xlu1 %v2836_v47, %s5577_s25 }
 0xbe7   : > { %3349 = vrot.lane.b32.xlu0 %v6294_v11, %s5578_s2 }
 0xbe9   : > { %3351 = vrot.lane.b32.xlu1 %v2836_v47, %s5578_s2 }
 0xbeb   : > { %3521 = vrot.lane.b32.xlu0 %v6294_v11, %s5579_s10 }
 0xbed   : > { %3523 = vrot.lane.b32.xlu1 %v2836_v47, %s5579_s10 }
 0xc51   : > { %v2641_v48 = vpop.permute.xlu0 %2640 }
 0xc52   : > { %2646 = vst.msk [vmem:[#allocation2 + $0x8] sm:$0xff] %vm2644_vm8, %v2641_v48 }
 0xc53   : > { %v2639_v49 = vpop.permute.xlu1 %2638 }
 0xc54   : > { %2645 = vst.msk [vmem:[#allocation2] sm:$0xff] %vm2644_vm8, %v2639_v49 }
 0xc59   : > { %v2648_v50 = vld [vmem:[#allocation2 + $0x8] sm:$0xff] }
 0xc5a   : > { %v2654_v53 = vmul.f32 %v2652_v51, %v2648_v50 }
 0xc5b   : > { %v2647_v52 = vld [vmem:[#allocation2] sm:$0xff] }
 0xc5c   : > { %v2653_v54 = vmul.f32 %v2652_v51, %v2647_v52  ;;  %v2656_v56 = vadd.f32 %v2654_v53, %v6098_v24  ;;  %v3177_v24 = vpop.permute.xlu0 %3176 }
 0xc5e   : > { %v2655_v55 = vadd.f32 %v2653_v54, %v6085_v17  ;;  %v3179_v17 = vpop.permute.xlu1 %3178 }
 0xc60   : > { %4520 = vmatprep.mubr.msk.f32.mxu0 %vm1304_vm1, %v2655_v55  ;;  %v3350_v61 = vpop.permute.xlu0 %3349 }
 0xc61   : > { %4521 = vmatmul.mubr.msk.f32.vlgmr.msra.gmra.mxu0 %vm1304_vm1, %v2656_v56 }
 0xc62   : > { %4535 = vmatpush3.msra.mxu0 %v2840_v59  ;;  %4542 = vmatprep.mubr.msk.f32.mxu0 %vm5576_vm0, %v5575_v7 }
 0xc63   : > { %4536 = vmatprep.subr.mxu0 %v5575_v7 }
 0xc64   : > { %4537 = vmatpush3.msra.mxu0 %v2839_v60  ;;  %v3522_v63 = vpop.permute.xlu0 %3521 }
 0xc65   : > { %4538 = vmatprep.subr.mxu0 %v5575_v7 }
 0xc66   : > { %4539 = vmatpush3.msra.mxu0 %v2838_v30 }
 0xc67   : > { %4540 = vmatprep.subr.mxu0 %v5575_v7 }
 0xc68   : > { %4541 = vmatpush3.msra.mxu0 %v2837_v4 }
 0xc69   : > { %4543 = vmatmul.mubr.msk.f32.vlgmr.msra.gmra.mxu0 %vm1304_vm1, %v6088_v18  ;;  %4556 = vmatprep.subr.mxu0 %v5575_v7  ;;  %v3352_v18 = vpop.permute.xlu1 %3351 }
 0xc6a   : > { %4557 = vmatpush3.xpose.msk.msra.mxu0 %vm1795_vm2, %v2836_v47  ;;  %4558 = vmatprep.mubr.msk.f32.mxu0 %vm5576_vm0, %v5575_v7 }
 0xc6b   : > { %4566 = vmatprep.subr.mxu0 %v5575_v7 }
 0xc6d   : > { %4559 = vmatmul.mubr.msk.f32.vlgmr.msra.gmra.mxu0 %vm1795_vm2, %v6294_v11  ;;  %v3524_v62 = vpop.permute.xlu1 %3523 }
 0xc6e   : > { %4567 = vmatpush3.xpose.msk.msra.mxu0 %vm1795_vm2, %v3179_v17  ;;  %4568 = vmatprep.mubr.msk.f32.mxu0 %vm5576_vm0, %v5575_v7 }
 0xc6f   : > { %4576 = vmatprep.subr.mxu0 %v5575_v7 }
 0xc71   : > { %4569 = vmatmul.mubr.msk.f32.vlgmr.msra.gmra.mxu0 %vm1795_vm2, %v3177_v24 }
 0xc72   : > { %4577 = vmatpush3.xpose.msk.msra.mxu0 %vm1795_vm2, %v3352_v18  ;;  %4578 = vmatprep.mubr.msk.f32.mxu0 %vm5576_vm0, %v5575_v7 }
 0xc73   : > { %4586 = vmatprep.subr.mxu0 %v5575_v7 }
 0xc75   : > { %4579 = vmatmul.mubr.msk.f32.vlgmr.msra.gmra.mxu0 %vm1795_vm2, %v3350_v61 }
 0xc76   : > { %4587 = vmatpush3.xpose.msk.msra.mxu0 %vm1795_vm2, %v3524_v62  ;;  %4588 = vmatprep.mubr.msk.f32.mxu0 %vm5576_vm0, %v5575_v7 }
 0xc77   : > { %4596 = vmatprep.subr.mxu0 %v5575_v7 }
 0xc79   : > { %4589 = vmatmul.mubr.msk.f32.vlgmr.msra.gmra.mxu0 %vm1795_vm2, %v3522_v63 }
 0xc7a   : > { %4604 = vmatprep.mubr.msk.f32.mxu0 %vm5576_vm0, %v5575_v7  ;;  %4597 = vmatpush3.msra.mxu0 %v3703_v25 }
 0xc7b   : > { %4598 = vmatprep.subr.mxu0 %v5575_v7 }
 0xd21   : > { %v4522_v5 = vpop.f32.mrf.mxu0 }
 0xd22   : > { %v2746_v6 = vadd.f32 %v4522_v5, %v4266_v1 }
 0xd23   : > { %v2740_v8 = vpop.f32.mrf.mxu0 }
 0xd24   : > { %2750 = vst [vmem:[%s6375_s28 + $0x8] sm:$0xff] %v2746_v6  ;;  %v2741_v9 = vadd.f32 %v4266_v1, %v2740_v8 }
 0xd26   : > { %2749 = vst [vmem:[%s6375_s28] sm:$0xff] %v2741_v9 }
 0xd29   : > { %v2914_v11 = vpop.f32.mrf.mxu0 }
 0xd2a   : > { %v2915_v14 = vadd.f32 %v4271_v45, %v2914_v11 }
 0xd2b   : > { %v4544_v15 = vpop.f32.mrf.mxu0 }
 0xd2c   : > { %v2918_v21 = vmul.f32 %v2915_v14, %v6090_v19 }
 0xd2d   : > { %v3078_v22 = vpop.f32.mrf.mxu0 }
 0xd2e   : > { %v3082_v26 = vmul.f32 0.35355338, %v3078_v22  ;;  %4562 = vmatpush3.msra.mxu1 %v2918_v21 }
 0xd2f   : > { %v4560_v28 = vpop.f32.mrf.mxu0  ;;  %4571 = vmatprep.subr.mxu1 %v5575_v7 }
 0xd30   : > { %v3090_v0 = vsel %vm6383_vm10, -1e+30, %v3082_v26  ;;  %v3702_v26 = vld [vmem:[#allocation31 + $0x10] sm:$0xff]  ;;  %v3701_v28 = vld [vmem:[#allocation31 + $0x8] sm:$0xff] }
 0xd31   : > { %v3250_v13 = vpop.f32.mrf.mxu0  ;;  %v3091_v41 = vsel %vm1795_vm2, %v3090_v0, -inf  ;;  %4599 = vmatpush3.msra.mxu0 %v3702_v26 }
 0xd32   : > { %v3254_v29 = vmul.f32 0.35355338, %v3250_v13  ;;  %3092 = vmax.xlane.f32.xlu1 %v3091_v41  ;;  %4600 = vmatprep.subr.mxu0 %v5575_v7 }
 0xd33   : > { %v4570_v31 = vpop.f32.mrf.mxu0  ;;  %4601 = vmatpush3.msra.mxu0 %v3701_v28 }
 0xd34   : > { %v3255_v19 = vsel %vm6383_vm10, -1e+30, %v3254_v29  ;;  %4602 = vmatprep.subr.mxu0 %v5575_v7 }
 0xd35   : > { %v3423_v42 = vpop.f32.mrf.mxu0  ;;  %v3256_v16 = vsel %vm1795_vm2, %v3255_v19, -inf }
 0xd36   : > { %v3427_v58 = vmul.f32 0.35355338, %v3423_v42  ;;  %3257 = vmax.xlane.f32.xlu0 %v3256_v16 }
 0xd37   : > { %v4580_v23 = vpop.f32.mrf.mxu0 }
 0xd38   : > { %v3428_v57 = vsel %vm6383_vm10, -1e+30, %v3427_v58  ;;  %v4918_v58 = vld [vmem:[%s6005_s8] sm:$0xff] }
 0xd39   : > { %v3595_v40 = vpop.f32.mrf.mxu0  ;;  %v3429_v32 = vsel %vm1795_vm2, %v3428_v57, -inf }
 0xd3a   : > { %v3599_v33 = vmul.f32 0.35355338, %v3595_v40  ;;  %3430 = vmax.xlane.f32.xlu0 %v3429_v32 }
 0xd3b   : > { %v4590_v34 = vpop.f32.mrf.mxu0 }
 0xd3c   : > { %v3600_v36 = vsel %vm6383_vm10, -1e+30, %v3599_v33 }
 0xd3d   : > { %v3601_v37 = vsel %vm1795_vm2, %v3600_v36, -inf }
 0xd3e   : > { %3602 = vmax.xlane.f32.xlu1 %v3601_v37 }
 0xdbb   : > { %v3093_v38 = vpop.xlane.xlu1 %3092 }
 0xdbc   : > { %v3094_v39 = vsub.f32 %v3090_v0, %v3093_v38  ;;  %v3700_v0 = vld [vmem:[#allocation31] sm:$0xff] }
 0xdbd   : > { %4603 = vmatpush3.msra.mxu0 %v3700_v0 }
 0xdbe   : > { %v3095_v27 = vmul.f32 1.442695, %v3094_v39 }
 0xdbf   : > { %v3258_v43 = vpop.xlane.xlu0 %3257 }
 0xdc0   : > { %4902 = vpow2.f32 %v3095_v27  ;;  %v3259_v44 = vsub.f32 %v3255_v19, %v3258_v43 }
 0xdc2   : > { %v3260_v20 = vmul.f32 1.442695, %v3259_v44 }
 0xdc3   : > { %v3431_v46 = vpop.xlane.xlu0 %3430 }
 0xdc4   : > { %4904 = vpow2.f32 %v3260_v20  ;;  %v3432_v47 = vsub.f32 %v3428_v57, %v3431_v46 }
 0xdc6   : > { %v3433_v48 = vmul.f32 1.442695, %v3432_v47 }
 0xdc7   : > { %v3603_v55 = vpop.xlane.xlu1 %3602 }
 0xdc8   : > { %4906 = vpow2.f32 %v3433_v48  ;;  %v3604_v56 = vsub.f32 %v3600_v36, %v3603_v55 }
 0xdca   : > { %v3605_v59 = vmul.f32 1.442695, %v3604_v56 }
 0xdcc   : > { %4908 = vpow2.f32 %v3605_v59 }
 0xdcd   : > { %v4903_v49 = vpop.eup %4902 }
 0xdce   : > { %v3097_v50 = vsel %vm1795_vm2, %v4903_v49, 0.0 }
 0xdcf   : > { %3098 = vadd.xlane.f32.xlu0 %v3097_v50 }
 0xdd1   : > { %v4905_v51 = vpop.eup %4904 }
 0xdd2   : > { %v3262_v52 = vsel %vm1795_vm2, %v4905_v51, 0.0 }
 0xdd3   : > { %3263 = vadd.xlane.f32.xlu1 %v3262_v52 }
 0xdd5   : > { %v4907_v53 = vpop.eup %4906 }
 0xdd6   : > { %v3435_v54 = vsel %vm1795_vm2, %v4907_v53, 0.0 }
 0xdd7   : > { %3436 = vadd.xlane.f32.xlu0 %v3435_v54 }
 0xdd9   : > { %v4909_v60 = vpop.eup %4908 }
 0xdda   : > { %v3607_v30 = vsel %vm1795_vm2, %v4909_v60, 0.0 }
 0xde4   : > { %3440 = vrot.lane.b32.xlu1 %v2918_v21, %s5578_s2 }
 0xded   : > { %3268 = vrot.lane.b32.xlu0 %v2918_v21, %s5577_s25  ;;  %s4298_s25 = sshll.u32 %s5762_s18, 8 }
 0xdee   : > { %s6438_s2 = scalar_lea.hbm %s6607_s21, %s4298_s25 }
 0xe08   : > { %3608 = vadd.xlane.f32.xlu1 %v3607_v30 }
 0xe19   : > { %3612 = vrot.lane.b32.xlu1 %v2918_v21, %s5579_s10  ;;  %s3786_s10 = scalar_lea.sflag [#allocation6], %s5999_s24 }
 0xe58   : > { %v3099_v4 = vpop.xlane.xlu0 %3098 }
 0xe59   : > { %4910 = vrcp.f32 %v3099_v4 }
 0xe5c   : > { %v3264_v17 = vpop.xlane.xlu1 %3263 }
 0xe5d   : > { %4912 = vrcp.f32 %v3264_v17 }
 0xe60   : > { %v3437_v24 = vpop.xlane.xlu0 %3436  ;;  %v3441_v3 = vpop.permute.xlu1 %3440 }
 0xe61   : > { %4914 = vrcp.f32 %v3437_v24 }
 0xe64   : > { %v3269_v62 = vpop.permute.xlu0 %3268 }
 0xe66   : > { %v4911_v18 = vpop.eup %4910 }
 0xe67   : > { %v3101_v61 = vmul.f32 %v4911_v18, %v4903_v49 }
 0xe69   : > { %4564 = vmatmul.mubr.msk.f32.vlgmr.msra.gmra.mxu1 %vm1795_vm2, %v3101_v61 }
 0xe6a   : > { %v4913_v63 = vpop.eup %4912  ;;  %4572 = vmatpush3.msra.mxu1 %v3269_v62  ;;  %4573 = vmatprep.mubr.msk.f32.mxu1 %vm5576_vm0, %v5575_v7 }
 0xe6b   : > { %4581 = vmatprep.subr.mxu1 %v5575_v7  ;;  %v3266_v1 = vmul.f32 %v4913_v63, %v4905_v51 }
 0xe6d   : > { %4574 = vmatmul.mubr.msk.f32.vlgmr.msra.gmra.mxu1 %vm1795_vm2, %v3266_v1 }
 0xe6e   : > { %v4915_v5 = vpop.eup %4914  ;;  %4582 = vmatpush3.msra.mxu1 %v3441_v3  ;;  %4583 = vmatprep.mubr.msk.f32.mxu1 %vm5576_vm0, %v5575_v7 }
 0xe6f   : > { %v3439_v6 = vmul.f32 %v4915_v5, %v4907_v53  ;;  %4591 = vmatprep.subr.mxu1 %v5575_v7 }
 0xe71   : > { %4584 = vmatmul.mubr.msk.f32.vlgmr.msra.gmra.mxu1 %vm1795_vm2, %v3439_v6 }
 0xe72   : > { %4593 = vmatprep.mubr.msk.f32.mxu1 %vm5576_vm0, %v5575_v7  ;;  %v3697_v7 = vrot.slane %v6288_v2, %v6107_v35 }
 0xe91   : > { %v3609_v8 = vpop.xlane.xlu1 %3608 }
 0xe92   : > { %4916 = vrcp.f32 %v3609_v8 }
 0xe95   : > { %v3613_v9 = vpop.permute.xlu1 %3612 }
 0xe96   : > { %4592 = vmatpush3.msra.mxu1 %v3613_v9 }
 0xe9f   : > { %v4917_v10 = vpop.eup %4916 }
 0xea0   : > { %v3611_v45 = vmul.f32 %v4917_v10, %v4909_v60 }
 0xea2   : > { %4594 = vmatmul.mubr.msk.f32.vlgmr.msra.gmra.mxu1 %vm1795_vm2, %v3611_v45 }
 0xf29   : > { %v3171_v11 = vpop.f32.mrf.mxu1 }
 0xf2a   : > { %3175 = vst.msk [vmem:[#allocation3] sm:$0xff] %vm1795_vm2, %v3171_v11 }
 0xf2b   : > { %v4565_v12 = vpop.f32.mrf.mxu1 }
 0xf2d   : > { %v3340_v14 = vpop.f32.mrf.mxu1 }
 0xf2e   : > { %3345 = vrot.lane.b32.xlu0 %v3340_v14, %s5580_s12 }
 0xf2f   : > { %v4575_v15 = vpop.f32.mrf.mxu1 }
 0xf31   : > { %v3512_v21 = vpop.f32.mrf.mxu1 }
 0xf32   : > { %3517 = vrot.lane.b32.xlu1 %v3512_v21, %s5581_s9  ;;  %s5393_s9 = scalar_lea.vmem %s6434_s6, 256 }
 0xf33   : > { %v4585_v22 = vpop.f32.mrf.mxu1  ;;  %p5394_p7 = scmp.ne.s32.totalorder %s6434_s6, %s5393_s9 }
 0xf35   : > { %p5395_p12 = pnand %p5394_p7, %p6608_p9 }
 0xf37   : > { %p5396_p13 = pneg %p5395_p12 }
 0xf62   : > { %v3684_v13 = vpop.f32.mrf.mxu1 }
 0xf63   : > { %3689 = vrot.lane.b32.xlu0 %v3684_v13, %s5582_s26  ;;  %s5583_s26 = smov [#allocation33]  }
 0xf64   : > { %v4595_v41 = vpop.f32.mrf.mxu1  ;;  %s5397_s8 = sshll.u32 %s5583_s26, 4  ;;  %s5398_s8 = int_to_ptr.vmem [resolvable:$false] %s5397_s8 }
 0xf65   : > { %s5399_s3 = scalar_lea.vmem %s5398_s8, 512  ;;  %p5400_p6 = scmp.lt.s32.totalorder %s6434_s6, %s5398_s8 }
 0xf66   : > { %p5401_p11 = scmp.lt.s32.totalorder %s5399_s3, %s5393_s9 }
 0xf68   : > { %p5402_p0 = por %p5401_p11, %p5400_p6 }
 0xf6a   : > { %p5403_p10 = pnand %p5402_p0, %p5396_p13 }
 0xfa0   : > { %v3346_v29 = vpop.permute.xlu0 %3345 }
 0xfa1   : > { %3348 = vst.msk [vmem:[#allocation3] sm:$0xff] %vm2214_vm6, %v3346_v29 }
 0xfa4   : > { %v3518_v31 = vpop.permute.xlu1 %3517 }
 0xfa5   : > { %3520 = vst.msk [vmem:[#allocation3] sm:$0xff] %vm2429_vm7, %v3518_v31 }
 0xfd5   : > { %v3690_v19 = vpop.permute.xlu0 %3689 }
 0xfd6   : > { %3692 = vst.msk [vmem:[#allocation3] sm:$0xff] %vm2644_vm8, %v3690_v19 }
 0xfdd   : > { %v3693_v42 = vld [vmem:[#allocation3] sm:$0xff] }
 0xfde   : > { %v3698_v16 = vmul.f32 %v3697_v7, %v3693_v42 }
 0xfe0   : > { %v3699_v23 = vadd.f32 %v4918_v58, %v3698_v16 }
 0xfe2   : > { %4605 = vmatmul.mubr.msk.f32.vlgmr.msra.gmra.mxu0 %vm1304_vm1, %v3699_v23 }
 0xfe3   : > { %5406 = shalt.err (!%p5403_p10)
}
 0xfe4   : > { %s5407_s20 = scalar_lea.hbm %s6438_s2, 256  ;;  %s5411_s14 = scalar_lea.hbm %s6607_s21, 512 }
 0xfe5   : > { %p5408_p2 = scmp.ne.s32.totalorder %s6438_s2, %s5407_s20  ;;  %p5412_p1 = scmp.lt.s32.totalorder %s6438_s2, %s6607_s21 }
 0xfe6   : > { %p5413_p3 = scmp.lt.s32.totalorder %s5411_s14, %s5407_s20 }
 0xfe7   : > { %p5409_p8 = pnand %p5408_p2, %p6608_p9 }
 0xfe8   : > { %p5414_p4 = por %p5413_p3, %p5412_p1 }
 0xfe9   : > { %p5410_p5 = pneg %p5409_p8 }
 0xfeb   : > { %p5415_p7 = pnand %p5414_p4, %p5410_p5 }
 0xfed   : > { %5418 = shalt.err (!%p5415_p7)
}
 0xfee   : > { %s5584_s28 = smov 128   ;;  %s6609_s25 = sld [smem:[#allocation70_spill]] }
 0xfef   : > { %s6610_s9 = sld [smem:[#allocation72_spill]]  ;;  %s4293_s26 = sshll.u32 %s5762_s18, 7 }
 0xff0   : > { %4673 = dma.vmem_to_hbm [thread:$0]  (%p6608_p9), %s6434_s6, 256, %s6438_s2, %s3786_s10, %s5584_s28, %s5584_s28, %s5580_s12  }
 0xff1   : > { %s1262_s8 = scalar_lea.vmem [#allocation34], %s4208_s17  ;;  %s3791_s14 = scalar_lea.sflag [#allocation35], %s5999_s24 }
 0xff2   : > { %s3820_s3 = sshll.u32 %s1262_s8, 4  ;;  %s5585_s5 = smov [#allocation34]   ;;  %s3821_s3 = int_to_ptr.vmem [resolvable:$true] %s3820_s3 }
 0xff3   : > { %s5419_s4 = scalar_lea.vmem %s3821_s3, 128  ;;  %s5423_s12 = sshll.u32 %s5585_s5, 4  ;;  %s5424_s12 = int_to_ptr.vmem [resolvable:$false] %s5423_s12 }
 0xff4   : > { %v4287_v35 = vld [vmem:[%s6609_s25] ss:$0 sm:$0xff]  ;;  %p5420_p12 = scmp.ne.s32.totalorder %s3821_s3, %s5419_s4  ;;  %s5425_s18 = scalar_lea.vmem %s5424_s12, 256 }
 0xff5   : > { %s6465_s20 = scalar_lea.hbm %s6610_s9, %s4293_s26  ;;  %p5426_p11 = scmp.lt.s32.totalorder %s3821_s3, %s5424_s12 }
 0xff6   : > { %p5421_p13 = pnand %p5420_p12, %p6608_p9  ;;  %p5427_p0 = scmp.lt.s32.totalorder %s5425_s18, %s5419_s4 }
 0xff8   : > { %p5422_p6 = pneg %p5421_p13  ;;  %p5428_p10 = por %p5427_p0, %p5426_p11 }
 0xffa   : > { %p5429_p2 = pnand %p5428_p10, %p5422_p6 }
0x10a2   : > { %v3780_v2 = vpop.f32.mrf.mxu0 }
0x10a3   : > { %v3781_v57 = vadd.f32 %v4287_v35, %v3780_v2 }
0x10a4   : > { %v4606_v40 = vpop.f32.mrf.mxu0 }
0x10a5   : > { %3784 = vst [vmem:[%s1262_s8] sm:$0xff] %v3781_v57 }
0x10a6   : > { %5432 = shalt.err (!%p5429_p2)
}
0x10a7   : > { %s5433_s24 = scalar_lea.hbm %s6465_s20, 128  ;;  %s5437_s17 = scalar_lea.hbm %s6610_s9, 256 }
0x10a8   : > { %p5434_p8 = scmp.ne.s32.totalorder %s6465_s20, %s5433_s24  ;;  %p5438_p3 = scmp.lt.s32.totalorder %s6465_s20, %s6610_s9 }
0x10a9   : > { %p5439_p4 = scmp.lt.s32.totalorder %s5437_s17, %s5433_s24 }
0x10aa   : > { %p5435_p5 = pnand %p5434_p8, %p6608_p9 }
0x10ab   : > { %p5440_p7 = por %p5439_p4, %p5438_p3 }
0x10ac   : > { %p5436_p1 = pneg %p5435_p5 }
0x10ae   : > { %p5441_p12 = pnand %p5440_p7, %p5436_p1 }
0x10b0   : > { %5444 = shalt.err (!%p5441_p12)
}
0x10b1   : > { %4674 = dma.vmem_to_hbm [thread:$0]  (%p6608_p9), %s3821_s3, 128, %s6465_s20, %s3791_s14  }
0x10b2 PF: > { %s3832_s4 = sand.u32 1, %s5511_s7   ;;  %p6611_p13 = scmp.ne.s32.totalorder %s6563_s1, 0 }
0x10b3   : > { %p6612_p6 = scmp.ge.s32.totalorder %s5523_s11, 2  ;;  %s3833_s5 = scalar_lea.sflag [#allocation6], %s3832_s4 }
0x10b5   : > { %p4734_p11 = pnand %p6612_p6, %p6611_p13 }
0x10b7   : > { %p4735_p0 = pneg %p4734_p11 }
0x10b9   : > { %5502 = dma.done.wait (%p4735_p0), %s3833_s5, 256  }
0x10ba   : > { %5504 = vsyncadd (%p4735_p0), %s3833_s5, 4294967040  ;;  %s3842_s6 = scalar_lea.sflag [#allocation35], %s3832_s4 }
0x10bb   : > { %5506 = dma.done.wait (%p4735_p0), %s3842_s6, 128  }
0x10bc   : > { %5508 = vsyncadd (%p4735_p0), %s3842_s6, 4294967168  ;;  %s6613_s15 = sld [smem:[#allocation73_spill]]  ;;  %p87_p9 = scmp.ge.s32.totalorder %s5842_s16, 4  }
0x10bd   : > { %s6614_s10 = sld [smem:[#allocation74_spill]]  ;;  %s6615_s7 = smov %s5515_s0 }
0x10be   : > { %s6617_s11 = smov %s5842_s16  ;;  %89 = sbr.rel (!%p87_p9) target bundleno = 76 (0x4c), region = 322 }
0x10c2   : > { %s6616_s0 = smov %s6613_s15 }
0x10c3   :  { %3847 = vsyncpa [#allocation5], 1 }
0x10c4   :  { %3849 = vsyncpa [#allocation5 + $0x1], 1 }
0x10c5   :  { %3850 = vsyncpa [#allocation8], 1 }
0x10c6   :  { %3852 = vsyncpa [#allocation8 + $0x1], 1 }
0x10c7   :  { %3853 = vsyncpa [#allocation11], 1 }
0x10c8   :  { %3854 = vsyncpa [#allocation14], 1 }
0x10c9   :  { %3855 = vsyncpa [#allocation17], 1 }
0x10ca   :  { %3856 = vsyncpa [#allocation20], 1 }
0x10cb   :  { %3857 = vsyncpa [#allocation23], 1 }
0x10cc   :  { %3858 = vsyncpa [#allocation26], 1 }
0x10cd   :  { %3859 = vsyncpa [#allocation29], 1 }
0x10ce   :  { %3860 = vsyncpa [#allocation32], 1 }
0x10cf   :  { %3861 = vsyncpa [#allocation6], 1 }
0x10d0   :  { %3863 = vsyncpa [#allocation6 + $0x1], 1 }
0x10d1   :  { %3864 = vsyncpa [#allocation35], 1 }
0x10d2   :  { %3866 = vsyncpa [#allocation35 + $0x1], 1 }

</bundles_post_ra>
